<compile_context>
chip_gen: v5e
topology: v5e:2x2
jax: 0.10.0
libtpu: 0.0.40
codegen_flags: <defaults>
</compile_context>

<pallas_src>
import jax
import jax.numpy as jnp
import numpy as np
from jax import lax
from jax.experimental import pallas as pl
from jax.experimental.pallas import tpu as pltpu


def _round_up(x, m):
    return (x + m - 1) // m * m


def _pad_gate_matrix(w, h, hp):
    """PyTorch (4H, H) gate-stacked weight -> transposed, per-gate padded (Hp, 4Hp)."""
    w_t = jnp.asarray(w, jnp.float32).T                      # (H, 4H)
    out = jnp.zeros((hp, 4 * hp), jnp.float32)
    for g in range(4):
        out = out.at[:h, g * hp:g * hp + h].set(w_t[:, g * h:(g + 1) * h])
    return out


def _pad_gate_bias(b_ih, b_hh, h, hp):
    b = jnp.asarray(b_ih, jnp.float32) + jnp.asarray(b_hh, jnp.float32)  # (4H,)
    out = jnp.zeros((1, 4 * hp), jnp.float32)
    for g in range(4):
        out = out.at[0, g * hp:g * hp + h].set(b[g * h:(g + 1) * h])
    return out


# ---------------------------------------------------------------------------
# Fused kernel: in-kernel embedding gather + hoisted input projection (one MXU
# matmul for all timesteps) + unrolled LSTM recurrence with state in vregs.
# PyTorch gate order i, f, g, o; each gate block is Hp wide (128-lane aligned).
# ---------------------------------------------------------------------------
def _decoder_kernel(ids_ref,                                   # SMEM (T*Bp,) int32, time-major
                    emb_ref, w_ih_t_ref, w_hh_t_ref, b_ref,    # VMEM params
                    h0_ref, c0_ref,                            # VMEM initial state (Bp, Hp)
                    out_ref, hn_ref, cn_ref,                   # VMEM outputs
                    x_ref, gx_ref):                            # VMEM scratch
    t_steps, bp, hp = out_ref.shape
    n_rows = t_steps * bp

    # (1) Fused embedding gather: token id (SMEM scalar) -> one (1, Hp) row of
    #     the VMEM-resident table per output row.  No grid-step overhead, no
    #     HBM round trip for x.
    def gather_row(n, carry):
        x_ref[pl.ds(n, 1), :] = emb_ref[pl.ds(ids_ref[n], 1), :]
        return carry

    lax.fori_loop(0, n_rows, gather_row, 0, unroll=True)

    # (2) Hoisted input projection for all timesteps: (T*Bp, Hp) @ (Hp, 4Hp) + b.
    gx_ref[...] = (
        jnp.dot(x_ref[...], w_ih_t_ref[...],
                preferred_element_type=jnp.float32) + b_ref[...])

    # (3) Sequential recurrence; (h, c) carried as loop state, W_hh read from
    #     its VMEM ref each step (no long live range on the full weight).
    def step(t, carry):
        h, c = carry
        row0 = pl.multiple_of(t * bp, bp)                       # sublane-aligned (bp % 8 == 0)
        gates = gx_ref[pl.ds(row0, bp), :] + jnp.dot(
            h, w_hh_t_ref[...], preferred_element_type=jnp.float32)  # (Bp, 4Hp)
        i_g = jax.nn.sigmoid(gates[:, 0 * hp:1 * hp])           # 128-aligned static slices
        f_g = jax.nn.sigmoid(gates[:, 1 * hp:2 * hp])
        g_g = jnp.tanh(gates[:, 2 * hp:3 * hp])
        o_g = jax.nn.sigmoid(gates[:, 3 * hp:4 * hp])
        c = f_g * c + i_g * g_g
        h = o_g * jnp.tanh(c)
        out_ref[t] = h.astype(out_ref.dtype)                    # full (Bp, Hp) dense slab
        return (h, c)

    h, c = lax.fori_loop(0, t_steps, step, (h0_ref[...], c0_ref[...]),
                         unroll=True)
    hn_ref[...] = h.astype(hn_ref.dtype)
    cn_ref[...] = c.astype(cn_ref.dtype)


def decoder_forward(ids, emb_table, w_ih, w_hh, b_ih, b_hh,
                    encoder_state, incr_state=None):
    """Mirrors Decoder.forward: embed `ids`, run LSTM seeded with encoder_state
    (or incr_state if given), return (output, (h_n, c_n))."""
    state = encoder_state if incr_state is None else incr_state
    h0, c0 = state
    B, T = ids.shape
    V, H = emb_table.shape
    Hp = _round_up(max(H, 128), 128)          # lane-dense hidden size
    Bp = _round_up(max(B, 8), 8)              # sublane-dense batch size

    # ---- parameter / activation prep; zero padding is math-preserving:
    #      padded gate columns get 0 pre-activation so padded lanes of c, h
    #      stay exactly 0; padded batch rows are simply discarded. ----
    emb_p = jnp.zeros((V, Hp), jnp.float32).at[:, :H].set(
        jnp.asarray(emb_table, jnp.float32))                   # (V, Hp)
    w_ih_t_p = _pad_gate_matrix(w_ih, H, Hp)                   # (Hp, 4Hp)
    w_hh_t_p = _pad_gate_matrix(w_hh, H, Hp)                   # (Hp, 4Hp)
    b_p = _pad_gate_bias(b_ih, b_hh, H, Hp)                    # (1, 4Hp)
    h0_p = jnp.zeros((Bp, Hp), jnp.float32).at[:B, :H].set(
        jnp.reshape(jnp.asarray(h0, jnp.float32), (B, H)))
    c0_p = jnp.zeros((Bp, Hp), jnp.float32).at[:B, :H].set(
        jnp.reshape(jnp.asarray(c0, jnp.float32), (B, H)))

    # time-major flat ids: row n = t*Bp + b (padded batch rows use token 0)
    ids_p = jnp.zeros((Bp, T), jnp.int32).at[:B, :].set(jnp.asarray(ids, jnp.int32))
    ids_flat = jnp.transpose(ids_p).reshape(T * Bp)

    # ---- VMEM budget: resident bytes + 25% headroom, capped for v7x ----
    resident_bytes = 4 * (emb_p.size + w_ih_t_p.size + w_hh_t_p.size + b_p.size
                          + 2 * Bp * Hp                # h0 / c0
                          + (T + 2) * Bp * Hp          # out + hn + cn
                          + T * Bp * Hp                # x scratch
                          + T * Bp * 4 * Hp)           # gx scratch
    vmem_limit = int(min(48 * 1024 * 1024,
                         max(4 * 1024 * 1024,
                             int(resident_bytes * 1.25) + (1 << 20))))

    smem = pl.BlockSpec(memory_space=pltpu.MemorySpace.SMEM)
    vmem = pl.BlockSpec(memory_space=pltpu.MemorySpace.VMEM)
    out_tbh, hn, cn = pl.pallas_call(
        _decoder_kernel,
        out_shape=(jax.ShapeDtypeStruct((T, Bp, Hp), jnp.float32),
                   jax.ShapeDtypeStruct((Bp, Hp), jnp.float32),
                   jax.ShapeDtypeStruct((Bp, Hp), jnp.float32)),
        in_specs=[smem] + [vmem] * 6,
        out_specs=(vmem, vmem, vmem),
        scratch_shapes=[pltpu.VMEM((T * Bp, Hp), jnp.float32),
                        pltpu.VMEM((T * Bp, 4 * Hp), jnp.float32)],
        compiler_params=pltpu.CompilerParams(vmem_limit_bytes=vmem_limit),
    )(ids_flat, emb_p, w_ih_t_p, w_hh_t_p, b_p, h0_p, c0_p)

    # TODO(synk): at scale, let the consumer accept time-major output to avoid
    # this extra XLA transpose pass.
    output = jnp.transpose(out_tbh[:, :B, :H], (1, 0, 2))      # (B, T, H)
    h_n = hn[:B, :H].reshape(1, B, H)                          # PyTorch (1, B, H)
    c_n = cn[:B, :H].reshape(1, B, H)
    return output, (h_n, c_n)


def decoder_reference(ids, emb_table, w_ih, w_hh, b_ih, b_hh, h0, c0):
    """Pure-JAX reference matching torch.nn.LSTM(batch_first=True) semantics."""
    x = emb_table[ids]                                 # (B, T, H)
    B, T, H = x.shape
    h = jnp.reshape(h0, (B, H))
    c = jnp.reshape(c0, (B, H))
    outs = []
    for t in range(T):
        gates = x[:, t] @ w_ih.T + b_ih + h @ w_hh.T + b_hh
        i = jax.nn.sigmoid(gates[:, :H])
        f = jax.nn.sigmoid(gates[:, H:2 * H])
        g = jnp.tanh(gates[:, 2 * H:3 * H])
        o = jax.nn.sigmoid(gates[:, 3 * H:])
        c = f * c + i * g
        h = o * jnp.tanh(c)
        outs.append(h)
    return jnp.stack(outs, axis=1), h, c


if __name__ == "__main__":
    B, T, H, V = 2, 8, 32, 32        # batch, seq, hidden (= embed dim), vocab

    key = jax.random.PRNGKey(0)
    (k_emb, k_wih, k_whh, k_bih, k_bhh,
     k_ids, k_h0, k_c0, k_ids2) = jax.random.split(key, 9)

    bound = 1.0 / np.sqrt(H)         # PyTorch LSTM default init range
    emb_table = jax.random.normal(k_emb, (V, H), jnp.float32) * 0.1
    w_ih = jax.random.uniform(k_wih, (4 * H, H), jnp.float32, -bound, bound)
    w_hh = jax.random.uniform(k_whh, (4 * H, H), jnp.float32, -bound, bound)
    b_ih = jax.random.uniform(k_bih, (4 * H,), jnp.float32, -bound, bound)
    b_hh = jax.random.uniform(k_bhh, (4 * H,), jnp.float32, -bound, bound)

    ids = jax.random.randint(k_ids, (B, T), 0, V, jnp.int32)
    h0 = jax.random.normal(k_h0, (1, B, H), jnp.float32)      # encoder_state
    c0 = jax.random.normal(k_c0, (1, B, H), jnp.float32)

    # ---- full-sequence decode seeded with the encoder state ----
    output, (h_n, c_n) = decoder_forward(
        ids, emb_table, w_ih, w_hh, b_ih, b_hh, encoder_state=(h0, c0))
    jax.block_until_ready((output, h_n, c_n))

    ref_out, ref_h, ref_c = decoder_reference(
        ids, emb_table, w_ih, w_hh, b_ih, b_hh, h0, c0)
    np.testing.assert_allclose(np.asarray(output), np.asarray(ref_out),
                               rtol=1e-4, atol=1e-5)
    np.testing.assert_allclose(np.asarray(h_n[0]), np.asarray(ref_h),
                               rtol=1e-4, atol=1e-5)
    np.testing.assert_allclose(np.asarray(c_n[0]), np.asarray(ref_c),
                               rtol=1e-4, atol=1e-5)

    # ---- one incremental-decoding step (exercises the incr_state path) ----
    ids2 = jax.random.randint(k_ids2, (B, 1), 0, V, jnp.int32)
    out2, (h_n2, c_n2) = decoder_forward(
        ids2, emb_table, w_ih, w_hh, b_ih, b_hh,
        encoder_state=(h0, c0), incr_state=(h_n, c_n))
    jax.block_until_ready((out2, h_n2, c_n2))

    ref_out2, ref_h2, ref_c2 = decoder_reference(
        ids2, emb_table, w_ih, w_hh, b_ih, b_hh, h_n, c_n)
    np.testing.assert_allclose(np.asarray(out2), np.asarray(ref_out2),
                               rtol=1e-4, atol=1e-5)
    np.testing.assert_allclose(np.asarray(h_n2[0]), np.asarray(ref_h2),
                               rtol=1e-4, atol=1e-5)
    np.testing.assert_allclose(np.asarray(c_n2[0]), np.asarray(ref_c2),
                               rtol=1e-4, atol=1e-5)

    print("KERNEL_OK")
</pallas_src>

<mosaic_0001>
module attributes {stable_mosaic.version = 11 : i64} {
  func.func @_decoder_kernel(%arg0: memref<64xi32, #tpu.memory_space<smem>>, %arg1: memref<32x128xf32, #tpu.memory_space<vmem>>, %arg2: memref<128x512xf32, #tpu.memory_space<vmem>>, %arg3: memref<128x512xf32, #tpu.memory_space<vmem>>, %arg4: memref<1x512xf32, #tpu.memory_space<vmem>>, %arg5: memref<8x128xf32, #tpu.memory_space<vmem>>, %arg6: memref<8x128xf32, #tpu.memory_space<vmem>>, %arg7: memref<8x8x128xf32, #tpu.memory_space<vmem>>, %arg8: memref<8x128xf32, #tpu.memory_space<vmem>>, %arg9: memref<8x128xf32, #tpu.memory_space<vmem>>, %arg10: memref<64x128xf32, #tpu.memory_space<vmem>>, %arg11: memref<64x512xf32, #tpu.memory_space<vmem>>) attributes {dimension_semantics = [], scalar_prefetch = 0 : i64, scratch_operands = 2 : i64, tpu.core_type = #tpu.core_type<tc>} {
    %c0_i32 = arith.constant 0 : i32
    %0 = arith.index_cast %c0_i32 : i32 to index
    %1 = memref.load %arg0[%0] : memref<64xi32, #tpu.memory_space<smem>>
    %2 = arith.index_cast %1 : i32 to index
    %c0 = arith.constant 0 : index
    %3 = vector.load %arg1[%2, %c0] : memref<32x128xf32, #tpu.memory_space<vmem>>, vector<1x128xf32>
    %4 = arith.index_cast %c0_i32 : i32 to index
    %c0_0 = arith.constant 0 : index
    %5 = vector.load %arg10[%4, %c0_0] : memref<64x128xf32, #tpu.memory_space<vmem>>, vector<1x128xf32>
    tpu.vector_store %arg10[%4, %c0_0], %3 {strides = array<i32>} : memref<64x128xf32, #tpu.memory_space<vmem>>, vector<1x128xf32>,
    %c1_i32 = arith.constant 1 : i32
    %6 = arith.index_cast %c1_i32 : i32 to index
    %7 = memref.load %arg0[%6] : memref<64xi32, #tpu.memory_space<smem>>
    %8 = arith.index_cast %7 : i32 to index
    %c0_1 = arith.constant 0 : index
    %9 = vector.load %arg1[%8, %c0_1] : memref<32x128xf32, #tpu.memory_space<vmem>>, vector<1x128xf32>
    %10 = arith.index_cast %c1_i32 : i32 to index
    %c0_2 = arith.constant 0 : index
    %11 = vector.load %arg10[%10, %c0_2] : memref<64x128xf32, #tpu.memory_space<vmem>>, vector<1x128xf32>
    tpu.vector_store %arg10[%10, %c0_2], %9 {strides = array<i32>} : memref<64x128xf32, #tpu.memory_space<vmem>>, vector<1x128xf32>,
    %c2_i32 = arith.constant 2 : i32
    %12 = arith.index_cast %c2_i32 : i32 to index
    %13 = memref.load %arg0[%12] : memref<64xi32, #tpu.memory_space<smem>>
    %14 = arith.index_cast %13 : i32 to index
    %c0_3 = arith.constant 0 : index
    %15 = vector.load %arg1[%14, %c0_3] : memref<32x128xf32, #tpu.memory_space<vmem>>, vector<1x128xf32>
    %16 = arith.index_cast %c2_i32 : i32 to index
    %c0_4 = arith.constant 0 : index
    %17 = vector.load %arg10[%16, %c0_4] : memref<64x128xf32, #tpu.memory_space<vmem>>, vector<1x128xf32>
    tpu.vector_store %arg10[%16, %c0_4], %15 {strides = array<i32>} : memref<64x128xf32, #tpu.memory_space<vmem>>, vector<1x128xf32>,
    %c3_i32 = arith.constant 3 : i32
    %18 = arith.index_cast %c3_i32 : i32 to index
    %19 = memref.load %arg0[%18] : memref<64xi32, #tpu.memory_space<smem>>
    %20 = arith.index_cast %19 : i32 to index
    %c0_5 = arith.constant 0 : index
    %21 = vector.load %arg1[%20, %c0_5] : memref<32x128xf32, #tpu.memory_space<vmem>>, vector<1x128xf32>
    %22 = arith.index_cast %c3_i32 : i32 to index
    %c0_6 = arith.constant 0 : index
    %23 = vector.load %arg10[%22, %c0_6] : memref<64x128xf32, #tpu.memory_space<vmem>>, vector<1x128xf32>
    tpu.vector_store %arg10[%22, %c0_6], %21 {strides = array<i32>} : memref<64x128xf32, #tpu.memory_space<vmem>>, vector<1x128xf32>,
    %c4_i32 = arith.constant 4 : i32
    %24 = arith.index_cast %c4_i32 : i32 to index
    %25 = memref.load %arg0[%24] : memref<64xi32, #tpu.memory_space<smem>>
    %26 = arith.index_cast %25 : i32 to index
    %c0_7 = arith.constant 0 : index
    %27 = vector.load %arg1[%26, %c0_7] : memref<32x128xf32, #tpu.memory_space<vmem>>, vector<1x128xf32>
    %28 = arith.index_cast %c4_i32 : i32 to index
    %c0_8 = arith.constant 0 : index
    %29 = vector.load %arg10[%28, %c0_8] : memref<64x128xf32, #tpu.memory_space<vmem>>, vector<1x128xf32>
    tpu.vector_store %arg10[%28, %c0_8], %27 {strides = array<i32>} : memref<64x128xf32, #tpu.memory_space<vmem>>, vector<1x128xf32>,
    %c5_i32 = arith.constant 5 : i32
    %30 = arith.index_cast %c5_i32 : i32 to index
    %31 = memref.load %arg0[%30] : memref<64xi32, #tpu.memory_space<smem>>
    %32 = arith.index_cast %31 : i32 to index
    %c0_9 = arith.constant 0 : index
    %33 = vector.load %arg1[%32, %c0_9] : memref<32x128xf32, #tpu.memory_space<vmem>>, vector<1x128xf32>
    %34 = arith.index_cast %c5_i32 : i32 to index
    %c0_10 = arith.constant 0 : index
    %35 = vector.load %arg10[%34, %c0_10] : memref<64x128xf32, #tpu.memory_space<vmem>>, vector<1x128xf32>
    tpu.vector_store %arg10[%34, %c0_10], %33 {strides = array<i32>} : memref<64x128xf32, #tpu.memory_space<vmem>>, vector<1x128xf32>,
    %c6_i32 = arith.constant 6 : i32
    %36 = arith.index_cast %c6_i32 : i32 to index
    %37 = memref.load %arg0[%36] : memref<64xi32, #tpu.memory_space<smem>>
    %38 = arith.index_cast %37 : i32 to index
    %c0_11 = arith.constant 0 : index
    %39 = vector.load %arg1[%38, %c0_11] : memref<32x128xf32, #tpu.memory_space<vmem>>, vector<1x128xf32>
    %40 = arith.index_cast %c6_i32 : i32 to index
    %c0_12 = arith.constant 0 : index
    %41 = vector.load %arg10[%40, %c0_12] : memref<64x128xf32, #tpu.memory_space<vmem>>, vector<1x128xf32>
    tpu.vector_store %arg10[%40, %c0_12], %39 {strides = array<i32>} : memref<64x128xf32, #tpu.memory_space<vmem>>, vector<1x128xf32>,
    %c7_i32 = arith.constant 7 : i32
    %42 = arith.index_cast %c7_i32 : i32 to index
    %43 = memref.load %arg0[%42] : memref<64xi32, #tpu.memory_space<smem>>
    %44 = arith.index_cast %43 : i32 to index
    %c0_13 = arith.constant 0 : index
    %45 = vector.load %arg1[%44, %c0_13] : memref<32x128xf32, #tpu.memory_space<vmem>>, vector<1x128xf32>
    %46 = arith.index_cast %c7_i32 : i32 to index
    %c0_14 = arith.constant 0 : index
    %47 = vector.load %arg10[%46, %c0_14] : memref<64x128xf32, #tpu.memory_space<vmem>>, vector<1x128xf32>
    tpu.vector_store %arg10[%46, %c0_14], %45 {strides = array<i32>} : memref<64x128xf32, #tpu.memory_space<vmem>>, vector<1x128xf32>,
    %c8_i32 = arith.constant 8 : i32
    %48 = arith.index_cast %c8_i32 : i32 to index
    %49 = memref.load %arg0[%48] : memref<64xi32, #tpu.memory_space<smem>>
    %50 = arith.index_cast %49 : i32 to index
    %c0_15 = arith.constant 0 : index
    %51 = vector.load %arg1[%50, %c0_15] : memref<32x128xf32, #tpu.memory_space<vmem>>, vector<1x128xf32>
    %52 = arith.index_cast %c8_i32 : i32 to index
    %c0_16 = arith.constant 0 : index
    %53 = vector.load %arg10[%52, %c0_16] : memref<64x128xf32, #tpu.memory_space<vmem>>, vector<1x128xf32>
    tpu.vector_store %arg10[%52, %c0_16], %51 {strides = array<i32>} : memref<64x128xf32, #tpu.memory_space<vmem>>, vector<1x128xf32>,
    %c9_i32 = arith.constant 9 : i32
    %54 = arith.index_cast %c9_i32 : i32 to index
    %55 = memref.load %arg0[%54] : memref<64xi32, #tpu.memory_space<smem>>
    %56 = arith.index_cast %55 : i32 to index
    %c0_17 = arith.constant 0 : index
    %57 = vector.load %arg1[%56, %c0_17] : memref<32x128xf32, #tpu.memory_space<vmem>>, vector<1x128xf32>
    %58 = arith.index_cast %c9_i32 : i32 to index
    %c0_18 = arith.constant 0 : index
    %59 = vector.load %arg10[%58, %c0_18] : memref<64x128xf32, #tpu.memory_space<vmem>>, vector<1x128xf32>
    tpu.vector_store %arg10[%58, %c0_18], %57 {strides = array<i32>} : memref<64x128xf32, #tpu.memory_space<vmem>>, vector<1x128xf32>,
    %c10_i32 = arith.constant 10 : i32
    %60 = arith.index_cast %c10_i32 : i32 to index
    %61 = memref.load %arg0[%60] : memref<64xi32, #tpu.memory_space<smem>>
    %62 = arith.index_cast %61 : i32 to index
    %c0_19 = arith.constant 0 : index
    %63 = vector.load %arg1[%62, %c0_19] : memref<32x128xf32, #tpu.memory_space<vmem>>, vector<1x128xf32>
    %64 = arith.index_cast %c10_i32 : i32 to index
    %c0_20 = arith.constant 0 : index
    %65 = vector.load %arg10[%64, %c0_20] : memref<64x128xf32, #tpu.memory_space<vmem>>, vector<1x128xf32>
    tpu.vector_store %arg10[%64, %c0_20], %63 {strides = array<i32>} : memref<64x128xf32, #tpu.memory_space<vmem>>, vector<1x128xf32>,
    %c11_i32 = arith.constant 11 : i32
    %66 = arith.index_cast %c11_i32 : i32 to index
    %67 = memref.load %arg0[%66] : memref<64xi32, #tpu.memory_space<smem>>
    %68 = arith.index_cast %67 : i32 to index
    %c0_21 = arith.constant 0 : index
    %69 = vector.load %arg1[%68, %c0_21] : memref<32x128xf32, #tpu.memory_space<vmem>>, vector<1x128xf32>
    %70 = arith.index_cast %c11_i32 : i32 to index
    %c0_22 = arith.constant 0 : index
    %71 = vector.load %arg10[%70, %c0_22] : memref<64x128xf32, #tpu.memory_space<vmem>>, vector<1x128xf32>
    tpu.vector_store %arg10[%70, %c0_22], %69 {strides = array<i32>} : memref<64x128xf32, #tpu.memory_space<vmem>>, vector<1x128xf32>,
    %c12_i32 = arith.constant 12 : i32
    %72 = arith.index_cast %c12_i32 : i32 to index
    %73 = memref.load %arg0[%72] : memref<64xi32, #tpu.memory_space<smem>>
    %74 = arith.index_cast %73 : i32 to index
    %c0_23 = arith.constant 0 : index
    %75 = vector.load %arg1[%74, %c0_23] : memref<32x128xf32, #tpu.memory_space<vmem>>, vector<1x128xf32>
    %76 = arith.index_cast %c12_i32 : i32 to index
    %c0_24 = arith.constant 0 : index
    %77 = vector.load %arg10[%76, %c0_24] : memref<64x128xf32, #tpu.memory_space<vmem>>, vector<1x128xf32>
    tpu.vector_store %arg10[%76, %c0_24], %75 {strides = array<i32>} : memref<64x128xf32, #tpu.memory_space<vmem>>, vector<1x128xf32>,
    %c13_i32 = arith.constant 13 : i32
    %78 = arith.index_cast %c13_i32 : i32 to index
    %79 = memref.load %arg0[%78] : memref<64xi32, #tpu.memory_space<smem>>
    %80 = arith.index_cast %79 : i32 to index
    %c0_25 = arith.constant 0 : index
    %81 = vector.load %arg1[%80, %c0_25] : memref<32x128xf32, #tpu.memory_space<vmem>>, vector<1x128xf32>
    %82 = arith.index_cast %c13_i32 : i32 to index
    %c0_26 = arith.constant 0 : index
    %83 = vector.load %arg10[%82, %c0_26] : memref<64x128xf32, #tpu.memory_space<vmem>>, vector<1x128xf32>
    tpu.vector_store %arg10[%82, %c0_26], %81 {strides = array<i32>} : memref<64x128xf32, #tpu.memory_space<vmem>>, vector<1x128xf32>,
    %c14_i32 = arith.constant 14 : i32
    %84 = arith.index_cast %c14_i32 : i32 to index
    %85 = memref.load %arg0[%84] : memref<64xi32, #tpu.memory_space<smem>>
    %86 = arith.index_cast %85 : i32 to index
    %c0_27 = arith.constant 0 : index
    %87 = vector.load %arg1[%86, %c0_27] : memref<32x128xf32, #tpu.memory_space<vmem>>, vector<1x128xf32>
    %88 = arith.index_cast %c14_i32 : i32 to index
    %c0_28 = arith.constant 0 : index
    %89 = vector.load %arg10[%88, %c0_28] : memref<64x128xf32, #tpu.memory_space<vmem>>, vector<1x128xf32>
    tpu.vector_store %arg10[%88, %c0_28], %87 {strides = array<i32>} : memref<64x128xf32, #tpu.memory_space<vmem>>, vector<1x128xf32>,
    %c15_i32 = arith.constant 15 : i32
    %90 = arith.index_cast %c15_i32 : i32 to index
    %91 = memref.load %arg0[%90] : memref<64xi32, #tpu.memory_space<smem>>
    %92 = arith.index_cast %91 : i32 to index
    %c0_29 = arith.constant 0 : index
    %93 = vector.load %arg1[%92, %c0_29] : memref<32x128xf32, #tpu.memory_space<vmem>>, vector<1x128xf32>
    %94 = arith.index_cast %c15_i32 : i32 to index
    %c0_30 = arith.constant 0 : index
    %95 = vector.load %arg10[%94, %c0_30] : memref<64x128xf32, #tpu.memory_space<vmem>>, vector<1x128xf32>
    tpu.vector_store %arg10[%94, %c0_30], %93 {strides = array<i32>} : memref<64x128xf32, #tpu.memory_space<vmem>>, vector<1x128xf32>,
    %c16_i32 = arith.constant 16 : i32
    %96 = arith.index_cast %c16_i32 : i32 to index
    %97 = memref.load %arg0[%96] : memref<64xi32, #tpu.memory_space<smem>>
    %98 = arith.index_cast %97 : i32 to index
    %c0_31 = arith.constant 0 : index
    %99 = vector.load %arg1[%98, %c0_31] : memref<32x128xf32, #tpu.memory_space<vmem>>, vector<1x128xf32>
    %100 = arith.index_cast %c16_i32 : i32 to index
    %c0_32 = arith.constant 0 : index
    %101 = vector.load %arg10[%100, %c0_32] : memref<64x128xf32, #tpu.memory_space<vmem>>, vector<1x128xf32>
    tpu.vector_store %arg10[%100, %c0_32], %99 {strides = array<i32>} : memref<64x128xf32, #tpu.memory_space<vmem>>, vector<1x128xf32>,
    %c17_i32 = arith.constant 17 : i32
    %102 = arith.index_cast %c17_i32 : i32 to index
    %103 = memref.load %arg0[%102] : memref<64xi32, #tpu.memory_space<smem>>
    %104 = arith.index_cast %103 : i32 to index
    %c0_33 = arith.constant 0 : index
    %105 = vector.load %arg1[%104, %c0_33] : memref<32x128xf32, #tpu.memory_space<vmem>>, vector<1x128xf32>
    %106 = arith.index_cast %c17_i32 : i32 to index
    %c0_34 = arith.constant 0 : index
    %107 = vector.load %arg10[%106, %c0_34] : memref<64x128xf32, #tpu.memory_space<vmem>>, vector<1x128xf32>
    tpu.vector_store %arg10[%106, %c0_34], %105 {strides = array<i32>} : memref<64x128xf32, #tpu.memory_space<vmem>>, vector<1x128xf32>,
    %c18_i32 = arith.constant 18 : i32
    %108 = arith.index_cast %c18_i32 : i32 to index
    %109 = memref.load %arg0[%108] : memref<64xi32, #tpu.memory_space<smem>>
    %110 = arith.index_cast %109 : i32 to index
    %c0_35 = arith.constant 0 : index
    %111 = vector.load %arg1[%110, %c0_35] : memref<32x128xf32, #tpu.memory_space<vmem>>, vector<1x128xf32>
    %112 = arith.index_cast %c18_i32 : i32 to index
    %c0_36 = arith.constant 0 : index
    %113 = vector.load %arg10[%112, %c0_36] : memref<64x128xf32, #tpu.memory_space<vmem>>, vector<1x128xf32>
    tpu.vector_store %arg10[%112, %c0_36], %111 {strides = array<i32>} : memref<64x128xf32, #tpu.memory_space<vmem>>, vector<1x128xf32>,
    %c19_i32 = arith.constant 19 : i32
    %114 = arith.index_cast %c19_i32 : i32 to index
    %115 = memref.load %arg0[%114] : memref<64xi32, #tpu.memory_space<smem>>
    %116 = arith.index_cast %115 : i32 to index
    %c0_37 = arith.constant 0 : index
    %117 = vector.load %arg1[%116, %c0_37] : memref<32x128xf32, #tpu.memory_space<vmem>>, vector<1x128xf32>
    %118 = arith.index_cast %c19_i32 : i32 to index
    %c0_38 = arith.constant 0 : index
    %119 = vector.load %arg10[%118, %c0_38] : memref<64x128xf32, #tpu.memory_space<vmem>>, vector<1x128xf32>
    tpu.vector_store %arg10[%118, %c0_38], %117 {strides = array<i32>} : memref<64x128xf32, #tpu.memory_space<vmem>>, vector<1x128xf32>,
    %c20_i32 = arith.constant 20 : i32
    %120 = arith.index_cast %c20_i32 : i32 to index
    %121 = memref.load %arg0[%120] : memref<64xi32, #tpu.memory_space<smem>>
    %122 = arith.index_cast %121 : i32 to index
    %c0_39 = arith.constant 0 : index
    %123 = vector.load %arg1[%122, %c0_39] : memref<32x128xf32, #tpu.memory_space<vmem>>, vector<1x128xf32>
    %124 = arith.index_cast %c20_i32 : i32 to index
    %c0_40 = arith.constant 0 : index
    %125 = vector.load %arg10[%124, %c0_40] : memref<64x128xf32, #tpu.memory_space<vmem>>, vector<1x128xf32>
    tpu.vector_store %arg10[%124, %c0_40], %123 {strides = array<i32>} : memref<64x128xf32, #tpu.memory_space<vmem>>, vector<1x128xf32>,
    %c21_i32 = arith.constant 21 : i32
    %126 = arith.index_cast %c21_i32 : i32 to index
    %127 = memref.load %arg0[%126] : memref<64xi32, #tpu.memory_space<smem>>
    %128 = arith.index_cast %127 : i32 to index
    %c0_41 = arith.constant 0 : index
    %129 = vector.load %arg1[%128, %c0_41] : memref<32x128xf32, #tpu.memory_space<vmem>>, vector<1x128xf32>
    %130 = arith.index_cast %c21_i32 : i32 to index
    %c0_42 = arith.constant 0 : index
    %131 = vector.load %arg10[%130, %c0_42] : memref<64x128xf32, #tpu.memory_space<vmem>>, vector<1x128xf32>
    tpu.vector_store %arg10[%130, %c0_42], %129 {strides = array<i32>} : memref<64x128xf32, #tpu.memory_space<vmem>>, vector<1x128xf32>,
    %c22_i32 = arith.constant 22 : i32
    %132 = arith.index_cast %c22_i32 : i32 to index
    %133 = memref.load %arg0[%132] : memref<64xi32, #tpu.memory_space<smem>>
    %134 = arith.index_cast %133 : i32 to index
    %c0_43 = arith.constant 0 : index
    %135 = vector.load %arg1[%134, %c0_43] : memref<32x128xf32, #tpu.memory_space<vmem>>, vector<1x128xf32>
    %136 = arith.index_cast %c22_i32 : i32 to index
    %c0_44 = arith.constant 0 : index
    %137 = vector.load %arg10[%136, %c0_44] : memref<64x128xf32, #tpu.memory_space<vmem>>, vector<1x128xf32>
    tpu.vector_store %arg10[%136, %c0_44], %135 {strides = array<i32>} : memref<64x128xf32, #tpu.memory_space<vmem>>, vector<1x128xf32>,
    %c23_i32 = arith.constant 23 : i32
    %138 = arith.index_cast %c23_i32 : i32 to index
    %139 = memref.load %arg0[%138] : memref<64xi32, #tpu.memory_space<smem>>
    %140 = arith.index_cast %139 : i32 to index
    %c0_45 = arith.constant 0 : index
    %141 = vector.load %arg1[%140, %c0_45] : memref<32x128xf32, #tpu.memory_space<vmem>>, vector<1x128xf32>
    %142 = arith.index_cast %c23_i32 : i32 to index
    %c0_46 = arith.constant 0 : index
    %143 = vector.load %arg10[%142, %c0_46] : memref<64x128xf32, #tpu.memory_space<vmem>>, vector<1x128xf32>
    tpu.vector_store %arg10[%142, %c0_46], %141 {strides = array<i32>} : memref<64x128xf32, #tpu.memory_space<vmem>>, vector<1x128xf32>,
    %c24_i32 = arith.constant 24 : i32
    %144 = arith.index_cast %c24_i32 : i32 to index
    %145 = memref.load %arg0[%144] : memref<64xi32, #tpu.memory_space<smem>>
    %146 = arith.index_cast %145 : i32 to index
    %c0_47 = arith.constant 0 : index
    %147 = vector.load %arg1[%146, %c0_47] : memref<32x128xf32, #tpu.memory_space<vmem>>, vector<1x128xf32>
    %148 = arith.index_cast %c24_i32 : i32 to index
    %c0_48 = arith.constant 0 : index
    %149 = vector.load %arg10[%148, %c0_48] : memref<64x128xf32, #tpu.memory_space<vmem>>, vector<1x128xf32>
    tpu.vector_store %arg10[%148, %c0_48], %147 {strides = array<i32>} : memref<64x128xf32, #tpu.memory_space<vmem>>, vector<1x128xf32>,
    %c25_i32 = arith.constant 25 : i32
    %150 = arith.index_cast %c25_i32 : i32 to index
    %151 = memref.load %arg0[%150] : memref<64xi32, #tpu.memory_space<smem>>
    %152 = arith.index_cast %151 : i32 to index
    %c0_49 = arith.constant 0 : index
    %153 = vector.load %arg1[%152, %c0_49] : memref<32x128xf32, #tpu.memory_space<vmem>>, vector<1x128xf32>
    %154 = arith.index_cast %c25_i32 : i32 to index
    %c0_50 = arith.constant 0 : index
    %155 = vector.load %arg10[%154, %c0_50] : memref<64x128xf32, #tpu.memory_space<vmem>>, vector<1x128xf32>
    tpu.vector_store %arg10[%154, %c0_50], %153 {strides = array<i32>} : memref<64x128xf32, #tpu.memory_space<vmem>>, vector<1x128xf32>,
    %c26_i32 = arith.constant 26 : i32
    %156 = arith.index_cast %c26_i32 : i32 to index
    %157 = memref.load %arg0[%156] : memref<64xi32, #tpu.memory_space<smem>>
    %158 = arith.index_cast %157 : i32 to index
    %c0_51 = arith.constant 0 : index
    %159 = vector.load %arg1[%158, %c0_51] : memref<32x128xf32, #tpu.memory_space<vmem>>, vector<1x128xf32>
    %160 = arith.index_cast %c26_i32 : i32 to index
    %c0_52 = arith.constant 0 : index
    %161 = vector.load %arg10[%160, %c0_52] : memref<64x128xf32, #tpu.memory_space<vmem>>, vector<1x128xf32>
    tpu.vector_store %arg10[%160, %c0_52], %159 {strides = array<i32>} : memref<64x128xf32, #tpu.memory_space<vmem>>, vector<1x128xf32>,
    %c27_i32 = arith.constant 27 : i32
    %162 = arith.index_cast %c27_i32 : i32 to index
    %163 = memref.load %arg0[%162] : memref<64xi32, #tpu.memory_space<smem>>
    %164 = arith.index_cast %163 : i32 to index
    %c0_53 = arith.constant 0 : index
    %165 = vector.load %arg1[%164, %c0_53] : memref<32x128xf32, #tpu.memory_space<vmem>>, vector<1x128xf32>
    %166 = arith.index_cast %c27_i32 : i32 to index
    %c0_54 = arith.constant 0 : index
    %167 = vector.load %arg10[%166, %c0_54] : memref<64x128xf32, #tpu.memory_space<vmem>>, vector<1x128xf32>
    tpu.vector_store %arg10[%166, %c0_54], %165 {strides = array<i32>} : memref<64x128xf32, #tpu.memory_space<vmem>>, vector<1x128xf32>,
    %c28_i32 = arith.constant 28 : i32
    %168 = arith.index_cast %c28_i32 : i32 to index
    %169 = memref.load %arg0[%168] : memref<64xi32, #tpu.memory_space<smem>>
    %170 = arith.index_cast %169 : i32 to index
    %c0_55 = arith.constant 0 : index
    %171 = vector.load %arg1[%170, %c0_55] : memref<32x128xf32, #tpu.memory_space<vmem>>, vector<1x128xf32>
    %172 = arith.index_cast %c28_i32 : i32 to index
    %c0_56 = arith.constant 0 : index
    %173 = vector.load %arg10[%172, %c0_56] : memref<64x128xf32, #tpu.memory_space<vmem>>, vector<1x128xf32>
    tpu.vector_store %arg10[%172, %c0_56], %171 {strides = array<i32>} : memref<64x128xf32, #tpu.memory_space<vmem>>, vector<1x128xf32>,
    %c29_i32 = arith.constant 29 : i32
    %174 = arith.index_cast %c29_i32 : i32 to index
    %175 = memref.load %arg0[%174] : memref<64xi32, #tpu.memory_space<smem>>
    %176 = arith.index_cast %175 : i32 to index
    %c0_57 = arith.constant 0 : index
    %177 = vector.load %arg1[%176, %c0_57] : memref<32x128xf32, #tpu.memory_space<vmem>>, vector<1x128xf32>
    %178 = arith.index_cast %c29_i32 : i32 to index
    %c0_58 = arith.constant 0 : index
    %179 = vector.load %arg10[%178, %c0_58] : memref<64x128xf32, #tpu.memory_space<vmem>>, vector<1x128xf32>
    tpu.vector_store %arg10[%178, %c0_58], %177 {strides = array<i32>} : memref<64x128xf32, #tpu.memory_space<vmem>>, vector<1x128xf32>,
    %c30_i32 = arith.constant 30 : i32
    %180 = arith.index_cast %c30_i32 : i32 to index
    %181 = memref.load %arg0[%180] : memref<64xi32, #tpu.memory_space<smem>>
    %182 = arith.index_cast %181 : i32 to index
    %c0_59 = arith.constant 0 : index
    %183 = vector.load %arg1[%182, %c0_59] : memref<32x128xf32, #tpu.memory_space<vmem>>, vector<1x128xf32>
    %184 = arith.index_cast %c30_i32 : i32 to index
    %c0_60 = arith.constant 0 : index
    %185 = vector.load %arg10[%184, %c0_60] : memref<64x128xf32, #tpu.memory_space<vmem>>, vector<1x128xf32>
    tpu.vector_store %arg10[%184, %c0_60], %183 {strides = array<i32>} : memref<64x128xf32, #tpu.memory_space<vmem>>, vector<1x128xf32>,
    %c31_i32 = arith.constant 31 : i32
    %186 = arith.index_cast %c31_i32 : i32 to index
    %187 = memref.load %arg0[%186] : memref<64xi32, #tpu.memory_space<smem>>
    %188 = arith.index_cast %187 : i32 to index
    %c0_61 = arith.constant 0 : index
    %189 = vector.load %arg1[%188, %c0_61] : memref<32x128xf32, #tpu.memory_space<vmem>>, vector<1x128xf32>
    %190 = arith.index_cast %c31_i32 : i32 to index
    %c0_62 = arith.constant 0 : index
    %191 = vector.load %arg10[%190, %c0_62] : memref<64x128xf32, #tpu.memory_space<vmem>>, vector<1x128xf32>
    tpu.vector_store %arg10[%190, %c0_62], %189 {strides = array<i32>} : memref<64x128xf32, #tpu.memory_space<vmem>>, vector<1x128xf32>,
    %c32_i32 = arith.constant 32 : i32
    %192 = arith.index_cast %c32_i32 : i32 to index
    %193 = memref.load %arg0[%192] : memref<64xi32, #tpu.memory_space<smem>>
    %194 = arith.index_cast %193 : i32 to index
    %c0_63 = arith.constant 0 : index
    %195 = vector.load %arg1[%194, %c0_63] : memref<32x128xf32, #tpu.memory_space<vmem>>, vector<1x128xf32>
    %196 = arith.index_cast %c32_i32 : i32 to index
    %c0_64 = arith.constant 0 : index
    %197 = vector.load %arg10[%196, %c0_64] : memref<64x128xf32, #tpu.memory_space<vmem>>, vector<1x128xf32>
    tpu.vector_store %arg10[%196, %c0_64], %195 {strides = array<i32>} : memref<64x128xf32, #tpu.memory_space<vmem>>, vector<1x128xf32>,
    %c33_i32 = arith.constant 33 : i32
    %198 = arith.index_cast %c33_i32 : i32 to index
    %199 = memref.load %arg0[%198] : memref<64xi32, #tpu.memory_space<smem>>
    %200 = arith.index_cast %199 : i32 to index
    %c0_65 = arith.constant 0 : index
    %201 = vector.load %arg1[%200, %c0_65] : memref<32x128xf32, #tpu.memory_space<vmem>>, vector<1x128xf32>
    %202 = arith.index_cast %c33_i32 : i32 to index
    %c0_66 = arith.constant 0 : index
    %203 = vector.load %arg10[%202, %c0_66] : memref<64x128xf32, #tpu.memory_space<vmem>>, vector<1x128xf32>
    tpu.vector_store %arg10[%202, %c0_66], %201 {strides = array<i32>} : memref<64x128xf32, #tpu.memory_space<vmem>>, vector<1x128xf32>,
    %c34_i32 = arith.constant 34 : i32
    %204 = arith.index_cast %c34_i32 : i32 to index
    %205 = memref.load %arg0[%204] : memref<64xi32, #tpu.memory_space<smem>>
    %206 = arith.index_cast %205 : i32 to index
    %c0_67 = arith.constant 0 : index
    %207 = vector.load %arg1[%206, %c0_67] : memref<32x128xf32, #tpu.memory_space<vmem>>, vector<1x128xf32>
    %208 = arith.index_cast %c34_i32 : i32 to index
    %c0_68 = arith.constant 0 : index
    %209 = vector.load %arg10[%208, %c0_68] : memref<64x128xf32, #tpu.memory_space<vmem>>, vector<1x128xf32>
    tpu.vector_store %arg10[%208, %c0_68], %207 {strides = array<i32>} : memref<64x128xf32, #tpu.memory_space<vmem>>, vector<1x128xf32>,
    %c35_i32 = arith.constant 35 : i32
    %210 = arith.index_cast %c35_i32 : i32 to index
    %211 = memref.load %arg0[%210] : memref<64xi32, #tpu.memory_space<smem>>
    %212 = arith.index_cast %211 : i32 to index
    %c0_69 = arith.constant 0 : index
    %213 = vector.load %arg1[%212, %c0_69] : memref<32x128xf32, #tpu.memory_space<vmem>>, vector<1x128xf32>
    %214 = arith.index_cast %c35_i32 : i32 to index
    %c0_70 = arith.constant 0 : index
    %215 = vector.load %arg10[%214, %c0_70] : memref<64x128xf32, #tpu.memory_space<vmem>>, vector<1x128xf32>
    tpu.vector_store %arg10[%214, %c0_70], %213 {strides = array<i32>} : memref<64x128xf32, #tpu.memory_space<vmem>>, vector<1x128xf32>,
    %c36_i32 = arith.constant 36 : i32
    %216 = arith.index_cast %c36_i32 : i32 to index
    %217 = memref.load %arg0[%216] : memref<64xi32, #tpu.memory_space<smem>>
    %218 = arith.index_cast %217 : i32 to index
    %c0_71 = arith.constant 0 : index
    %219 = vector.load %arg1[%218, %c0_71] : memref<32x128xf32, #tpu.memory_space<vmem>>, vector<1x128xf32>
    %220 = arith.index_cast %c36_i32 : i32 to index
    %c0_72 = arith.constant 0 : index
    %221 = vector.load %arg10[%220, %c0_72] : memref<64x128xf32, #tpu.memory_space<vmem>>, vector<1x128xf32>
    tpu.vector_store %arg10[%220, %c0_72], %219 {strides = array<i32>} : memref<64x128xf32, #tpu.memory_space<vmem>>, vector<1x128xf32>,
    %c37_i32 = arith.constant 37 : i32
    %222 = arith.index_cast %c37_i32 : i32 to index
    %223 = memref.load %arg0[%222] : memref<64xi32, #tpu.memory_space<smem>>
    %224 = arith.index_cast %223 : i32 to index
    %c0_73 = arith.constant 0 : index
    %225 = vector.load %arg1[%224, %c0_73] : memref<32x128xf32, #tpu.memory_space<vmem>>, vector<1x128xf32>
    %226 = arith.index_cast %c37_i32 : i32 to index
    %c0_74 = arith.constant 0 : index
    %227 = vector.load %arg10[%226, %c0_74] : memref<64x128xf32, #tpu.memory_space<vmem>>, vector<1x128xf32>
    tpu.vector_store %arg10[%226, %c0_74], %225 {strides = array<i32>} : memref<64x128xf32, #tpu.memory_space<vmem>>, vector<1x128xf32>,
    %c38_i32 = arith.constant 38 : i32
    %228 = arith.index_cast %c38_i32 : i32 to index
    %229 = memref.load %arg0[%228] : memref<64xi32, #tpu.memory_space<smem>>
    %230 = arith.index_cast %229 : i32 to index
    %c0_75 = arith.constant 0 : index
    %231 = vector.load %arg1[%230, %c0_75] : memref<32x128xf32, #tpu.memory_space<vmem>>, vector<1x128xf32>
    %232 = arith.index_cast %c38_i32 : i32 to index
    %c0_76 = arith.constant 0 : index
    %233 = vector.load %arg10[%232, %c0_76] : memref<64x128xf32, #tpu.memory_space<vmem>>, vector<1x128xf32>
    tpu.vector_store %arg10[%232, %c0_76], %231 {strides = array<i32>} : memref<64x128xf32, #tpu.memory_space<vmem>>, vector<1x128xf32>,
    %c39_i32 = arith.constant 39 : i32
    %234 = arith.index_cast %c39_i32 : i32 to index
    %235 = memref.load %arg0[%234] : memref<64xi32, #tpu.memory_space<smem>>
    %236 = arith.index_cast %235 : i32 to index
    %c0_77 = arith.constant 0 : index
    %237 = vector.load %arg1[%236, %c0_77] : memref<32x128xf32, #tpu.memory_space<vmem>>, vector<1x128xf32>
    %238 = arith.index_cast %c39_i32 : i32 to index
    %c0_78 = arith.constant 0 : index
    %239 = vector.load %arg10[%238, %c0_78] : memref<64x128xf32, #tpu.memory_space<vmem>>, vector<1x128xf32>
    tpu.vector_store %arg10[%238, %c0_78], %237 {strides = array<i32>} : memref<64x128xf32, #tpu.memory_space<vmem>>, vector<1x128xf32>,
    %c40_i32 = arith.constant 40 : i32
    %240 = arith.index_cast %c40_i32 : i32 to index
    %241 = memref.load %arg0[%240] : memref<64xi32, #tpu.memory_space<smem>>
    %242 = arith.index_cast %241 : i32 to index
    %c0_79 = arith.constant 0 : index
    %243 = vector.load %arg1[%242, %c0_79] : memref<32x128xf32, #tpu.memory_space<vmem>>, vector<1x128xf32>
    %244 = arith.index_cast %c40_i32 : i32 to index
    %c0_80 = arith.constant 0 : index
    %245 = vector.load %arg10[%244, %c0_80] : memref<64x128xf32, #tpu.memory_space<vmem>>, vector<1x128xf32>
    tpu.vector_store %arg10[%244, %c0_80], %243 {strides = array<i32>} : memref<64x128xf32, #tpu.memory_space<vmem>>, vector<1x128xf32>,
    %c41_i32 = arith.constant 41 : i32
    %246 = arith.index_cast %c41_i32 : i32 to index
    %247 = memref.load %arg0[%246] : memref<64xi32, #tpu.memory_space<smem>>
    %248 = arith.index_cast %247 : i32 to index
    %c0_81 = arith.constant 0 : index
    %249 = vector.load %arg1[%248, %c0_81] : memref<32x128xf32, #tpu.memory_space<vmem>>, vector<1x128xf32>
    %250 = arith.index_cast %c41_i32 : i32 to index
    %c0_82 = arith.constant 0 : index
    %251 = vector.load %arg10[%250, %c0_82] : memref<64x128xf32, #tpu.memory_space<vmem>>, vector<1x128xf32>
    tpu.vector_store %arg10[%250, %c0_82], %249 {strides = array<i32>} : memref<64x128xf32, #tpu.memory_space<vmem>>, vector<1x128xf32>,
    %c42_i32 = arith.constant 42 : i32
    %252 = arith.index_cast %c42_i32 : i32 to index
    %253 = memref.load %arg0[%252] : memref<64xi32, #tpu.memory_space<smem>>
    %254 = arith.index_cast %253 : i32 to index
    %c0_83 = arith.constant 0 : index
    %255 = vector.load %arg1[%254, %c0_83] : memref<32x128xf32, #tpu.memory_space<vmem>>, vector<1x128xf32>
    %256 = arith.index_cast %c42_i32 : i32 to index
    %c0_84 = arith.constant 0 : index
    %257 = vector.load %arg10[%256, %c0_84] : memref<64x128xf32, #tpu.memory_space<vmem>>, vector<1x128xf32>
    tpu.vector_store %arg10[%256, %c0_84], %255 {strides = array<i32>} : memref<64x128xf32, #tpu.memory_space<vmem>>, vector<1x128xf32>,
    %c43_i32 = arith.constant 43 : i32
    %258 = arith.index_cast %c43_i32 : i32 to index
    %259 = memref.load %arg0[%258] : memref<64xi32, #tpu.memory_space<smem>>
    %260 = arith.index_cast %259 : i32 to index
    %c0_85 = arith.constant 0 : index
    %261 = vector.load %arg1[%260, %c0_85] : memref<32x128xf32, #tpu.memory_space<vmem>>, vector<1x128xf32>
    %262 = arith.index_cast %c43_i32 : i32 to index
    %c0_86 = arith.constant 0 : index
    %263 = vector.load %arg10[%262, %c0_86] : memref<64x128xf32, #tpu.memory_space<vmem>>, vector<1x128xf32>
    tpu.vector_store %arg10[%262, %c0_86], %261 {strides = array<i32>} : memref<64x128xf32, #tpu.memory_space<vmem>>, vector<1x128xf32>,
    %c44_i32 = arith.constant 44 : i32
    %264 = arith.index_cast %c44_i32 : i32 to index
    %265 = memref.load %arg0[%264] : memref<64xi32, #tpu.memory_space<smem>>
    %266 = arith.index_cast %265 : i32 to index
    %c0_87 = arith.constant 0 : index
    %267 = vector.load %arg1[%266, %c0_87] : memref<32x128xf32, #tpu.memory_space<vmem>>, vector<1x128xf32>
    %268 = arith.index_cast %c44_i32 : i32 to index
    %c0_88 = arith.constant 0 : index
    %269 = vector.load %arg10[%268, %c0_88] : memref<64x128xf32, #tpu.memory_space<vmem>>, vector<1x128xf32>
    tpu.vector_store %arg10[%268, %c0_88], %267 {strides = array<i32>} : memref<64x128xf32, #tpu.memory_space<vmem>>, vector<1x128xf32>,
    %c45_i32 = arith.constant 45 : i32
    %270 = arith.index_cast %c45_i32 : i32 to index
    %271 = memref.load %arg0[%270] : memref<64xi32, #tpu.memory_space<smem>>
    %272 = arith.index_cast %271 : i32 to index
    %c0_89 = arith.constant 0 : index
    %273 = vector.load %arg1[%272, %c0_89] : memref<32x128xf32, #tpu.memory_space<vmem>>, vector<1x128xf32>
    %274 = arith.index_cast %c45_i32 : i32 to index
    %c0_90 = arith.constant 0 : index
    %275 = vector.load %arg10[%274, %c0_90] : memref<64x128xf32, #tpu.memory_space<vmem>>, vector<1x128xf32>
    tpu.vector_store %arg10[%274, %c0_90], %273 {strides = array<i32>} : memref<64x128xf32, #tpu.memory_space<vmem>>, vector<1x128xf32>,
    %c46_i32 = arith.constant 46 : i32
    %276 = arith.index_cast %c46_i32 : i32 to index
    %277 = memref.load %arg0[%276] : memref<64xi32, #tpu.memory_space<smem>>
    %278 = arith.index_cast %277 : i32 to index
    %c0_91 = arith.constant 0 : index
    %279 = vector.load %arg1[%278, %c0_91] : memref<32x128xf32, #tpu.memory_space<vmem>>, vector<1x128xf32>
    %280 = arith.index_cast %c46_i32 : i32 to index
    %c0_92 = arith.constant 0 : index
    %281 = vector.load %arg10[%280, %c0_92] : memref<64x128xf32, #tpu.memory_space<vmem>>, vector<1x128xf32>
    tpu.vector_store %arg10[%280, %c0_92], %279 {strides = array<i32>} : memref<64x128xf32, #tpu.memory_space<vmem>>, vector<1x128xf32>,
    %c47_i32 = arith.constant 47 : i32
    %282 = arith.index_cast %c47_i32 : i32 to index
    %283 = memref.load %arg0[%282] : memref<64xi32, #tpu.memory_space<smem>>
    %284 = arith.index_cast %283 : i32 to index
    %c0_93 = arith.constant 0 : index
    %285 = vector.load %arg1[%284, %c0_93] : memref<32x128xf32, #tpu.memory_space<vmem>>, vector<1x128xf32>
    %286 = arith.index_cast %c47_i32 : i32 to index
    %c0_94 = arith.constant 0 : index
    %287 = vector.load %arg10[%286, %c0_94] : memref<64x128xf32, #tpu.memory_space<vmem>>, vector<1x128xf32>
    tpu.vector_store %arg10[%286, %c0_94], %285 {strides = array<i32>} : memref<64x128xf32, #tpu.memory_space<vmem>>, vector<1x128xf32>,
    %c48_i32 = arith.constant 48 : i32
    %288 = arith.index_cast %c48_i32 : i32 to index
    %289 = memref.load %arg0[%288] : memref<64xi32, #tpu.memory_space<smem>>
    %290 = arith.index_cast %289 : i32 to index
    %c0_95 = arith.constant 0 : index
    %291 = vector.load %arg1[%290, %c0_95] : memref<32x128xf32, #tpu.memory_space<vmem>>, vector<1x128xf32>
    %292 = arith.index_cast %c48_i32 : i32 to index
    %c0_96 = arith.constant 0 : index
    %293 = vector.load %arg10[%292, %c0_96] : memref<64x128xf32, #tpu.memory_space<vmem>>, vector<1x128xf32>
    tpu.vector_store %arg10[%292, %c0_96], %291 {strides = array<i32>} : memref<64x128xf32, #tpu.memory_space<vmem>>, vector<1x128xf32>,
    %c49_i32 = arith.constant 49 : i32
    %294 = arith.index_cast %c49_i32 : i32 to index
    %295 = memref.load %arg0[%294] : memref<64xi32, #tpu.memory_space<smem>>
    %296 = arith.index_cast %295 : i32 to index
    %c0_97 = arith.constant 0 : index
    %297 = vector.load %arg1[%296, %c0_97] : memref<32x128xf32, #tpu.memory_space<vmem>>, vector<1x128xf32>
    %298 = arith.index_cast %c49_i32 : i32 to index
    %c0_98 = arith.constant 0 : index
    %299 = vector.load %arg10[%298, %c0_98] : memref<64x128xf32, #tpu.memory_space<vmem>>, vector<1x128xf32>
    tpu.vector_store %arg10[%298, %c0_98], %297 {strides = array<i32>} : memref<64x128xf32, #tpu.memory_space<vmem>>, vector<1x128xf32>,
    %c50_i32 = arith.constant 50 : i32
    %300 = arith.index_cast %c50_i32 : i32 to index
    %301 = memref.load %arg0[%300] : memref<64xi32, #tpu.memory_space<smem>>
    %302 = arith.index_cast %301 : i32 to index
    %c0_99 = arith.constant 0 : index
    %303 = vector.load %arg1[%302, %c0_99] : memref<32x128xf32, #tpu.memory_space<vmem>>, vector<1x128xf32>
    %304 = arith.index_cast %c50_i32 : i32 to index
    %c0_100 = arith.constant 0 : index
    %305 = vector.load %arg10[%304, %c0_100] : memref<64x128xf32, #tpu.memory_space<vmem>>, vector<1x128xf32>
    tpu.vector_store %arg10[%304, %c0_100], %303 {strides = array<i32>} : memref<64x128xf32, #tpu.memory_space<vmem>>, vector<1x128xf32>,
    %c51_i32 = arith.constant 51 : i32
    %306 = arith.index_cast %c51_i32 : i32 to index
    %307 = memref.load %arg0[%306] : memref<64xi32, #tpu.memory_space<smem>>
    %308 = arith.index_cast %307 : i32 to index
    %c0_101 = arith.constant 0 : index
    %309 = vector.load %arg1[%308, %c0_101] : memref<32x128xf32, #tpu.memory_space<vmem>>, vector<1x128xf32>
    %310 = arith.index_cast %c51_i32 : i32 to index
    %c0_102 = arith.constant 0 : index
    %311 = vector.load %arg10[%310, %c0_102] : memref<64x128xf32, #tpu.memory_space<vmem>>, vector<1x128xf32>
    tpu.vector_store %arg10[%310, %c0_102], %309 {strides = array<i32>} : memref<64x128xf32, #tpu.memory_space<vmem>>, vector<1x128xf32>,
    %c52_i32 = arith.constant 52 : i32
    %312 = arith.index_cast %c52_i32 : i32 to index
    %313 = memref.load %arg0[%312] : memref<64xi32, #tpu.memory_space<smem>>
    %314 = arith.index_cast %313 : i32 to index
    %c0_103 = arith.constant 0 : index
    %315 = vector.load %arg1[%314, %c0_103] : memref<32x128xf32, #tpu.memory_space<vmem>>, vector<1x128xf32>
    %316 = arith.index_cast %c52_i32 : i32 to index
    %c0_104 = arith.constant 0 : index
    %317 = vector.load %arg10[%316, %c0_104] : memref<64x128xf32, #tpu.memory_space<vmem>>, vector<1x128xf32>
    tpu.vector_store %arg10[%316, %c0_104], %315 {strides = array<i32>} : memref<64x128xf32, #tpu.memory_space<vmem>>, vector<1x128xf32>,
    %c53_i32 = arith.constant 53 : i32
    %318 = arith.index_cast %c53_i32 : i32 to index
    %319 = memref.load %arg0[%318] : memref<64xi32, #tpu.memory_space<smem>>
    %320 = arith.index_cast %319 : i32 to index
    %c0_105 = arith.constant 0 : index
    %321 = vector.load %arg1[%320, %c0_105] : memref<32x128xf32, #tpu.memory_space<vmem>>, vector<1x128xf32>
    %322 = arith.index_cast %c53_i32 : i32 to index
    %c0_106 = arith.constant 0 : index
    %323 = vector.load %arg10[%322, %c0_106] : memref<64x128xf32, #tpu.memory_space<vmem>>, vector<1x128xf32>
    tpu.vector_store %arg10[%322, %c0_106], %321 {strides = array<i32>} : memref<64x128xf32, #tpu.memory_space<vmem>>, vector<1x128xf32>,
    %c54_i32 = arith.constant 54 : i32
    %324 = arith.index_cast %c54_i32 : i32 to index
    %325 = memref.load %arg0[%324] : memref<64xi32, #tpu.memory_space<smem>>
    %326 = arith.index_cast %325 : i32 to index
    %c0_107 = arith.constant 0 : index
    %327 = vector.load %arg1[%326, %c0_107] : memref<32x128xf32, #tpu.memory_space<vmem>>, vector<1x128xf32>
    %328 = arith.index_cast %c54_i32 : i32 to index
    %c0_108 = arith.constant 0 : index
    %329 = vector.load %arg10[%328, %c0_108] : memref<64x128xf32, #tpu.memory_space<vmem>>, vector<1x128xf32>
    tpu.vector_store %arg10[%328, %c0_108], %327 {strides = array<i32>} : memref<64x128xf32, #tpu.memory_space<vmem>>, vector<1x128xf32>,
    %c55_i32 = arith.constant 55 : i32
    %330 = arith.index_cast %c55_i32 : i32 to index
    %331 = memref.load %arg0[%330] : memref<64xi32, #tpu.memory_space<smem>>
    %332 = arith.index_cast %331 : i32 to index
    %c0_109 = arith.constant 0 : index
    %333 = vector.load %arg1[%332, %c0_109] : memref<32x128xf32, #tpu.memory_space<vmem>>, vector<1x128xf32>
    %334 = arith.index_cast %c55_i32 : i32 to index
    %c0_110 = arith.constant 0 : index
    %335 = vector.load %arg10[%334, %c0_110] : memref<64x128xf32, #tpu.memory_space<vmem>>, vector<1x128xf32>
    tpu.vector_store %arg10[%334, %c0_110], %333 {strides = array<i32>} : memref<64x128xf32, #tpu.memory_space<vmem>>, vector<1x128xf32>,
    %c56_i32 = arith.constant 56 : i32
    %336 = arith.index_cast %c56_i32 : i32 to index
    %337 = memref.load %arg0[%336] : memref<64xi32, #tpu.memory_space<smem>>
    %338 = arith.index_cast %337 : i32 to index
    %c0_111 = arith.constant 0 : index
    %339 = vector.load %arg1[%338, %c0_111] : memref<32x128xf32, #tpu.memory_space<vmem>>, vector<1x128xf32>
    %340 = arith.index_cast %c56_i32 : i32 to index
    %c0_112 = arith.constant 0 : index
    %341 = vector.load %arg10[%340, %c0_112] : memref<64x128xf32, #tpu.memory_space<vmem>>, vector<1x128xf32>
    tpu.vector_store %arg10[%340, %c0_112], %339 {strides = array<i32>} : memref<64x128xf32, #tpu.memory_space<vmem>>, vector<1x128xf32>,
    %c57_i32 = arith.constant 57 : i32
    %342 = arith.index_cast %c57_i32 : i32 to index
    %343 = memref.load %arg0[%342] : memref<64xi32, #tpu.memory_space<smem>>
    %344 = arith.index_cast %343 : i32 to index
    %c0_113 = arith.constant 0 : index
    %345 = vector.load %arg1[%344, %c0_113] : memref<32x128xf32, #tpu.memory_space<vmem>>, vector<1x128xf32>
    %346 = arith.index_cast %c57_i32 : i32 to index
    %c0_114 = arith.constant 0 : index
    %347 = vector.load %arg10[%346, %c0_114] : memref<64x128xf32, #tpu.memory_space<vmem>>, vector<1x128xf32>
    tpu.vector_store %arg10[%346, %c0_114], %345 {strides = array<i32>} : memref<64x128xf32, #tpu.memory_space<vmem>>, vector<1x128xf32>,
    %c58_i32 = arith.constant 58 : i32
    %348 = arith.index_cast %c58_i32 : i32 to index
    %349 = memref.load %arg0[%348] : memref<64xi32, #tpu.memory_space<smem>>
    %350 = arith.index_cast %349 : i32 to index
    %c0_115 = arith.constant 0 : index
    %351 = vector.load %arg1[%350, %c0_115] : memref<32x128xf32, #tpu.memory_space<vmem>>, vector<1x128xf32>
    %352 = arith.index_cast %c58_i32 : i32 to index
    %c0_116 = arith.constant 0 : index
    %353 = vector.load %arg10[%352, %c0_116] : memref<64x128xf32, #tpu.memory_space<vmem>>, vector<1x128xf32>
    tpu.vector_store %arg10[%352, %c0_116], %351 {strides = array<i32>} : memref<64x128xf32, #tpu.memory_space<vmem>>, vector<1x128xf32>,
    %c59_i32 = arith.constant 59 : i32
    %354 = arith.index_cast %c59_i32 : i32 to index
    %355 = memref.load %arg0[%354] : memref<64xi32, #tpu.memory_space<smem>>
    %356 = arith.index_cast %355 : i32 to index
    %c0_117 = arith.constant 0 : index
    %357 = vector.load %arg1[%356, %c0_117] : memref<32x128xf32, #tpu.memory_space<vmem>>, vector<1x128xf32>
    %358 = arith.index_cast %c59_i32 : i32 to index
    %c0_118 = arith.constant 0 : index
    %359 = vector.load %arg10[%358, %c0_118] : memref<64x128xf32, #tpu.memory_space<vmem>>, vector<1x128xf32>
    tpu.vector_store %arg10[%358, %c0_118], %357 {strides = array<i32>} : memref<64x128xf32, #tpu.memory_space<vmem>>, vector<1x128xf32>,
    %c60_i32 = arith.constant 60 : i32
    %360 = arith.index_cast %c60_i32 : i32 to index
    %361 = memref.load %arg0[%360] : memref<64xi32, #tpu.memory_space<smem>>
    %362 = arith.index_cast %361 : i32 to index
    %c0_119 = arith.constant 0 : index
    %363 = vector.load %arg1[%362, %c0_119] : memref<32x128xf32, #tpu.memory_space<vmem>>, vector<1x128xf32>
    %364 = arith.index_cast %c60_i32 : i32 to index
    %c0_120 = arith.constant 0 : index
    %365 = vector.load %arg10[%364, %c0_120] : memref<64x128xf32, #tpu.memory_space<vmem>>, vector<1x128xf32>
    tpu.vector_store %arg10[%364, %c0_120], %363 {strides = array<i32>} : memref<64x128xf32, #tpu.memory_space<vmem>>, vector<1x128xf32>,
    %c61_i32 = arith.constant 61 : i32
    %366 = arith.index_cast %c61_i32 : i32 to index
    %367 = memref.load %arg0[%366] : memref<64xi32, #tpu.memory_space<smem>>
    %368 = arith.index_cast %367 : i32 to index
    %c0_121 = arith.constant 0 : index
    %369 = vector.load %arg1[%368, %c0_121] : memref<32x128xf32, #tpu.memory_space<vmem>>, vector<1x128xf32>
    %370 = arith.index_cast %c61_i32 : i32 to index
    %c0_122 = arith.constant 0 : index
    %371 = vector.load %arg10[%370, %c0_122] : memref<64x128xf32, #tpu.memory_space<vmem>>, vector<1x128xf32>
    tpu.vector_store %arg10[%370, %c0_122], %369 {strides = array<i32>} : memref<64x128xf32, #tpu.memory_space<vmem>>, vector<1x128xf32>,
    %c62_i32 = arith.constant 62 : i32
    %372 = arith.index_cast %c62_i32 : i32 to index
    %373 = memref.load %arg0[%372] : memref<64xi32, #tpu.memory_space<smem>>
    %374 = arith.index_cast %373 : i32 to index
    %c0_123 = arith.constant 0 : index
    %375 = vector.load %arg1[%374, %c0_123] : memref<32x128xf32, #tpu.memory_space<vmem>>, vector<1x128xf32>
    %376 = arith.index_cast %c62_i32 : i32 to index
    %c0_124 = arith.constant 0 : index
    %377 = vector.load %arg10[%376, %c0_124] : memref<64x128xf32, #tpu.memory_space<vmem>>, vector<1x128xf32>
    tpu.vector_store %arg10[%376, %c0_124], %375 {strides = array<i32>} : memref<64x128xf32, #tpu.memory_space<vmem>>, vector<1x128xf32>,
    %c63_i32 = arith.constant 63 : i32
    %378 = arith.index_cast %c63_i32 : i32 to index
    %379 = memref.load %arg0[%378] : memref<64xi32, #tpu.memory_space<smem>>
    %380 = arith.index_cast %379 : i32 to index
    %c0_125 = arith.constant 0 : index
    %381 = vector.load %arg1[%380, %c0_125] : memref<32x128xf32, #tpu.memory_space<vmem>>, vector<1x128xf32>
    %382 = arith.index_cast %c63_i32 : i32 to index
    %c0_126 = arith.constant 0 : index
    %383 = vector.load %arg10[%382, %c0_126] : memref<64x128xf32, #tpu.memory_space<vmem>>, vector<1x128xf32>
    tpu.vector_store %arg10[%382, %c0_126], %381 {strides = array<i32>} : memref<64x128xf32, #tpu.memory_space<vmem>>, vector<1x128xf32>,
    %c64_i32 = arith.constant 64 : i32
    %c0_127 = arith.constant 0 : index
    %c0_128 = arith.constant 0 : index
    %384 = vector.load %arg10[%c0_127, %c0_128] : memref<64x128xf32, #tpu.memory_space<vmem>>, vector<64x128xf32>
    %c0_129 = arith.constant 0 : index
    %c0_130 = arith.constant 0 : index
    %385 = vector.load %arg2[%c0_129, %c0_130] : memref<128x512xf32, #tpu.memory_space<vmem>>, vector<128x512xf32>
    %cst = arith.constant dense<0.000000e+00> : vector<64x512xf32>
    %386 = tpu.matmul %384, %385, %cst {dimension_numbers = #tpu.dot_dimension_numbers<[1], [0], [0], [1], [0, 0, 1, 1], [], []>} : vector<64x128xf32>, vector<128x512xf32>, vector<64x512xf32> -> vector<64x512xf32>
    %c0_131 = arith.constant 0 : index
    %c0_132 = arith.constant 0 : index
    %387 = vector.load %arg4[%c0_131, %c0_132] : memref<1x512xf32, #tpu.memory_space<vmem>>, vector<1x512xf32>
    %388 = vector.broadcast %387 : vector<1x512xf32> to vector<64x512xf32>
    %389 = arith.addf %386, %388 : vector<64x512xf32>
    %c0_133 = arith.constant 0 : index
    %c0_134 = arith.constant 0 : index
    %390 = vector.load %arg11[%c0_133, %c0_134] : memref<64x512xf32, #tpu.memory_space<vmem>>, vector<64x512xf32>
    tpu.vector_store %arg11[%c0_133, %c0_134], %389 {strides = array<i32>} : memref<64x512xf32, #tpu.memory_space<vmem>>, vector<64x512xf32>,
    %c0_135 = arith.constant 0 : index
    %c0_136 = arith.constant 0 : index
    %391 = vector.load %arg5[%c0_135, %c0_136] : memref<8x128xf32, #tpu.memory_space<vmem>>, vector<8x128xf32>
    %c0_137 = arith.constant 0 : index
    %c0_138 = arith.constant 0 : index
    %392 = vector.load %arg6[%c0_137, %c0_138] : memref<8x128xf32, #tpu.memory_space<vmem>>, vector<8x128xf32>
    %c0_i32_139 = arith.constant 0 : i32
    %c8_i32_140 = arith.constant 8 : i32
    %393 = arith.muli %c0_i32_139, %c8_i32_140 : i32
    %394 = tpu.assume_multiple %393, 8 : i32
    %395 = arith.index_cast %394 : i32 to index
    %c0_141 = arith.constant 0 : index
    %396 = vector.load %arg11[%395, %c0_141] : memref<64x512xf32, #tpu.memory_space<vmem>>, vector<8x512xf32>
    %c0_142 = arith.constant 0 : index
    %c0_143 = arith.constant 0 : index
    %397 = vector.load %arg3[%c0_142, %c0_143] : memref<128x512xf32, #tpu.memory_space<vmem>>, vector<128x512xf32>
    %cst_144 = arith.constant dense<0.000000e+00> : vector<8x512xf32>
    %398 = tpu.matmul %391, %397, %cst_144 {dimension_numbers = #tpu.dot_dimension_numbers<[1], [0], [0], [1], [0, 0, 1, 1], [], []>} : vector<8x128xf32>, vector<128x512xf32>, vector<8x512xf32> -> vector<8x512xf32>
    %399 = arith.addf %396, %398 : vector<8x512xf32>
    %400 = vector.extract_strided_slice %399 {offsets = [0, 0], sizes = [8, 128], strides = [1, 1]} : vector<8x512xf32> to vector<8x128xf32>
    %401 = arith.negf %400 : vector<8x128xf32>
    %402 = math.exp %401 : vector<8x128xf32>
    %cst_145 = arith.constant 1.000000e+00 : f32
    %403 = vector.broadcast %cst_145 : f32 to vector<8x128xf32>
    %404 = arith.addf %403, %402 : vector<8x128xf32>
    %405 = arith.divf %403, %404 : vector<8x128xf32>
    %406 = vector.extract_strided_slice %399 {offsets = [0, 128], sizes = [8, 128], strides = [1, 1]} : vector<8x512xf32> to vector<8x128xf32>
    %407 = arith.negf %406 : vector<8x128xf32>
    %408 = math.exp %407 : vector<8x128xf32>
    %cst_146 = arith.constant 1.000000e+00 : f32
    %409 = vector.broadcast %cst_146 : f32 to vector<8x128xf32>
    %410 = arith.addf %409, %408 : vector<8x128xf32>
    %411 = arith.divf %409, %410 : vector<8x128xf32>
    %412 = vector.extract_strided_slice %399 {offsets = [0, 256], sizes = [8, 128], strides = [1, 1]} : vector<8x512xf32> to vector<8x128xf32>
    %413 = math.tanh %412 : vector<8x128xf32>
    %414 = vector.extract_strided_slice %399 {offsets = [0, 384], sizes = [8, 128], strides = [1, 1]} : vector<8x512xf32> to vector<8x128xf32>
    %415 = arith.negf %414 : vector<8x128xf32>
    %416 = math.exp %415 : vector<8x128xf32>
    %cst_147 = arith.constant 1.000000e+00 : f32
    %417 = vector.broadcast %cst_147 : f32 to vector<8x128xf32>
    %418 = arith.addf %417, %416 : vector<8x128xf32>
    %419 = arith.divf %417, %418 : vector<8x128xf32>
    %420 = arith.mulf %411, %392 : vector<8x128xf32>
    %421 = arith.mulf %405, %413 : vector<8x128xf32>
    %422 = arith.addf %420, %421 : vector<8x128xf32>
    %423 = math.tanh %422 : vector<8x128xf32>
    %424 = arith.mulf %419, %423 : vector<8x128xf32>
    %425 = arith.index_cast %c0_i32_139 : i32 to index
    %c0_148 = arith.constant 0 : index
    %c0_149 = arith.constant 0 : index
    %426 = vector.load %arg7[%425, %c0_148, %c0_149] : memref<8x8x128xf32, #tpu.memory_space<vmem>>, vector<1x8x128xf32>
    %427 = vector.shape_cast %426 : vector<1x8x128xf32> to vector<8x128xf32>
    %428 = vector.shape_cast %424 : vector<8x128xf32> to vector<1x8x128xf32>
    tpu.vector_store %arg7[%425, %c0_148, %c0_149], %428 {strides = array<i32>} : memref<8x8x128xf32, #tpu.memory_space<vmem>>, vector<1x8x128xf32>,
    %c1_i32_150 = arith.constant 1 : i32
    %c8_i32_151 = arith.constant 8 : i32
    %429 = arith.muli %c1_i32_150, %c8_i32_151 : i32
    %430 = tpu.assume_multiple %429, 8 : i32
    %431 = arith.index_cast %430 : i32 to index
    %c0_152 = arith.constant 0 : index
    %432 = vector.load %arg11[%431, %c0_152] : memref<64x512xf32, #tpu.memory_space<vmem>>, vector<8x512xf32>
    %c0_153 = arith.constant 0 : index
    %c0_154 = arith.constant 0 : index
    %433 = vector.load %arg3[%c0_153, %c0_154] : memref<128x512xf32, #tpu.memory_space<vmem>>, vector<128x512xf32>
    %cst_155 = arith.constant dense<0.000000e+00> : vector<8x512xf32>
    %434 = tpu.matmul %424, %433, %cst_155 {dimension_numbers = #tpu.dot_dimension_numbers<[1], [0], [0], [1], [0, 0, 1, 1], [], []>} : vector<8x128xf32>, vector<128x512xf32>, vector<8x512xf32> -> vector<8x512xf32>
    %435 = arith.addf %432, %434 : vector<8x512xf32>
    %436 = vector.extract_strided_slice %435 {offsets = [0, 0], sizes = [8, 128], strides = [1, 1]} : vector<8x512xf32> to vector<8x128xf32>
    %437 = arith.negf %436 : vector<8x128xf32>
    %438 = math.exp %437 : vector<8x128xf32>
    %cst_156 = arith.constant 1.000000e+00 : f32
    %439 = vector.broadcast %cst_156 : f32 to vector<8x128xf32>
    %440 = arith.addf %439, %438 : vector<8x128xf32>
    %441 = arith.divf %439, %440 : vector<8x128xf32>
    %442 = vector.extract_strided_slice %435 {offsets = [0, 128], sizes = [8, 128], strides = [1, 1]} : vector<8x512xf32> to vector<8x128xf32>
    %443 = arith.negf %442 : vector<8x128xf32>
    %444 = math.exp %443 : vector<8x128xf32>
    %cst_157 = arith.constant 1.000000e+00 : f32
    %445 = vector.broadcast %cst_157 : f32 to vector<8x128xf32>
    %446 = arith.addf %445, %444 : vector<8x128xf32>
    %447 = arith.divf %445, %446 : vector<8x128xf32>
    %448 = vector.extract_strided_slice %435 {offsets = [0, 256], sizes = [8, 128], strides = [1, 1]} : vector<8x512xf32> to vector<8x128xf32>
    %449 = math.tanh %448 : vector<8x128xf32>
    %450 = vector.extract_strided_slice %435 {offsets = [0, 384], sizes = [8, 128], strides = [1, 1]} : vector<8x512xf32> to vector<8x128xf32>
    %451 = arith.negf %450 : vector<8x128xf32>
    %452 = math.exp %451 : vector<8x128xf32>
    %cst_158 = arith.constant 1.000000e+00 : f32
    %453 = vector.broadcast %cst_158 : f32 to vector<8x128xf32>
    %454 = arith.addf %453, %452 : vector<8x128xf32>
    %455 = arith.divf %453, %454 : vector<8x128xf32>
    %456 = arith.mulf %447, %422 : vector<8x128xf32>
    %457 = arith.mulf %441, %449 : vector<8x128xf32>
    %458 = arith.addf %456, %457 : vector<8x128xf32>
    %459 = math.tanh %458 : vector<8x128xf32>
    %460 = arith.mulf %455, %459 : vector<8x128xf32>
    %461 = arith.index_cast %c1_i32_150 : i32 to index
    %c0_159 = arith.constant 0 : index
    %c0_160 = arith.constant 0 : index
    %462 = vector.load %arg7[%461, %c0_159, %c0_160] : memref<8x8x128xf32, #tpu.memory_space<vmem>>, vector<1x8x128xf32>
    %463 = vector.shape_cast %462 : vector<1x8x128xf32> to vector<8x128xf32>
    %464 = vector.shape_cast %460 : vector<8x128xf32> to vector<1x8x128xf32>
    tpu.vector_store %arg7[%461, %c0_159, %c0_160], %464 {strides = array<i32>} : memref<8x8x128xf32, #tpu.memory_space<vmem>>, vector<1x8x128xf32>,
    %c2_i32_161 = arith.constant 2 : i32
    %c8_i32_162 = arith.constant 8 : i32
    %465 = arith.muli %c2_i32_161, %c8_i32_162 : i32
    %466 = tpu.assume_multiple %465, 8 : i32
    %467 = arith.index_cast %466 : i32 to index
    %c0_163 = arith.constant 0 : index
    %468 = vector.load %arg11[%467, %c0_163] : memref<64x512xf32, #tpu.memory_space<vmem>>, vector<8x512xf32>
    %c0_164 = arith.constant 0 : index
    %c0_165 = arith.constant 0 : index
    %469 = vector.load %arg3[%c0_164, %c0_165] : memref<128x512xf32, #tpu.memory_space<vmem>>, vector<128x512xf32>
    %cst_166 = arith.constant dense<0.000000e+00> : vector<8x512xf32>
    %470 = tpu.matmul %460, %469, %cst_166 {dimension_numbers = #tpu.dot_dimension_numbers<[1], [0], [0], [1], [0, 0, 1, 1], [], []>} : vector<8x128xf32>, vector<128x512xf32>, vector<8x512xf32> -> vector<8x512xf32>
    %471 = arith.addf %468, %470 : vector<8x512xf32>
    %472 = vector.extract_strided_slice %471 {offsets = [0, 0], sizes = [8, 128], strides = [1, 1]} : vector<8x512xf32> to vector<8x128xf32>
    %473 = arith.negf %472 : vector<8x128xf32>
    %474 = math.exp %473 : vector<8x128xf32>
    %cst_167 = arith.constant 1.000000e+00 : f32
    %475 = vector.broadcast %cst_167 : f32 to vector<8x128xf32>
    %476 = arith.addf %475, %474 : vector<8x128xf32>
    %477 = arith.divf %475, %476 : vector<8x128xf32>
    %478 = vector.extract_strided_slice %471 {offsets = [0, 128], sizes = [8, 128], strides = [1, 1]} : vector<8x512xf32> to vector<8x128xf32>
    %479 = arith.negf %478 : vector<8x128xf32>
    %480 = math.exp %479 : vector<8x128xf32>
    %cst_168 = arith.constant 1.000000e+00 : f32
    %481 = vector.broadcast %cst_168 : f32 to vector<8x128xf32>
    %482 = arith.addf %481, %480 : vector<8x128xf32>
    %483 = arith.divf %481, %482 : vector<8x128xf32>
    %484 = vector.extract_strided_slice %471 {offsets = [0, 256], sizes = [8, 128], strides = [1, 1]} : vector<8x512xf32> to vector<8x128xf32>
    %485 = math.tanh %484 : vector<8x128xf32>
    %486 = vector.extract_strided_slice %471 {offsets = [0, 384], sizes = [8, 128], strides = [1, 1]} : vector<8x512xf32> to vector<8x128xf32>
    %487 = arith.negf %486 : vector<8x128xf32>
    %488 = math.exp %487 : vector<8x128xf32>
    %cst_169 = arith.constant 1.000000e+00 : f32
    %489 = vector.broadcast %cst_169 : f32 to vector<8x128xf32>
    %490 = arith.addf %489, %488 : vector<8x128xf32>
    %491 = arith.divf %489, %490 : vector<8x128xf32>
    %492 = arith.mulf %483, %458 : vector<8x128xf32>
    %493 = arith.mulf %477, %485 : vector<8x128xf32>
    %494 = arith.addf %492, %493 : vector<8x128xf32>
    %495 = math.tanh %494 : vector<8x128xf32>
    %496 = arith.mulf %491, %495 : vector<8x128xf32>
    %497 = arith.index_cast %c2_i32_161 : i32 to index
    %c0_170 = arith.constant 0 : index
    %c0_171 = arith.constant 0 : index
    %498 = vector.load %arg7[%497, %c0_170, %c0_171] : memref<8x8x128xf32, #tpu.memory_space<vmem>>, vector<1x8x128xf32>
    %499 = vector.shape_cast %498 : vector<1x8x128xf32> to vector<8x128xf32>
    %500 = vector.shape_cast %496 : vector<8x128xf32> to vector<1x8x128xf32>
    tpu.vector_store %arg7[%497, %c0_170, %c0_171], %500 {strides = array<i32>} : memref<8x8x128xf32, #tpu.memory_space<vmem>>, vector<1x8x128xf32>,
    %c3_i32_172 = arith.constant 3 : i32
    %c8_i32_173 = arith.constant 8 : i32
    %501 = arith.muli %c3_i32_172, %c8_i32_173 : i32
    %502 = tpu.assume_multiple %501, 8 : i32
    %503 = arith.index_cast %502 : i32 to index
    %c0_174 = arith.constant 0 : index
    %504 = vector.load %arg11[%503, %c0_174] : memref<64x512xf32, #tpu.memory_space<vmem>>, vector<8x512xf32>
    %c0_175 = arith.constant 0 : index
    %c0_176 = arith.constant 0 : index
    %505 = vector.load %arg3[%c0_175, %c0_176] : memref<128x512xf32, #tpu.memory_space<vmem>>, vector<128x512xf32>
    %cst_177 = arith.constant dense<0.000000e+00> : vector<8x512xf32>
    %506 = tpu.matmul %496, %505, %cst_177 {dimension_numbers = #tpu.dot_dimension_numbers<[1], [0], [0], [1], [0, 0, 1, 1], [], []>} : vector<8x128xf32>, vector<128x512xf32>, vector<8x512xf32> -> vector<8x512xf32>
    %507 = arith.addf %504, %506 : vector<8x512xf32>
    %508 = vector.extract_strided_slice %507 {offsets = [0, 0], sizes = [8, 128], strides = [1, 1]} : vector<8x512xf32> to vector<8x128xf32>
    %509 = arith.negf %508 : vector<8x128xf32>
    %510 = math.exp %509 : vector<8x128xf32>
    %cst_178 = arith.constant 1.000000e+00 : f32
    %511 = vector.broadcast %cst_178 : f32 to vector<8x128xf32>
    %512 = arith.addf %511, %510 : vector<8x128xf32>
    %513 = arith.divf %511, %512 : vector<8x128xf32>
    %514 = vector.extract_strided_slice %507 {offsets = [0, 128], sizes = [8, 128], strides = [1, 1]} : vector<8x512xf32> to vector<8x128xf32>
    %515 = arith.negf %514 : vector<8x128xf32>
    %516 = math.exp %515 : vector<8x128xf32>
    %cst_179 = arith.constant 1.000000e+00 : f32
    %517 = vector.broadcast %cst_179 : f32 to vector<8x128xf32>
    %518 = arith.addf %517, %516 : vector<8x128xf32>
    %519 = arith.divf %517, %518 : vector<8x128xf32>
    %520 = vector.extract_strided_slice %507 {offsets = [0, 256], sizes = [8, 128], strides = [1, 1]} : vector<8x512xf32> to vector<8x128xf32>
    %521 = math.tanh %520 : vector<8x128xf32>
    %522 = vector.extract_strided_slice %507 {offsets = [0, 384], sizes = [8, 128], strides = [1, 1]} : vector<8x512xf32> to vector<8x128xf32>
    %523 = arith.negf %522 : vector<8x128xf32>
    %524 = math.exp %523 : vector<8x128xf32>
    %cst_180 = arith.constant 1.000000e+00 : f32
    %525 = vector.broadcast %cst_180 : f32 to vector<8x128xf32>
    %526 = arith.addf %525, %524 : vector<8x128xf32>
    %527 = arith.divf %525, %526 : vector<8x128xf32>
    %528 = arith.mulf %519, %494 : vector<8x128xf32>
    %529 = arith.mulf %513, %521 : vector<8x128xf32>
    %530 = arith.addf %528, %529 : vector<8x128xf32>
    %531 = math.tanh %530 : vector<8x128xf32>
    %532 = arith.mulf %527, %531 : vector<8x128xf32>
    %533 = arith.index_cast %c3_i32_172 : i32 to index
    %c0_181 = arith.constant 0 : index
    %c0_182 = arith.constant 0 : index
    %534 = vector.load %arg7[%533, %c0_181, %c0_182] : memref<8x8x128xf32, #tpu.memory_space<vmem>>, vector<1x8x128xf32>
    %535 = vector.shape_cast %534 : vector<1x8x128xf32> to vector<8x128xf32>
    %536 = vector.shape_cast %532 : vector<8x128xf32> to vector<1x8x128xf32>
    tpu.vector_store %arg7[%533, %c0_181, %c0_182], %536 {strides = array<i32>} : memref<8x8x128xf32, #tpu.memory_space<vmem>>, vector<1x8x128xf32>,
    %c4_i32_183 = arith.constant 4 : i32
    %c8_i32_184 = arith.constant 8 : i32
    %537 = arith.muli %c4_i32_183, %c8_i32_184 : i32
    %538 = tpu.assume_multiple %537, 8 : i32
    %539 = arith.index_cast %538 : i32 to index
    %c0_185 = arith.constant 0 : index
    %540 = vector.load %arg11[%539, %c0_185] : memref<64x512xf32, #tpu.memory_space<vmem>>, vector<8x512xf32>
    %c0_186 = arith.constant 0 : index
    %c0_187 = arith.constant 0 : index
    %541 = vector.load %arg3[%c0_186, %c0_187] : memref<128x512xf32, #tpu.memory_space<vmem>>, vector<128x512xf32>
    %cst_188 = arith.constant dense<0.000000e+00> : vector<8x512xf32>
    %542 = tpu.matmul %532, %541, %cst_188 {dimension_numbers = #tpu.dot_dimension_numbers<[1], [0], [0], [1], [0, 0, 1, 1], [], []>} : vector<8x128xf32>, vector<128x512xf32>, vector<8x512xf32> -> vector<8x512xf32>
    %543 = arith.addf %540, %542 : vector<8x512xf32>
    %544 = vector.extract_strided_slice %543 {offsets = [0, 0], sizes = [8, 128], strides = [1, 1]} : vector<8x512xf32> to vector<8x128xf32>
    %545 = arith.negf %544 : vector<8x128xf32>
    %546 = math.exp %545 : vector<8x128xf32>
    %cst_189 = arith.constant 1.000000e+00 : f32
    %547 = vector.broadcast %cst_189 : f32 to vector<8x128xf32>
    %548 = arith.addf %547, %546 : vector<8x128xf32>
    %549 = arith.divf %547, %548 : vector<8x128xf32>
    %550 = vector.extract_strided_slice %543 {offsets = [0, 128], sizes = [8, 128], strides = [1, 1]} : vector<8x512xf32> to vector<8x128xf32>
    %551 = arith.negf %550 : vector<8x128xf32>
    %552 = math.exp %551 : vector<8x128xf32>
    %cst_190 = arith.constant 1.000000e+00 : f32
    %553 = vector.broadcast %cst_190 : f32 to vector<8x128xf32>
    %554 = arith.addf %553, %552 : vector<8x128xf32>
    %555 = arith.divf %553, %554 : vector<8x128xf32>
    %556 = vector.extract_strided_slice %543 {offsets = [0, 256], sizes = [8, 128], strides = [1, 1]} : vector<8x512xf32> to vector<8x128xf32>
    %557 = math.tanh %556 : vector<8x128xf32>
    %558 = vector.extract_strided_slice %543 {offsets = [0, 384], sizes = [8, 128], strides = [1, 1]} : vector<8x512xf32> to vector<8x128xf32>
    %559 = arith.negf %558 : vector<8x128xf32>
    %560 = math.exp %559 : vector<8x128xf32>
    %cst_191 = arith.constant 1.000000e+00 : f32
    %561 = vector.broadcast %cst_191 : f32 to vector<8x128xf32>
    %562 = arith.addf %561, %560 : vector<8x128xf32>
    %563 = arith.divf %561, %562 : vector<8x128xf32>
    %564 = arith.mulf %555, %530 : vector<8x128xf32>
    %565 = arith.mulf %549, %557 : vector<8x128xf32>
    %566 = arith.addf %564, %565 : vector<8x128xf32>
    %567 = math.tanh %566 : vector<8x128xf32>
    %568 = arith.mulf %563, %567 : vector<8x128xf32>
    %569 = arith.index_cast %c4_i32_183 : i32 to index
    %c0_192 = arith.constant 0 : index
    %c0_193 = arith.constant 0 : index
    %570 = vector.load %arg7[%569, %c0_192, %c0_193] : memref<8x8x128xf32, #tpu.memory_space<vmem>>, vector<1x8x128xf32>
    %571 = vector.shape_cast %570 : vector<1x8x128xf32> to vector<8x128xf32>
    %572 = vector.shape_cast %568 : vector<8x128xf32> to vector<1x8x128xf32>
    tpu.vector_store %arg7[%569, %c0_192, %c0_193], %572 {strides = array<i32>} : memref<8x8x128xf32, #tpu.memory_space<vmem>>, vector<1x8x128xf32>,
    %c5_i32_194 = arith.constant 5 : i32
    %c8_i32_195 = arith.constant 8 : i32
    %573 = arith.muli %c5_i32_194, %c8_i32_195 : i32
    %574 = tpu.assume_multiple %573, 8 : i32
    %575 = arith.index_cast %574 : i32 to index
    %c0_196 = arith.constant 0 : index
    %576 = vector.load %arg11[%575, %c0_196] : memref<64x512xf32, #tpu.memory_space<vmem>>, vector<8x512xf32>
    %c0_197 = arith.constant 0 : index
    %c0_198 = arith.constant 0 : index
    %577 = vector.load %arg3[%c0_197, %c0_198] : memref<128x512xf32, #tpu.memory_space<vmem>>, vector<128x512xf32>
    %cst_199 = arith.constant dense<0.000000e+00> : vector<8x512xf32>
    %578 = tpu.matmul %568, %577, %cst_199 {dimension_numbers = #tpu.dot_dimension_numbers<[1], [0], [0], [1], [0, 0, 1, 1], [], []>} : vector<8x128xf32>, vector<128x512xf32>, vector<8x512xf32> -> vector<8x512xf32>
    %579 = arith.addf %576, %578 : vector<8x512xf32>
    %580 = vector.extract_strided_slice %579 {offsets = [0, 0], sizes = [8, 128], strides = [1, 1]} : vector<8x512xf32> to vector<8x128xf32>
    %581 = arith.negf %580 : vector<8x128xf32>
    %582 = math.exp %581 : vector<8x128xf32>
    %cst_200 = arith.constant 1.000000e+00 : f32
    %583 = vector.broadcast %cst_200 : f32 to vector<8x128xf32>
    %584 = arith.addf %583, %582 : vector<8x128xf32>
    %585 = arith.divf %583, %584 : vector<8x128xf32>
    %586 = vector.extract_strided_slice %579 {offsets = [0, 128], sizes = [8, 128], strides = [1, 1]} : vector<8x512xf32> to vector<8x128xf32>
    %587 = arith.negf %586 : vector<8x128xf32>
    %588 = math.exp %587 : vector<8x128xf32>
    %cst_201 = arith.constant 1.000000e+00 : f32
    %589 = vector.broadcast %cst_201 : f32 to vector<8x128xf32>
    %590 = arith.addf %589, %588 : vector<8x128xf32>
    %591 = arith.divf %589, %590 : vector<8x128xf32>
    %592 = vector.extract_strided_slice %579 {offsets = [0, 256], sizes = [8, 128], strides = [1, 1]} : vector<8x512xf32> to vector<8x128xf32>
    %593 = math.tanh %592 : vector<8x128xf32>
    %594 = vector.extract_strided_slice %579 {offsets = [0, 384], sizes = [8, 128], strides = [1, 1]} : vector<8x512xf32> to vector<8x128xf32>
    %595 = arith.negf %594 : vector<8x128xf32>
    %596 = math.exp %595 : vector<8x128xf32>
    %cst_202 = arith.constant 1.000000e+00 : f32
    %597 = vector.broadcast %cst_202 : f32 to vector<8x128xf32>
    %598 = arith.addf %597, %596 : vector<8x128xf32>
    %599 = arith.divf %597, %598 : vector<8x128xf32>
    %600 = arith.mulf %591, %566 : vector<8x128xf32>
    %601 = arith.mulf %585, %593 : vector<8x128xf32>
    %602 = arith.addf %600, %601 : vector<8x128xf32>
    %603 = math.tanh %602 : vector<8x128xf32>
    %604 = arith.mulf %599, %603 : vector<8x128xf32>
    %605 = arith.index_cast %c5_i32_194 : i32 to index
    %c0_203 = arith.constant 0 : index
    %c0_204 = arith.constant 0 : index
    %606 = vector.load %arg7[%605, %c0_203, %c0_204] : memref<8x8x128xf32, #tpu.memory_space<vmem>>, vector<1x8x128xf32>
    %607 = vector.shape_cast %606 : vector<1x8x128xf32> to vector<8x128xf32>
    %608 = vector.shape_cast %604 : vector<8x128xf32> to vector<1x8x128xf32>
    tpu.vector_store %arg7[%605, %c0_203, %c0_204], %608 {strides = array<i32>} : memref<8x8x128xf32, #tpu.memory_space<vmem>>, vector<1x8x128xf32>,
    %c6_i32_205 = arith.constant 6 : i32
    %c8_i32_206 = arith.constant 8 : i32
    %609 = arith.muli %c6_i32_205, %c8_i32_206 : i32
    %610 = tpu.assume_multiple %609, 8 : i32
    %611 = arith.index_cast %610 : i32 to index
    %c0_207 = arith.constant 0 : index
    %612 = vector.load %arg11[%611, %c0_207] : memref<64x512xf32, #tpu.memory_space<vmem>>, vector<8x512xf32>
    %c0_208 = arith.constant 0 : index
    %c0_209 = arith.constant 0 : index
    %613 = vector.load %arg3[%c0_208, %c0_209] : memref<128x512xf32, #tpu.memory_space<vmem>>, vector<128x512xf32>
    %cst_210 = arith.constant dense<0.000000e+00> : vector<8x512xf32>
    %614 = tpu.matmul %604, %613, %cst_210 {dimension_numbers = #tpu.dot_dimension_numbers<[1], [0], [0], [1], [0, 0, 1, 1], [], []>} : vector<8x128xf32>, vector<128x512xf32>, vector<8x512xf32> -> vector<8x512xf32>
    %615 = arith.addf %612, %614 : vector<8x512xf32>
    %616 = vector.extract_strided_slice %615 {offsets = [0, 0], sizes = [8, 128], strides = [1, 1]} : vector<8x512xf32> to vector<8x128xf32>
    %617 = arith.negf %616 : vector<8x128xf32>
    %618 = math.exp %617 : vector<8x128xf32>
    %cst_211 = arith.constant 1.000000e+00 : f32
    %619 = vector.broadcast %cst_211 : f32 to vector<8x128xf32>
    %620 = arith.addf %619, %618 : vector<8x128xf32>
    %621 = arith.divf %619, %620 : vector<8x128xf32>
    %622 = vector.extract_strided_slice %615 {offsets = [0, 128], sizes = [8, 128], strides = [1, 1]} : vector<8x512xf32> to vector<8x128xf32>
    %623 = arith.negf %622 : vector<8x128xf32>
    %624 = math.exp %623 : vector<8x128xf32>
    %cst_212 = arith.constant 1.000000e+00 : f32
    %625 = vector.broadcast %cst_212 : f32 to vector<8x128xf32>
    %626 = arith.addf %625, %624 : vector<8x128xf32>
    %627 = arith.divf %625, %626 : vector<8x128xf32>
    %628 = vector.extract_strided_slice %615 {offsets = [0, 256], sizes = [8, 128], strides = [1, 1]} : vector<8x512xf32> to vector<8x128xf32>
    %629 = math.tanh %628 : vector<8x128xf32>
    %630 = vector.extract_strided_slice %615 {offsets = [0, 384], sizes = [8, 128], strides = [1, 1]} : vector<8x512xf32> to vector<8x128xf32>
    %631 = arith.negf %630 : vector<8x128xf32>
    %632 = math.exp %631 : vector<8x128xf32>
    %cst_213 = arith.constant 1.000000e+00 : f32
    %633 = vector.broadcast %cst_213 : f32 to vector<8x128xf32>
    %634 = arith.addf %633, %632 : vector<8x128xf32>
    %635 = arith.divf %633, %634 : vector<8x128xf32>
    %636 = arith.mulf %627, %602 : vector<8x128xf32>
    %637 = arith.mulf %621, %629 : vector<8x128xf32>
    %638 = arith.addf %636, %637 : vector<8x128xf32>
    %639 = math.tanh %638 : vector<8x128xf32>
    %640 = arith.mulf %635, %639 : vector<8x128xf32>
    %641 = arith.index_cast %c6_i32_205 : i32 to index
    %c0_214 = arith.constant 0 : index
    %c0_215 = arith.constant 0 : index
    %642 = vector.load %arg7[%641, %c0_214, %c0_215] : memref<8x8x128xf32, #tpu.memory_space<vmem>>, vector<1x8x128xf32>
    %643 = vector.shape_cast %642 : vector<1x8x128xf32> to vector<8x128xf32>
    %644 = vector.shape_cast %640 : vector<8x128xf32> to vector<1x8x128xf32>
    tpu.vector_store %arg7[%641, %c0_214, %c0_215], %644 {strides = array<i32>} : memref<8x8x128xf32, #tpu.memory_space<vmem>>, vector<1x8x128xf32>,
    %c7_i32_216 = arith.constant 7 : i32
    %c8_i32_217 = arith.constant 8 : i32
    %645 = arith.muli %c7_i32_216, %c8_i32_217 : i32
    %646 = tpu.assume_multiple %645, 8 : i32
    %647 = arith.index_cast %646 : i32 to index
    %c0_218 = arith.constant 0 : index
    %648 = vector.load %arg11[%647, %c0_218] : memref<64x512xf32, #tpu.memory_space<vmem>>, vector<8x512xf32>
    %c0_219 = arith.constant 0 : index
    %c0_220 = arith.constant 0 : index
    %649 = vector.load %arg3[%c0_219, %c0_220] : memref<128x512xf32, #tpu.memory_space<vmem>>, vector<128x512xf32>
    %cst_221 = arith.constant dense<0.000000e+00> : vector<8x512xf32>
    %650 = tpu.matmul %640, %649, %cst_221 {dimension_numbers = #tpu.dot_dimension_numbers<[1], [0], [0], [1], [0, 0, 1, 1], [], []>} : vector<8x128xf32>, vector<128x512xf32>, vector<8x512xf32> -> vector<8x512xf32>
    %651 = arith.addf %648, %650 : vector<8x512xf32>
    %652 = vector.extract_strided_slice %651 {offsets = [0, 0], sizes = [8, 128], strides = [1, 1]} : vector<8x512xf32> to vector<8x128xf32>
    %653 = arith.negf %652 : vector<8x128xf32>
    %654 = math.exp %653 : vector<8x128xf32>
    %cst_222 = arith.constant 1.000000e+00 : f32
    %655 = vector.broadcast %cst_222 : f32 to vector<8x128xf32>
    %656 = arith.addf %655, %654 : vector<8x128xf32>
    %657 = arith.divf %655, %656 : vector<8x128xf32>
    %658 = vector.extract_strided_slice %651 {offsets = [0, 128], sizes = [8, 128], strides = [1, 1]} : vector<8x512xf32> to vector<8x128xf32>
    %659 = arith.negf %658 : vector<8x128xf32>
    %660 = math.exp %659 : vector<8x128xf32>
    %cst_223 = arith.constant 1.000000e+00 : f32
    %661 = vector.broadcast %cst_223 : f32 to vector<8x128xf32>
    %662 = arith.addf %661, %660 : vector<8x128xf32>
    %663 = arith.divf %661, %662 : vector<8x128xf32>
    %664 = vector.extract_strided_slice %651 {offsets = [0, 256], sizes = [8, 128], strides = [1, 1]} : vector<8x512xf32> to vector<8x128xf32>
    %665 = math.tanh %664 : vector<8x128xf32>
    %666 = vector.extract_strided_slice %651 {offsets = [0, 384], sizes = [8, 128], strides = [1, 1]} : vector<8x512xf32> to vector<8x128xf32>
    %667 = arith.negf %666 : vector<8x128xf32>
    %668 = math.exp %667 : vector<8x128xf32>
    %cst_224 = arith.constant 1.000000e+00 : f32
    %669 = vector.broadcast %cst_224 : f32 to vector<8x128xf32>
    %670 = arith.addf %669, %668 : vector<8x128xf32>
    %671 = arith.divf %669, %670 : vector<8x128xf32>
    %672 = arith.mulf %663, %638 : vector<8x128xf32>
    %673 = arith.mulf %657, %665 : vector<8x128xf32>
    %674 = arith.addf %672, %673 : vector<8x128xf32>
    %675 = math.tanh %674 : vector<8x128xf32>
    %676 = arith.mulf %671, %675 : vector<8x128xf32>
    %677 = arith.index_cast %c7_i32_216 : i32 to index
    %c0_225 = arith.constant 0 : index
    %c0_226 = arith.constant 0 : index
    %678 = vector.load %arg7[%677, %c0_225, %c0_226] : memref<8x8x128xf32, #tpu.memory_space<vmem>>, vector<1x8x128xf32>
    %679 = vector.shape_cast %678 : vector<1x8x128xf32> to vector<8x128xf32>
    %680 = vector.shape_cast %676 : vector<8x128xf32> to vector<1x8x128xf32>
    tpu.vector_store %arg7[%677, %c0_225, %c0_226], %680 {strides = array<i32>} : memref<8x8x128xf32, #tpu.memory_space<vmem>>, vector<1x8x128xf32>,
    %c8_i32_227 = arith.constant 8 : i32
    %c0_228 = arith.constant 0 : index
    %c0_229 = arith.constant 0 : index
    %681 = vector.load %arg8[%c0_228, %c0_229] : memref<8x128xf32, #tpu.memory_space<vmem>>, vector<8x128xf32>
    tpu.vector_store %arg8[%c0_228, %c0_229], %676 {strides = array<i32>} : memref<8x128xf32, #tpu.memory_space<vmem>>, vector<8x128xf32>,
    %c0_230 = arith.constant 0 : index
    %c0_231 = arith.constant 0 : index
    %682 = vector.load %arg9[%c0_230, %c0_231] : memref<8x128xf32, #tpu.memory_space<vmem>>, vector<8x128xf32>
    tpu.vector_store %arg9[%c0_230, %c0_231], %674 {strides = array<i32>} : memref<8x128xf32, #tpu.memory_space<vmem>>, vector<8x128xf32>,
    return
  }
}

</mosaic_0001>

<bundles_post_ra>
// kernel: tpu_custom_call.1
= control target key start
LH: loop header
LB: loop body
LE: loop exit
PB: predicated region body
PF: predicated region fallthrough
CT: control target
= control target key end

     0   :  { %15 = vsyncpa [#allocation7], 0  ;;  %s4343_s0 = inlined_call_operand.hbm [shape: s32[64], index: 0, kind: input, shape index: {}]   ;;  %s4344_s1 = inlined_call_operand.hbm [shape: f32[32,128], index: 1, kind: input, shape index: {}]   ;;  %s4345_s2 = inlined_call_operand.hbm [shape: f32[128,512], index: 2, kind: input, shape index: {}]   ;;  %s4346_s3 = inlined_call_operand.hbm [shape: f32[128,512], index: 3, kind: input, shape index: {}]   ;;  %s4347_s4 = inlined_call_operand.hbm [shape: f32[1,512], index: 4, kind: input, shape index: {}]   ;;  %s4348_s5 = inlined_call_operand.hbm [shape: f32[8,128], index: 5, kind: input, shape index: {}]   ;;  %s4349_s6 = inlined_call_operand.hbm [shape: f32[8,128], index: 6, kind: input, shape index: {}]   ;;  %s4350_s7 = inlined_call_operand.hbm [shape: f32[8,8,128], index: 7, kind: output, shape index: {0}]   ;;  %s4351_s8 = inlined_call_operand.hbm [shape: f32[8,128], index: 8, kind: output, shape index: {1}]   ;;  %s4352_s9 = inlined_call_operand.hbm [shape: f32[8,128], index: 9, kind: output, shape index: {2}]  }
   0x1   :  { %16 = vsyncpa [#allocation5], 0 }
   0x2   :  { %17 = vsyncpa [#allocation10], 0 }
   0x3   :  { %18 = vsyncpa [#allocation13], 0 }
   0x4   :  { %19 = vsyncpa [#allocation16], 0 }
   0x5   :  { %20 = vsyncpa [#allocation6], 0  ;;  %s48_s11 = sshll.u32 %s4345_s2, 4  ;;  %s49_s11 = int_to_ptr.hbm [resolvable:$true] %s48_s11 }
   0x6   :  { %21 = vsyncpa [#allocation19], 0  ;;  %s3025_s12 = smov [#allocation9]   ;;  %s75_s16 = sshll.u32 %s4347_s4, 4  ;;  %s76_s16 = int_to_ptr.hbm [resolvable:$true] %s75_s16 }
   0x7   :  { %s50_s13 = sshll.u32 %s3025_s12, 4  ;;  %s3026_s17 = smov 512   ;;  %s51_s13 = int_to_ptr.vmem [resolvable:$true] %s50_s13 }
   0x8   :  { %s3027_s18 = smov 32   ;;  %s3028_s19 = smov [#allocation12]  }
   0x9   :  { %56 = dma.hbm_to_vmem [thread:$0]  %s49_s11, 8192, %s51_s13, [#allocation10], %s3026_s17, %s3026_s17, %s3027_s18  }
   0xa   :  { %s77_s20 = sshll.u32 %s3028_s19, 4  ;;  %s27_s23 = sshll.u32 %s4343_s0, 4  ;;  %s78_s20 = int_to_ptr.vmem [resolvable:$true] %s77_s20  ;;  %s28_s23 = int_to_ptr.hbm [resolvable:$true] %s27_s23 }
   0xb   :  { %80 = dma.hbm_to_vmem [thread:$0]  %s76_s16, 64, %s78_s20, [#allocation13]  }
   0xc   :  { %s35_s25 = sshll.u32 %s4344_s1, 4  ;;  %s3029_s26 = smov [#allocation4]   ;;  %s36_s25 = int_to_ptr.hbm [resolvable:$true] %s35_s25 }
   0xd   :  { %30 = dma.hbm_to_smem %s28_s23, 16, %s3029_s26, [#allocation7]  }
   0xe   :  { %s3030_s4 = smov [#allocation8]   ;;  %s3031_s28 = smov 128  }
   0xf   :  { %s37_s27 = sshll.u32 %s3030_s4, 4  ;;  %s3032_s29 = smov 8   ;;  %s38_s27 = int_to_ptr.vmem [resolvable:$true] %s37_s27 }
  0x10   :  { %43 = dma.hbm_to_vmem [thread:$0]  %s36_s25, 512, %s38_s27, [#allocation5], %s3031_s28, %s3031_s28, %s3032_s29  }
  0x11   :  { %s61_s10 = sshll.u32 %s4346_s3, 4  ;;  %s3033_s11 = smov [#allocation11]   ;;  %s62_s10 = int_to_ptr.hbm [resolvable:$true] %s61_s10 }
  0x12   :  { %s63_s12 = sshll.u32 %s3033_s11, 4  ;;  %s86_s14 = sshll.u32 %s4348_s5, 4  ;;  %s64_s12 = int_to_ptr.vmem [resolvable:$true] %s63_s12  ;;  %s87_s14 = int_to_ptr.hbm [resolvable:$true] %s86_s14 }
  0x13   :  { %69 = dma.hbm_to_vmem [thread:$0]  %s62_s10, 8192, %s64_s12, [#allocation10], %s3026_s17, %s3026_s17, %s3027_s18  }
  0x14   :  { %s3034_s15 = smov [#allocation14]   ;;  %s97_s21 = sshll.u32 %s4349_s6, 4  ;;  %s98_s21 = int_to_ptr.hbm [resolvable:$true] %s97_s21 }
  0x15   :  { %s88_s16 = sshll.u32 %s3034_s15, 4  ;;  %s3035_s3 = smov [#allocation15]   ;;  %s89_s16 = int_to_ptr.vmem [resolvable:$true] %s88_s16 }
  0x16   :  { %91 = dma.hbm_to_vmem [thread:$0]  %s87_s14, 128, %s89_s16, [#allocation13]  }
  0x17   :  { %s99_s22 = sshll.u32 %s3035_s3, 4  ;;  %s100_s22 = int_to_ptr.vmem [resolvable:$true] %s99_s22 }
  0x18   :  { %102 = dma.hbm_to_vmem [thread:$0]  %s98_s21, 128, %s100_s22, [#allocation16]  }
  0x19   :  { %3011 = dma.done.wait [#allocation7], 16  }
  0x1a   :  { %3012 = vsyncadd [#allocation7], 4294967280 }
  0x1b   :  { %3013 = dma.done.wait [#allocation5], 512  }
  0x1c   :  { %3014 = vsyncadd [#allocation5], 4294966784 }
  0x1d   :  { %3015 = dma.done.wait [#allocation10], 16384  }
  0x1e   :  { %3016 = vsyncadd [#allocation10], 4294950912 }
  0x1f   :  { %3017 = dma.done.wait [#allocation13], 192  }
  0x20   :  { %3018 = vsyncadd [#allocation13], 4294967104 }
  0x21   :  { %3019 = dma.done.wait [#allocation16], 128  }
  0x22   :  { %3020 = vsyncadd [#allocation16], 4294967168 }
  0x23   :  { %131 = sfence }
  0x24   :  { %v456_v0 = vld [vmem:[#allocation9 + $0x1e0] sm:$0xff]  ;;  %v457_v1 = vld [vmem:[#allocation9 + $0x1e8] sm:$0xff]  ;;  %v458_v2 = vld [vmem:[#allocation9 + $0x1f0] sm:$0xff]  ;;  %s3113_s5 = sld [smem:[#allocation4]] }
  0x25   :  { %470 = vmatpush.msra.mxu0 %v456_v0  ;;  %511 = vmatpush.msra.mxu1 %v457_v1  ;;  %v459_v3 = vld [vmem:[#allocation9 + $0x1f8] sm:$0xff]  ;;  %v452_v4 = vld [vmem:[#allocation9 + $0x1c0] sm:$0xff]  ;;  %v453_v5 = vld [vmem:[#allocation9 + $0x1c8] sm:$0xff]  ;;  %s3115_s6 = sld [smem:[#allocation4 + $0x1]] }
  0x26   :  { %552 = vmatpush.msra.mxu2 %v458_v2  ;;  %593 = vmatpush.msra.mxu3 %v459_v3  ;;  %v454_v6 = vld [vmem:[#allocation9 + $0x1d0] sm:$0xff]  ;;  %v455_v7 = vld [vmem:[#allocation9 + $0x1d8] sm:$0xff]  ;;  %v448_v8 = vld [vmem:[#allocation9 + $0x1a0] sm:$0xff]  ;;  %s3117_s17 = sld [smem:[#allocation4 + $0x2]] }
  0x27   :  { %471 = vmatpush.msra.mxu0 %v452_v4  ;;  %512 = vmatpush.msra.mxu1 %v453_v5  ;;  %v449_v9 = vld [vmem:[#allocation9 + $0x1a8] sm:$0xff]  ;;  %v450_v10 = vld [vmem:[#allocation9 + $0x1b0] sm:$0xff]  ;;  %v451_v11 = vld [vmem:[#allocation9 + $0x1b8] sm:$0xff]  ;;  %s3119_s18 = sld [smem:[#allocation4 + $0x3]] }
  0x28   :  { %553 = vmatpush.msra.mxu2 %v454_v6  ;;  %594 = vmatpush.msra.mxu3 %v455_v7  ;;  %v444_v12 = vld [vmem:[#allocation9 + $0x180] sm:$0xff]  ;;  %v445_v13 = vld [vmem:[#allocation9 + $0x188] sm:$0xff]  ;;  %v446_v14 = vld [vmem:[#allocation9 + $0x190] sm:$0xff]  ;;  %s3121_s23 = sld [smem:[#allocation4 + $0x4]] }
  0x29   :  { %472 = vmatpush.msra.mxu0 %v448_v8  ;;  %513 = vmatpush.msra.mxu1 %v449_v9  ;;  %v447_v15 = vld [vmem:[#allocation9 + $0x198] sm:$0xff]  ;;  %v440_v16 = vld [vmem:[#allocation9 + $0x160] sm:$0xff]  ;;  %v441_v17 = vld [vmem:[#allocation9 + $0x168] sm:$0xff]  ;;  %s3123_s2 = sld [smem:[#allocation4 + $0x5]] }
  0x2a   :  { %554 = vmatpush.msra.mxu2 %v450_v10  ;;  %595 = vmatpush.msra.mxu3 %v451_v11  ;;  %v442_v18 = vld [vmem:[#allocation9 + $0x170] sm:$0xff]  ;;  %v443_v19 = vld [vmem:[#allocation9 + $0x178] sm:$0xff]  ;;  %s3125_s24 = sld [smem:[#allocation4 + $0x6]]  ;;  %v436_v20 = vld [vmem:[#allocation9 + $0x140] sm:$0xff]  ;;  %s133_s14 = scalar_lea.vmem [#allocation8], %s3113_s5 }
  0x2b   :  { %473 = vmatpush.msra.mxu0 %v444_v12  ;;  %514 = vmatpush.msra.mxu1 %v445_v13  ;;  %v437_v21 = vld [vmem:[#allocation9 + $0x148] sm:$0xff]  ;;  %s3127_s25 = sld [smem:[#allocation4 + $0x7]]  ;;  %v438_v22 = vld [vmem:[#allocation9 + $0x150] sm:$0xff]  ;;  %v439_v23 = vld [vmem:[#allocation9 + $0x158] sm:$0xff]  ;;  %s137_s15 = scalar_lea.vmem [#allocation8], %s3115_s6 }
  0x2c   :  { %555 = vmatpush.msra.mxu2 %v446_v14  ;;  %596 = vmatpush.msra.mxu3 %v447_v15  ;;  %s3129_s26 = sld [smem:[#allocation4 + $0x8]]  ;;  %v432_v24 = vld [vmem:[#allocation9 + $0x120] sm:$0xff]  ;;  %v433_v25 = vld [vmem:[#allocation9 + $0x128] sm:$0xff]  ;;  %v434_v26 = vld [vmem:[#allocation9 + $0x130] sm:$0xff]  ;;  %s141_s16 = scalar_lea.vmem [#allocation8], %s3117_s17 }
  0x2d   :  { %474 = vmatpush.msra.mxu0 %v440_v16  ;;  %515 = vmatpush.msra.mxu1 %v441_v17  ;;  %s3131_s4 = sld [smem:[#allocation4 + $0x9]]  ;;  %v435_v27 = vld [vmem:[#allocation9 + $0x138] sm:$0xff]  ;;  %v428_v28 = vld [vmem:[#allocation9 + $0x100] sm:$0xff]  ;;  %v429_v29 = vld [vmem:[#allocation9 + $0x108] sm:$0xff]  ;;  %s145_s19 = scalar_lea.vmem [#allocation8], %s3119_s18 }
  0x2e   :  { %556 = vmatpush.msra.mxu2 %v442_v18  ;;  %597 = vmatpush.msra.mxu3 %v443_v19  ;;  %s3133_s27 = sld [smem:[#allocation4 + $0xa]]  ;;  %v430_v30 = vld [vmem:[#allocation9 + $0x110] sm:$0xff]  ;;  %v431_v31 = vld [vmem:[#allocation9 + $0x118] sm:$0xff]  ;;  %v424_v32 = vld [vmem:[#allocation9 + $0xe0] sm:$0xff]  ;;  %s149_s20 = scalar_lea.vmem [#allocation8], %s3121_s23 }
  0x2f   :  { %475 = vmatpush.msra.mxu0 %v436_v20  ;;  %516 = vmatpush.msra.mxu1 %v437_v21  ;;  %s3135_s0 = sld [smem:[#allocation4 + $0xb]]  ;;  %v425_v33 = vld [vmem:[#allocation9 + $0xe8] sm:$0xff]  ;;  %v426_v34 = vld [vmem:[#allocation9 + $0xf0] sm:$0xff]  ;;  %v427_v35 = vld [vmem:[#allocation9 + $0xf8] sm:$0xff]  ;;  %s153_s3 = scalar_lea.vmem [#allocation8], %s3123_s2 }
  0x30   :  { %557 = vmatpush.msra.mxu2 %v438_v22  ;;  %598 = vmatpush.msra.mxu3 %v439_v23  ;;  %s3137_s30 = sld [smem:[#allocation4 + $0xc]]  ;;  %v420_v36 = vld [vmem:[#allocation9 + $0xc0] sm:$0xff]  ;;  %v421_v37 = vld [vmem:[#allocation9 + $0xc8] sm:$0xff]  ;;  %v422_v38 = vld [vmem:[#allocation9 + $0xd0] sm:$0xff]  ;;  %s157_s5 = scalar_lea.vmem [#allocation8], %s3125_s24 }
  0x31   :  { %476 = vmatpush.msra.mxu0 %v432_v24  ;;  %517 = vmatpush.msra.mxu1 %v433_v25  ;;  %s3139_s10 = sld [smem:[#allocation4 + $0xd]]  ;;  %v423_v39 = vld [vmem:[#allocation9 + $0xd8] sm:$0xff]  ;;  %v416_v40 = vld [vmem:[#allocation9 + $0xa0] sm:$0xff]  ;;  %v417_v41 = vld [vmem:[#allocation9 + $0xa8] sm:$0xff]  ;;  %s161_s6 = scalar_lea.vmem [#allocation8], %s3127_s25 }
  0x32   :  { %558 = vmatpush.msra.mxu2 %v434_v26  ;;  %599 = vmatpush.msra.mxu3 %v435_v27  ;;  %s3141_s11 = sld [smem:[#allocation4 + $0xe]]  ;;  %v418_v42 = vld [vmem:[#allocation9 + $0xb0] sm:$0xff]  ;;  %v419_v43 = vld [vmem:[#allocation9 + $0xb8] sm:$0xff]  ;;  %v412_v44 = vld [vmem:[#allocation9 + $0x80] sm:$0xff]  ;;  %s165_s18 = scalar_lea.vmem [#allocation8], %s3129_s26 }
  0x33   :  { %477 = vmatpush.msra.mxu0 %v428_v28  ;;  %518 = vmatpush.msra.mxu1 %v429_v29  ;;  %s3143_s12 = sld [smem:[#allocation4 + $0xf]]  ;;  %v413_v45 = vld [vmem:[#allocation9 + $0x88] sm:$0xff]  ;;  %v414_v46 = vld [vmem:[#allocation9 + $0x90] sm:$0xff]  ;;  %v415_v47 = vld [vmem:[#allocation9 + $0x98] sm:$0xff]  ;;  %s169_s23 = scalar_lea.vmem [#allocation8], %s3131_s4 }
  0x34   :  { %559 = vmatpush.msra.mxu2 %v430_v30  ;;  %600 = vmatpush.msra.mxu3 %v431_v31  ;;  %s3145_s1 = sld [smem:[#allocation4 + $0x10]]  ;;  %v408_v48 = vld [vmem:[#allocation9 + $0x60] sm:$0xff]  ;;  %v409_v49 = vld [vmem:[#allocation9 + $0x68] sm:$0xff]  ;;  %v410_v50 = vld [vmem:[#allocation9 + $0x70] sm:$0xff]  ;;  %s173_s2 = scalar_lea.vmem [#allocation8], %s3133_s27 }
  0x35   :  { %478 = vmatpush.msra.mxu0 %v424_v32  ;;  %519 = vmatpush.msra.mxu1 %v425_v33  ;;  %s3147_s13 = sld [smem:[#allocation4 + $0x11]]  ;;  %v411_v51 = vld [vmem:[#allocation9 + $0x78] sm:$0xff]  ;;  %v134_v52 = vld [vmem:[%s133_s14] sm:$0x1]  ;;  %v405_v55 = vld [vmem:[#allocation9 + $0x48] sm:$0xff]  ;;  %s177_s24 = scalar_lea.vmem [#allocation8], %s3135_s0 }
  0x36   :  { %560 = vmatpush.msra.mxu2 %v426_v34  ;;  %601 = vmatpush.msra.mxu3 %v427_v35  ;;  %v138_v53 = vld [vmem:[%s137_s15] sm:$0x1]  ;;  %135 = vst [vmem:[#allocation2] sm:$0x1] %v134_v52  ;;  %v406_v58 = vld [vmem:[#allocation9 + $0x50] sm:$0xff]  ;;  %v407_v59 = vld [vmem:[#allocation9 + $0x58] sm:$0xff] }
  0x37   :  { %479 = vmatpush.msra.mxu0 %v420_v36  ;;  %520 = vmatpush.msra.mxu1 %v421_v37  ;;  %v404_v54 = vld [vmem:[#allocation9 + $0x40] sm:$0xff]  ;;  %139 = vst [vmem:[#allocation2 + $0x1] sm:$0x1] %v138_v53  ;;  %s3154_s21 = sld [smem:[#allocation4 + $0x12]]  ;;  %v401_v62 = vld [vmem:[#allocation9 + $0x28] sm:$0xff]  ;;  %v402_v0 = vld [vmem:[#allocation9 + $0x30] sm:$0xff] }
  0x38   :  { %561 = vmatpush.msra.mxu2 %v422_v38  ;;  %602 = vmatpush.msra.mxu3 %v423_v39  ;;  %v142_v56 = vld [vmem:[%s141_s16] sm:$0x1]  ;;  %s3157_s22 = sld [smem:[#allocation4 + $0x13]]  ;;  %v403_v1 = vld [vmem:[#allocation9 + $0x38] sm:$0xff]  ;;  %v397_v4 = vld [vmem:[#allocation9 + $0x8] sm:$0xff]  ;;  %s181_s25 = scalar_lea.vmem [#allocation8], %s3137_s30 }
  0x39   :  { %480 = vmatpush.msra.mxu0 %v416_v40  ;;  %521 = vmatpush.msra.mxu1 %v417_v41  ;;  %v146_v57 = vld [vmem:[%s145_s19] sm:$0x1]  ;;  %143 = vst [vmem:[#allocation2 + $0x2] sm:$0x1] %v142_v56  ;;  %s3161_s17 = sld [smem:[#allocation4 + $0x14]]  ;;  %v398_v6 = vld [vmem:[#allocation9 + $0x10] sm:$0xff] }
  0x3a   :  { %562 = vmatpush.msra.mxu2 %v418_v42  ;;  %603 = vmatpush.msra.mxu3 %v419_v43  ;;  %v150_v60 = vld [vmem:[%s149_s20] sm:$0x1]  ;;  %147 = vst [vmem:[#allocation2 + $0x3] sm:$0x1] %v146_v57  ;;  %v399_v7 = vld [vmem:[#allocation9 + $0x18] sm:$0xff]  ;;  %v736_v10 = vld [vmem:[#allocation11 + $0x1e8] sm:$0xff] }
  0x3b   :  { %481 = vmatpush.msra.mxu0 %v412_v44  ;;  %522 = vmatpush.msra.mxu1 %v413_v45  ;;  %v400_v61 = vld [vmem:[#allocation9 + $0x20] sm:$0xff]  ;;  %151 = vst [vmem:[#allocation2 + $0x4] sm:$0x1] %v150_v60  ;;  %s185_s26 = scalar_lea.vmem [#allocation8], %s3139_s10  ;;  %v738_v17 = vld [vmem:[#allocation11 + $0x1f8] sm:$0xff]  ;;  %s189_s4 = scalar_lea.vmem [#allocation8], %s3141_s11 }
  0x3c   :  { %563 = vmatpush.msra.mxu2 %v414_v46  ;;  %604 = vmatpush.msra.mxu3 %v415_v47  ;;  %v154_v63 = vld [vmem:[%s153_s3] sm:$0x1]  ;;  %v732_v19 = vld [vmem:[#allocation11 + $0x1c8] sm:$0xff]  ;;  %s193_s27 = scalar_lea.vmem [#allocation8], %s3143_s12  ;;  %v3171_v21 = vld [vmem:[#allocation11 + $0x1f0] sm:$0xff]  ;;  %s197_s0 = scalar_lea.vmem [#allocation8], %s3145_s1 }
  0x3d   :  { %482 = vmatpush.msra.mxu0 %v408_v48  ;;  %523 = vmatpush.msra.mxu1 %v409_v49  ;;  %v158_v2 = vld [vmem:[%s157_s5] sm:$0x1]  ;;  %155 = vst [vmem:[#allocation2 + $0x5] sm:$0x1] %v154_v63  ;;  %v3173_v22 = vld [vmem:[#allocation11 + $0x1d8] sm:$0xff]  ;;  %s201_s30 = scalar_lea.vmem [#allocation8], %s3147_s13 }
  0x3e   :  { %564 = vmatpush.msra.mxu2 %v410_v50  ;;  %605 = vmatpush.msra.mxu3 %v411_v51  ;;  %v396_v3 = vld [vmem:[#allocation9] sm:$0xff]  ;;  %159 = vst [vmem:[#allocation2 + $0x6] sm:$0x1] %v158_v2  ;;  %v3180_v26 = vld [vmem:[#allocation11 + $0x1a8] sm:$0xff]  ;;  %s205_s10 = scalar_lea.vmem [#allocation8], %s3154_s21  ;;  %s3183_s11 = sld [smem:[#allocation4 + $0x15]] }
  0x3f   :  { %v162_v5 = vld [vmem:[%s161_s6] sm:$0x1]  ;;  %483 = vmatpush.msra.mxu0 %v404_v54  ;;  %524 = vmatpush.msra.mxu1 %v405_v55  ;;  %v3188_v30 = vld [vmem:[#allocation11 + $0x188] sm:$0xff]  ;;  %s209_s12 = scalar_lea.vmem [#allocation8], %s3157_s22  ;;  %v3191_v32 = vld [vmem:[#allocation11 + $0x1b8] sm:$0xff]  ;;  %s3193_s1 = sld [smem:[#allocation4 + $0x16]] }
  0x40   :  { %v166_v8 = vld [vmem:[%s165_s18] sm:$0x1]  ;;  %565 = vmatpush.msra.mxu2 %v406_v58  ;;  %606 = vmatpush.msra.mxu3 %v407_v59  ;;  %163 = vst [vmem:[#allocation2 + $0x7] sm:$0x1] %v162_v5  ;;  %v3195_v33 = vld [vmem:[#allocation11 + $0x1d0] sm:$0xff]  ;;  %s213_s13 = scalar_lea.vmem [#allocation8], %s3161_s17 }
  0x41   :  { %v735_v9 = vld [vmem:[#allocation11 + $0x1e0] sm:$0xff]  ;;  %484 = vmatpush.msra.mxu0 %v400_v61  ;;  %525 = vmatpush.msra.mxu1 %v401_v62  ;;  %167 = vst [vmem:[#allocation2 + $0x8] sm:$0x1] %v166_v8  ;;  %s3198_s14 = sld [smem:[#allocation4 + $0x17]]  ;;  %v3202_v35 = vld [vmem:[#allocation11 + $0x198] sm:$0xff]  ;;  %v3204_v36 = vld [vmem:[#allocation11 + $0x1b0] sm:$0xff] }
  0x42   :  { %v170_v11 = vld [vmem:[%s169_s23] sm:$0x1]  ;;  %566 = vmatpush.msra.mxu2 %v402_v0  ;;  %607 = vmatpush.msra.mxu3 %v403_v1  ;;  %s3206_s15 = sld [smem:[#allocation4 + $0x18]]  ;;  %v3211_v38 = vld [vmem:[#allocation11 + $0x168] sm:$0xff]  ;;  %v3218_v39 = vld [vmem:[#allocation11 + $0x178] sm:$0xff] }
  0x43   :  { %v174_v12 = vld [vmem:[%s173_s2] sm:$0x1]  ;;  %485 = vmatpush.msra.mxu0 %v396_v3  ;;  %526 = vmatpush.msra.mxu1 %v397_v4  ;;  %171 = vst [vmem:[#allocation2 + $0x9] sm:$0x1] %v170_v11  ;;  %s3214_s16 = sld [smem:[#allocation4 + $0x19]]  ;;  %v3226_v42 = vld [vmem:[#allocation11 + $0x148] sm:$0xff] }
  0x44   :  { %v178_v13 = vld [vmem:[%s177_s24] sm:$0x1]  ;;  %567 = vmatpush.msra.mxu2 %v398_v6  ;;  %608 = vmatpush.msra.mxu3 %v399_v7  ;;  %175 = vst [vmem:[#allocation2 + $0xa] sm:$0x1] %v174_v12  ;;  %s3220_s19 = sld [smem:[#allocation4 + $0x1a]]  ;;  %s217_s20 = scalar_lea.vmem [#allocation8], %s3183_s11 }
  0x45   :  { %v731_v14 = vld [vmem:[#allocation11 + $0x1c0] sm:$0xff]  ;;  %739 = vmatpush.msrb.mxu0 %v735_v9  ;;  %759 = vmatpush.msrb.mxu1 %v736_v10  ;;  %179 = vst [vmem:[#allocation2 + $0xb] sm:$0x1] %v178_v13  ;;  %s3229_s21 = sld [smem:[#allocation4 + $0x1b]]  ;;  %v3235_v43 = vld [vmem:[#allocation11 + $0x190] sm:$0xff]  ;;  %s221_s22 = scalar_lea.vmem [#allocation8], %s3193_s1 }
  0x46   :  { %v182_v15 = vld [vmem:[%s181_s25] sm:$0x1]  ;;  %799 = vmatpush.msrb.mxu3 %v738_v17  ;;  %779 = vmatpush.msrb.mxu2 %v3171_v21  ;;  %s3233_s3 = sld [smem:[#allocation4 + $0x1c]]  ;;  %v3243_v47 = vld [vmem:[#allocation11 + $0x128] sm:$0xff]  ;;  %v3247_v49 = vld [vmem:[#allocation11 + $0x158] sm:$0xff] }
  0x47   :  { %v186_v16 = vld [vmem:[%s185_s26] sm:$0x1]  ;;  %183 = vst [vmem:[#allocation2 + $0xc] sm:$0x1] %v182_v15  ;;  %740 = vmatpush.msrb.mxu0 %v731_v14  ;;  %760 = vmatpush.msrb.mxu1 %v732_v19  ;;  %s3239_s5 = sld [smem:[#allocation4 + $0x1d]]  ;;  %s225_s6 = scalar_lea.vmem [#allocation8], %s3198_s14 }
  0x48   :  { %v190_v18 = vld [vmem:[%s189_s4] sm:$0x1]  ;;  %187 = vst [vmem:[#allocation2 + $0xd] sm:$0x1] %v186_v16  ;;  %800 = vmatpush.msrb.mxu3 %v3173_v22  ;;  %780 = vmatpush.msrb.mxu2 %v3195_v33  ;;  %s229_s17 = scalar_lea.vmem [#allocation8], %s3206_s15  ;;  %v3252_v52 = vld [vmem:[#allocation11 + $0x108] sm:$0xff] }
  0x49   :  { %v194_v20 = vld [vmem:[%s193_s27] sm:$0x1]  ;;  %191 = vst [vmem:[#allocation2 + $0xe] sm:$0x1] %v190_v18  ;;  %761 = vmatpush.msrb.mxu1 %v3180_v26  ;;  %s233_s18 = scalar_lea.vmem [#allocation8], %s3214_s16  ;;  %v3257_v54 = vld [vmem:[#allocation11 + $0x138] sm:$0xff] }
  0x4a   :  { %v3175_v23 = vld [vmem:[#allocation11 + $0x1a0] sm:$0xff]  ;;  %195 = vst [vmem:[#allocation2 + $0xf] sm:$0x1] %v194_v20  ;;  %801 = vmatpush.msrb.mxu3 %v3191_v32  ;;  %781 = vmatpush.msrb.mxu2 %v3204_v36  ;;  %s237_s23 = scalar_lea.vmem [#allocation8], %s3220_s19  ;;  %v3261_v56 = vld [vmem:[#allocation11 + $0x170] sm:$0xff]  ;;  %s3270_s26 = sld [smem:[#allocation4 + $0x1e]] }
  0x4b   :  { %v198_v24 = vld [vmem:[%s197_s0] sm:$0x1]  ;;  %741 = vmatpush.msrb.mxu0 %v3175_v23  ;;  %762 = vmatpush.msrb.mxu1 %v3188_v30  ;;  %s241_s2 = scalar_lea.vmem [#allocation8], %s3229_s21  ;;  %s3274_s4 = sld [smem:[#allocation4 + $0x1f]]  ;;  %v3278_v61 = vld [vmem:[#allocation11 + $0xe8] sm:$0xff]  ;;  %v3284_v63 = vld [vmem:[#allocation11 + $0x118] sm:$0xff] }
  0x4c   :  { %v202_v25 = vld [vmem:[%s201_s30] sm:$0x1]  ;;  %199 = vst [vmem:[#allocation2 + $0x10] sm:$0x1] %v198_v24  ;;  %802 = vmatpush.msrb.mxu3 %v3202_v35  ;;  %782 = vmatpush.msrb.mxu2 %v3235_v43  ;;  %s245_s24 = scalar_lea.vmem [#allocation8], %s3233_s3  ;;  %s3280_s27 = sld [smem:[#allocation4 + $0x20]] }
  0x4d   :  { %v206_v27 = vld [vmem:[%s205_s10] sm:$0x1]  ;;  %203 = vst [vmem:[#allocation2 + $0x11] sm:$0x1] %v202_v25  ;;  %763 = vmatpush.msrb.mxu1 %v3211_v38  ;;  %s249_s25 = scalar_lea.vmem [#allocation8], %s3239_s5  ;;  %v3286_v0 = vld [vmem:[#allocation11 + $0x150] sm:$0xff] }
  0x4e   :  { %v388_v28 = vld [vmem:[#allocation2] sm:$0xff]  ;;  %207 = vst [vmem:[#allocation2 + $0x12] sm:$0x1] %v206_v27  ;;  %803 = vmatpush.msrb.mxu3 %v3218_v39  ;;  %783 = vmatpush.msrb.mxu2 %v3261_v56  ;;  %s2586_s0 = sld [smem:[#allocation4 + $0x21]]  ;;  %v3290_v2 = vld [vmem:[#allocation11 + $0xc8] sm:$0xff]  ;;  %v3292_v3 = vld [vmem:[#allocation11 + $0xf8] sm:$0xff] }
  0x4f   :  { %v3186_v29 = vld [vmem:[#allocation11 + $0x180] sm:$0xff]  ;;  %486 = vmatmul.f32.vlgmr.msra.gmra.mxu0 %v388_v28  ;;  %527 = vmatmul.f32.vlgmr.msra.gmra.mxu1 %v388_v28  ;;  %s2587_s30 = sld [smem:[#allocation4 + $0x22]]  ;;  %v3294_v4 = vld [vmem:[#allocation11 + $0x130] sm:$0xff]  ;;  %v3309_v14 = vld [vmem:[#allocation11 + $0xa8] sm:$0xff] }
  0x50   :  { %v210_v31 = vld [vmem:[%s209_s12] sm:$0x1]  ;;  %568 = vmatmul.f32.vlgmr.msra.gmra.mxu2 %v388_v28  ;;  %609 = vmatmul.f32.vlgmr.msra.gmra.mxu3 %v388_v28  ;;  %s2588_s10 = sld [smem:[#allocation4 + $0x23]]  ;;  %s253_s12 = scalar_lea.vmem [#allocation8], %s3270_s26  ;;  %v3315_v16 = vld [vmem:[#allocation11 + $0xd8] sm:$0xff]  ;;  %v3317_v17 = vld [vmem:[#allocation11 + $0x110] sm:$0xff] }
  0x51   :  { %v214_v34 = vld [vmem:[%s213_s13] sm:$0x1]  ;;  %742 = vmatpush.msrb.mxu0 %v3186_v29  ;;  %211 = vst [vmem:[#allocation2 + $0x13] sm:$0x1] %v210_v31  ;;  %v389_v44 = vld [vmem:[#allocation2 + $0x8] sm:$0xff]  ;;  %764 = vmatpush.msrb.mxu1 %v3226_v42  ;;  %s2589_s11 = sld [smem:[#allocation4 + $0x24]] }
  0x52   :  { %v3209_v37 = vld [vmem:[#allocation11 + $0x160] sm:$0xff]  ;;  %215 = vst [vmem:[#allocation2 + $0x14] sm:$0x1] %v214_v34  ;;  %804 = vmatpush.msrb.mxu3 %v3247_v49  ;;  %784 = vmatpush.msrb.mxu2 %v3286_v0  ;;  %s2590_s1 = sld [smem:[#allocation4 + $0x25]]  ;;  %s257_s13 = scalar_lea.vmem [#allocation8], %s3274_s4  ;;  %v3321_v19 = vld [vmem:[#allocation11 + $0x88] sm:$0xff] }
  0x53   :  { %v218_v40 = vld [vmem:[%s217_s20] sm:$0x1]  ;;  %743 = vmatpush.msrb.mxu0 %v3209_v37  ;;  %765 = vmatpush.msrb.mxu1 %v3243_v47  ;;  %s261_s14 = scalar_lea.vmem [#allocation8], %s3280_s27  ;;  %s2591_s3 = sld [smem:[#allocation4 + $0x26]]  ;;  %v3323_v20 = vld [vmem:[#allocation11 + $0xb8] sm:$0xff]  ;;  %v3325_v24 = vld [vmem:[#allocation11 + $0xf0] sm:$0xff] }
  0x54   :  { %v3224_v41 = vld [vmem:[#allocation11 + $0x140] sm:$0xff]  ;;  %219 = vst [vmem:[#allocation2 + $0x15] sm:$0x1] %v218_v40  ;;  %805 = vmatpush.msrb.mxu3 %v3257_v54  ;;  %785 = vmatpush.msrb.mxu2 %v3294_v4  ;;  %s265_s15 = scalar_lea.vmem [#allocation8], %s2586_s0  ;;  %s3311_s5 = sld [smem:[#allocation4 + $0x28]] }
  0x55   :  { %v222_v45 = vld [vmem:[%s221_s22] sm:$0x1]  ;;  %744 = vmatpush.msrb.mxu0 %v3224_v41  ;;  %766 = vmatpush.msrb.mxu1 %v3252_v52  ;;  %s269_s16 = scalar_lea.vmem [#allocation8], %s2587_s30  ;;  %s3305_s22 = sld [smem:[#allocation4 + $0x27]] }
  0x56   :  { %v3241_v46 = vld [vmem:[#allocation11 + $0x120] sm:$0xff]  ;;  %223 = vst [vmem:[#allocation2 + $0x16] sm:$0x1] %v222_v45  ;;  %806 = vmatpush.msrb.mxu3 %v3284_v63  ;;  %s273_s19 = scalar_lea.vmem [#allocation8], %s2588_s10  ;;  %786 = vmatpush.msrb.mxu2 %v3317_v17 }
  0x57   :  { %489 = vmatmul.f32.gmra.mxu0 %v389_v44  ;;  %530 = vmatmul.f32.gmra.mxu1 %v389_v44  ;;  %v226_v48 = vld [vmem:[%s225_s6] sm:$0x1]  ;;  %s277_s20 = scalar_lea.vmem [#allocation8], %s2589_s11  ;;  %s2594_s6 = sld [smem:[#allocation4 + $0x29]] }
  0x58   :  { %571 = vmatmul.f32.gmra.mxu2 %v389_v44  ;;  %612 = vmatmul.f32.gmra.mxu3 %v389_v44  ;;  %227 = vst [vmem:[#allocation2 + $0x17] sm:$0x1] %v226_v48  ;;  %v230_v50 = vld [vmem:[%s229_s17] sm:$0x1]  ;;  %s281_s21 = scalar_lea.vmem [#allocation8], %s2590_s1  ;;  %s2595_s17 = sld [smem:[#allocation4 + $0x2a]] }
  0x59   :  { %v3250_v51 = vld [vmem:[#allocation11 + $0x100] sm:$0xff]  ;;  %231 = vst [vmem:[#allocation2 + $0x18] sm:$0x1] %v230_v50  ;;  %745 = vmatpush.msrb.mxu0 %v3241_v46  ;;  %767 = vmatpush.msrb.mxu1 %v3278_v61  ;;  %s3335_s11 = sld [smem:[#allocation4 + $0x2e]]  ;;  %v3341_v50 = vld [vmem:[#allocation11 + $0x68] sm:$0xff] }
  0x5a   :  { %v234_v53 = vld [vmem:[%s233_s18] sm:$0x1]  ;;  %807 = vmatpush.msrb.mxu3 %v3292_v3  ;;  %s2596_s18 = sld [smem:[#allocation4 + $0x2b]]  ;;  %787 = vmatpush.msrb.mxu2 %v3325_v24  ;;  %s293_s26 = scalar_lea.vmem [#allocation8], %s3311_s5 }
  0x5b   :  { %235 = vst [vmem:[#allocation2 + $0x19] sm:$0x1] %v234_v53  ;;  %v238_v55 = vld [vmem:[%s237_s23] sm:$0x1]  ;;  %746 = vmatpush.msrb.mxu0 %v3250_v51  ;;  %768 = vmatpush.msrb.mxu1 %v3290_v2  ;;  %s2597_s23 = sld [smem:[#allocation4 + $0x2c]] }
  0x5c   :  { %239 = vst [vmem:[#allocation2 + $0x1a] sm:$0x1] %v238_v55  ;;  %v242_v57 = vld [vmem:[%s241_s2] sm:$0x1]  ;;  %808 = vmatpush.msrb.mxu3 %v3315_v16  ;;  %s285_s2 = scalar_lea.vmem [#allocation8], %s2591_s3  ;;  %s3343_s1 = sld [smem:[#allocation4 + $0x30]] }
  0x5d   :  { %243 = vst [vmem:[#allocation2 + $0x1b] sm:$0x1] %v242_v57  ;;  %v246_v58 = vld [vmem:[%s245_s24] sm:$0x1]  ;;  %769 = vmatpush.msrb.mxu1 %v3309_v14  ;;  %s2598_s24 = sld [smem:[#allocation4 + $0x2d]]  ;;  %s297_s4 = scalar_lea.vmem [#allocation8], %s2594_s6 }
  0x5e   :  { %247 = vst [vmem:[#allocation2 + $0x1c] sm:$0x1] %v246_v58  ;;  %v250_v59 = vld [vmem:[%s249_s25] sm:$0x1]  ;;  %809 = vmatpush.msrb.mxu3 %v3323_v20  ;;  %s289_s25 = scalar_lea.vmem [#allocation8], %s3305_s22  ;;  %s301_s27 = scalar_lea.vmem [#allocation8], %s2595_s17 }
  0x5f   :  { %251 = vst [vmem:[#allocation2 + $0x1d] sm:$0x1] %v250_v59  ;;  %v3276_v60 = vld [vmem:[#allocation11 + $0xe0] sm:$0xff]  ;;  %v390_v62 = vld [vmem:[#allocation2 + $0x10] sm:$0xff]  ;;  %770 = vmatpush.msrb.mxu1 %v3321_v19  ;;  %v3347_v55 = vld [vmem:[#allocation11 + $0x98] sm:$0xff] }
  0x60   :  { %747 = vmatpush.msrb.mxu0 %v3276_v60  ;;  %533 = vmatmul.f32.gmra.mxu1 %v390_v62  ;;  %v3288_v1 = vld [vmem:[#allocation11 + $0xc0] sm:$0xff]  ;;  %s305_s0 = scalar_lea.vmem [#allocation8], %s2596_s18  ;;  %v3349_v57 = vld [vmem:[#allocation11 + $0xd0] sm:$0xff]  ;;  %v3355_v59 = vld [vmem:[#allocation11 + $0x48] sm:$0xff] }
  0x61   :  { %492 = vmatmul.f32.gmra.mxu0 %v390_v62  ;;  %574 = vmatmul.f32.gmra.mxu2 %v390_v62  ;;  %v254_v5 = vld [vmem:[%s253_s12] sm:$0x1]  ;;  %s309_s30 = scalar_lea.vmem [#allocation8], %s2597_s23  ;;  %s3337_s12 = sld [smem:[#allocation4 + $0x2f]] }
  0x62   :  { %615 = vmatmul.f32.gmra.mxu3 %v390_v62  ;;  %748 = vmatpush.msrb.mxu0 %v3288_v1  ;;  %255 = vst [vmem:[#allocation2 + $0x1e] sm:$0x1] %v254_v5  ;;  %v258_v6 = vld [vmem:[%s257_s13] sm:$0x1]  ;;  %s3351_s13 = sld [smem:[#allocation4 + $0x31]]  ;;  %v3357_v62 = vld [vmem:[#allocation11 + $0xb0] sm:$0xff] }
  0x63   :  { %259 = vst [vmem:[#allocation2 + $0x1f] sm:$0x1] %v258_v6  ;;  %v262_v7 = vld [vmem:[%s261_s14] sm:$0x1]  ;;  %s313_s10 = scalar_lea.vmem [#allocation8], %s2598_s24  ;;  %771 = vmatpush.msrb.mxu1 %v3341_v50  ;;  %s2603_s14 = sld [smem:[#allocation4 + $0x32]]  ;;  %810 = vmatpush.msrb.mxu3 %v3347_v55 }
  0x64   :  { %263 = vst [vmem:[#allocation2 + $0x20] sm:$0x1] %v262_v7  ;;  %v266_v8 = vld [vmem:[%s265_s15] sm:$0x1]  ;;  %v3359_v5 = vld [vmem:[#allocation11 + $0x78] sm:$0xff]  ;;  %s2604_s15 = sld [smem:[#allocation4 + $0x33]]  ;;  %788 = vmatpush.msrb.mxu2 %v3349_v57 }
  0x65   :  { %267 = vst [vmem:[#allocation2 + $0x21] sm:$0x1] %v266_v8  ;;  %v270_v9 = vld [vmem:[%s269_s16] sm:$0x1]  ;;  %s2605_s16 = sld [smem:[#allocation4 + $0x34]]  ;;  %772 = vmatpush.msrb.mxu1 %v3355_v59  ;;  %v3365_v6 = vld [vmem:[#allocation11 + $0x90] sm:$0xff]  ;;  %811 = vmatpush.msrb.mxu3 %v3359_v5 }
  0x66   :  { %271 = vst [vmem:[#allocation2 + $0x22] sm:$0x1] %v270_v9  ;;  %v274_v10 = vld [vmem:[%s273_s19] sm:$0x1]  ;;  %s317_s19 = scalar_lea.vmem [#allocation8], %s3335_s11  ;;  %789 = vmatpush.msrb.mxu2 %v3357_v62  ;;  %s325_s3 = scalar_lea.vmem [#allocation8], %s3343_s1 }
  0x67   :  { %275 = vst [vmem:[#allocation2 + $0x23] sm:$0x1] %v274_v10  ;;  %v278_v11 = vld [vmem:[%s277_s20] sm:$0x1]  ;;  %s2606_s20 = sld [smem:[#allocation4 + $0x35]] }
  0x68   :  { %279 = vst [vmem:[#allocation2 + $0x24] sm:$0x1] %v278_v11  ;;  %v282_v12 = vld [vmem:[%s281_s21] sm:$0x1]  ;;  %s321_s21 = scalar_lea.vmem [#allocation8], %s3337_s12  ;;  %790 = vmatpush.msrb.mxu2 %v3365_v6  ;;  %s329_s22 = scalar_lea.vmem [#allocation8], %s3351_s13 }
  0x69   :  { %283 = vst [vmem:[#allocation2 + $0x25] sm:$0x1] %v282_v12  ;;  %v3307_v13 = vld [vmem:[#allocation11 + $0xa0] sm:$0xff]  ;;  %s333_s5 = scalar_lea.vmem [#allocation8], %s2603_s14  ;;  %s3374_s23 = sld [smem:[#allocation4 + $0x36]] }
  0x6a   :  { %v391_v15 = vld [vmem:[#allocation2 + $0x18] sm:$0xff]  ;;  %749 = vmatpush.msrb.mxu0 %v3307_v13  ;;  %v3319_v18 = vld [vmem:[#allocation11 + $0x80] sm:$0xff]  ;;  %s337_s6 = scalar_lea.vmem [#allocation8], %s2604_s15  ;;  %s3382_s24 = sld [smem:[#allocation4 + $0x38]] }
  0x6b   :  { %495 = vmatmul.f32.gmra.mxu0 %v391_v15  ;;  %536 = vmatmul.f32.gmra.mxu1 %v391_v15  ;;  %v286_v25 = vld [vmem:[%s285_s2] sm:$0x1]  ;;  %s341_s17 = scalar_lea.vmem [#allocation8], %s2605_s16  ;;  %s3376_s2 = sld [smem:[#allocation4 + $0x37]] }
  0x6c   :  { %577 = vmatmul.f32.gmra.mxu2 %v391_v15  ;;  %618 = vmatmul.f32.gmra.mxu3 %v391_v15  ;;  %287 = vst [vmem:[#allocation2 + $0x26] sm:$0x1] %v286_v25  ;;  %v290_v27 = vld [vmem:[%s289_s25] sm:$0x1]  ;;  %s3390_s25 = sld [smem:[#allocation4 + $0x39]] }
  0x6d   :  { %750 = vmatpush.msrb.mxu0 %v3319_v18  ;;  %291 = vst [vmem:[#allocation2 + $0x27] sm:$0x1] %v290_v27  ;;  %v294_v28 = vld [vmem:[%s293_s26] sm:$0x1]  ;;  %s345_s18 = scalar_lea.vmem [#allocation8], %s2606_s20  ;;  %s3396_s26 = sld [smem:[#allocation4 + $0x3a]] }
  0x6e   :  { %295 = vst [vmem:[#allocation2 + $0x28] sm:$0x1] %v294_v28  ;;  %v298_v31 = vld [vmem:[%s297_s4] sm:$0x1]  ;;  %v3380_v28 = vld [vmem:[#allocation11 + $0x28] sm:$0xff]  ;;  %s3402_s4 = sld [smem:[#allocation4 + $0x3b]] }
  0x6f   :  { %299 = vst [vmem:[#allocation2 + $0x29] sm:$0x1] %v298_v31  ;;  %v302_v34 = vld [vmem:[%s301_s27] sm:$0x1]  ;;  %773 = vmatpush.msrb.mxu1 %v3380_v28  ;;  %s3406_s27 = sld [smem:[#allocation4 + $0x3c]] }
  0x70   :  { %303 = vst [vmem:[#allocation2 + $0x2a] sm:$0x1] %v302_v34  ;;  %v306_v40 = vld [vmem:[%s305_s0] sm:$0x1]  ;;  %v3386_v34 = vld [vmem:[#allocation11 + $0x70] sm:$0xff]  ;;  %s349_s0 = scalar_lea.vmem [#allocation8], %s3374_s23 }
  0x71   :  { %307 = vst [vmem:[#allocation2 + $0x2b] sm:$0x1] %v306_v40  ;;  %v310_v44 = vld [vmem:[%s309_s30] sm:$0x1]  ;;  %v3388_v40 = vld [vmem:[#allocation11 + $0x58] sm:$0xff]  ;;  %791 = vmatpush.msrb.mxu2 %v3386_v34  ;;  %s2614_s30 = sld [smem:[#allocation4 + $0x3d]] }
  0x72   :  { %311 = vst [vmem:[#allocation2 + $0x2c] sm:$0x1] %v310_v44  ;;  %v314_v45 = vld [vmem:[%s313_s10] sm:$0x1]  ;;  %812 = vmatpush.msrb.mxu3 %v3388_v40  ;;  %s353_s10 = scalar_lea.vmem [#allocation8], %s3376_s2  ;;  %s357_s11 = scalar_lea.vmem [#allocation8], %s3382_s24 }
  0x73   :  { %315 = vst [vmem:[#allocation2 + $0x2d] sm:$0x1] %v314_v45  ;;  %v3339_v48 = vld [vmem:[#allocation11 + $0x60] sm:$0xff]  ;;  %v3394_v45 = vld [vmem:[#allocation11 + $0x8] sm:$0xff]  ;;  %s361_s12 = scalar_lea.vmem [#allocation8], %s3390_s25  ;;  %s365_s1 = scalar_lea.vmem [#allocation8], %s3396_s26 }
  0x74   :  { %v392_v53 = vld [vmem:[#allocation2 + $0x20] sm:$0xff]  ;;  %751 = vmatpush.msrb.mxu0 %v3339_v48  ;;  %4441 = vst [vmem:[#allocation28_spill] sm:$0xff] %v3394_v45  ;;  %774 = vmatpush.msrb.mxu1 %v3394_v45  ;;  %s369_s13 = scalar_lea.vmem [#allocation8], %s3402_s4  ;;  %s2615_s16 = sld [smem:[#allocation4 + $0x3e]] }
  0x75   :  { %498 = vmatmul.f32.gmra.mxu0 %v392_v53  ;;  %539 = vmatmul.f32.gmra.mxu1 %v392_v53  ;;  %v3353_v58 = vld [vmem:[#allocation11 + $0x40] sm:$0xff]  ;;  %s373_s14 = scalar_lea.vmem [#allocation8], %s3406_s27  ;;  %s2449_s25 = sshll.u32 %s4351_s8, 4  ;;  %s2450_s25 = int_to_ptr.hbm [resolvable:$true] %s2449_s25 }
  0x76   :  { %580 = vmatmul.f32.gmra.mxu2 %v392_v53  ;;  %621 = vmatmul.f32.gmra.mxu3 %v392_v53  ;;  %v318_v7 = vld [vmem:[%s317_s19] sm:$0x1]  ;;  %v3398_v53 = vld [vmem:[#allocation11 + $0x50] sm:$0xff]  ;;  %s2616_s19 = sld [smem:[#allocation4 + $0x3f]]  ;;  %s3038_s26 = smov [#allocation20]  }
  0x77   :  { %752 = vmatpush.msrb.mxu0 %v3353_v58  ;;  %319 = vst [vmem:[#allocation2 + $0x2e] sm:$0x1] %v318_v7  ;;  %v322_v8 = vld [vmem:[%s321_s21] sm:$0x1]  ;;  %v3400_v7 = vld [vmem:[#allocation11 + $0x38] sm:$0xff]  ;;  %792 = vmatpush.msrb.mxu2 %v3398_v53  ;;  %s377_s15 = scalar_lea.vmem [#allocation8], %s2614_s30 }
  0x78   :  { %323 = vst [vmem:[#allocation2 + $0x2f] sm:$0x1] %v322_v8  ;;  %v326_v9 = vld [vmem:[%s325_s3] sm:$0x1]  ;;  %v3410_v8 = vld [vmem:[#allocation11 + $0x30] sm:$0xff]  ;;  %813 = vmatpush.msrb.mxu3 %v3400_v7  ;;  %s3036_s3 = smov [#allocation17]  }
  0x79   :  { %327 = vst [vmem:[#allocation2 + $0x30] sm:$0x1] %v326_v9  ;;  %v330_v10 = vld [vmem:[%s329_s22] sm:$0x1]  ;;  %v3412_v9 = vld [vmem:[#allocation11 + $0x18] sm:$0xff]  ;;  %793 = vmatpush.msrb.mxu2 %v3410_v8  ;;  %s2433_s22 = sshll.u32 %s3036_s3, 4  ;;  %s2434_s22 = int_to_ptr.vmem [resolvable:$true] %s2433_s22 }
  0x7a   :  { %331 = vst [vmem:[#allocation2 + $0x31] sm:$0x1] %v330_v10  ;;  %v334_v11 = vld [vmem:[%s333_s5] sm:$0x1]  ;;  %814 = vmatpush.msrb.mxu3 %v3412_v9  ;;  %s381_s20 = scalar_lea.vmem [#allocation8], %s2615_s16  ;;  %s2458_s4 = sshll.u32 %s3038_s26, 4  ;;  %s2459_s4 = int_to_ptr.vmem [resolvable:$true] %s2458_s4 }
  0x7b   :  { %335 = vst [vmem:[#allocation2 + $0x32] sm:$0x1] %v334_v11  ;;  %v338_v12 = vld [vmem:[%s337_s6] sm:$0x1]  ;;  %s2460_s30 = sshll.u32 %s4352_s9, 4  ;;  %s2461_s30 = int_to_ptr.hbm [resolvable:$true] %s2460_s30 }
  0x7c   :  { %339 = vst [vmem:[#allocation2 + $0x33] sm:$0x1] %v338_v12  ;;  %v342_v15 = vld [vmem:[%s341_s17] sm:$0x1]  ;;  %v3418_v12 = vld [vmem:[#allocation11 + $0x10] sm:$0xff]  ;;  %s385_s21 = scalar_lea.vmem [#allocation8], %s2616_s19 }
  0x7d   :  { %343 = vst [vmem:[#allocation2 + $0x34] sm:$0x1] %v342_v15  ;;  %v346_v25 = vld [vmem:[%s345_s18] sm:$0x1]  ;;  %794 = vmatpush.msrb.mxu2 %v3418_v12  ;;  %s2435_s17 = sshll.u32 %s4350_s7, 4  ;;  %s3037_s18 = smov [#allocation18]   ;;  %s2436_s17 = int_to_ptr.hbm [resolvable:$true] %s2435_s17 }
  0x7e   :  { %347 = vst [vmem:[#allocation2 + $0x35] sm:$0x1] %v346_v25  ;;  %v3378_v27 = vld [vmem:[#allocation11 + $0x20] sm:$0xff]  ;;  %s2447_s23 = sshll.u32 %s3037_s18, 4  ;;  %s2448_s23 = int_to_ptr.vmem [resolvable:$true] %s2447_s23 }
  0x7f   :  { %v393_v31 = vld [vmem:[#allocation2 + $0x28] sm:$0xff]  ;;  %753 = vmatpush.msrb.mxu0 %v3378_v27  ;;  %v3392_v44 = vld [vmem:[#allocation11] sm:$0xff]  ;;  %4442 = vst [vmem:[#allocation29_spill] sm:$0xff] %v3398_v53  ;;  %998 = vmatpush.msra.mxu2 %v3171_v21 }
  0x80   :  { %501 = vmatmul.f32.gmra.mxu0 %v393_v31  ;;  %542 = vmatmul.f32.gmra.mxu1 %v393_v31  ;;  %4443 = vst [vmem:[#allocation30_spill] sm:$0xff] %v3410_v8  ;;  %v350_v10 = vld [vmem:[%s349_s0] sm:$0x1] }
  0x81   :  { %583 = vmatmul.f32.gmra.mxu2 %v393_v31  ;;  %624 = vmatmul.f32.gmra.mxu3 %v393_v31  ;;  %351 = vst [vmem:[#allocation2 + $0x36] sm:$0x1] %v350_v10  ;;  %v354_v11 = vld [vmem:[%s353_s10] sm:$0x1] }
  0x82   :  { %754 = vmatpush.msrb.mxu0 %v3392_v44  ;;  %4444 = vst [vmem:[#allocation31_spill] sm:$0xff] %v3418_v12  ;;  %v358_v15 = vld [vmem:[%s357_s11] sm:$0x1]  ;;  %999 = vmatpush.msra.mxu2 %v3195_v33 }
  0x83   :  { %355 = vst [vmem:[#allocation2 + $0x37] sm:$0x1] %v354_v11  ;;  %v362_v25 = vld [vmem:[%s361_s12] sm:$0x1] }
  0x84   :  { %359 = vst [vmem:[#allocation2 + $0x38] sm:$0x1] %v358_v15  ;;  %v366_v31 = vld [vmem:[%s365_s1] sm:$0x1]  ;;  %1000 = vmatpush.msra.mxu2 %v3204_v36  ;;  %v666_v36 = vld [vmem:[#allocation14] sm:$0xff] }
  0x85   :  { %363 = vst [vmem:[#allocation2 + $0x39] sm:$0x1] %v362_v25  ;;  %v370_v10 = vld [vmem:[%s369_s13] sm:$0x1] }
  0x86   :  { %367 = vst [vmem:[#allocation2 + $0x3a] sm:$0x1] %v366_v31  ;;  %v374_v11 = vld [vmem:[%s373_s14] sm:$0x1]  ;;  %1001 = vmatpush.msra.mxu2 %v3235_v43 }
  0x87   :  { %371 = vst [vmem:[#allocation2 + $0x3b] sm:$0x1] %v370_v10  ;;  %v378_v45 = vld [vmem:[%s377_s15] sm:$0x1] }
  0x88   :  { %375 = vst [vmem:[#allocation2 + $0x3c] sm:$0x1] %v374_v11  ;;  %v382_v21 = vld [vmem:[%s381_s20] sm:$0x1]  ;;  %1002 = vmatpush.msra.mxu2 %v3261_v56 }
  0x89   :  { %379 = vst [vmem:[#allocation2 + $0x3d] sm:$0x1] %v378_v45  ;;  %v386_v25 = vld [vmem:[%s385_s21] sm:$0x1] }
  0x8a   :  { %v394_v15 = vld [vmem:[#allocation2 + $0x30] sm:$0xff]  ;;  %383 = vst [vmem:[#allocation2 + $0x3e] sm:$0x1] %v382_v21  ;;  %1003 = vmatpush.msra.mxu2 %v3286_v0 }
  0x8b   :  { %504 = vmatmul.f32.gmra.mxu0 %v394_v15  ;;  %545 = vmatmul.f32.gmra.mxu1 %v394_v15  ;;  %387 = vst [vmem:[#allocation2 + $0x3f] sm:$0x1] %v386_v25 }
  0x8c   :  { %586 = vmatmul.f32.gmra.mxu2 %v394_v15  ;;  %627 = vmatmul.f32.gmra.mxu3 %v394_v15 }
  0x8d   :  { %1004 = vmatpush.msra.mxu2 %v3294_v4 }
  0x8f   :  { %1005 = vmatpush.msra.mxu2 %v3317_v17 }
  0x91   :  { %1006 = vmatpush.msra.mxu2 %v3325_v24 }
  0x92   :  { %v395_v33 = vld [vmem:[#allocation2 + $0x38] sm:$0xff] }
  0x93   :  { %507 = vmatmul.f32.gmra.mxu0 %v395_v33  ;;  %548 = vmatmul.f32.gmra.mxu1 %v395_v33 }
  0x94   :  { %589 = vmatmul.f32.gmra.mxu2 %v395_v33  ;;  %630 = vmatmul.f32.gmra.mxu3 %v395_v33 }
  0x95   :  { %1007 = vmatpush.msra.mxu2 %v3349_v57 }
  0x97   :  { %1008 = vmatpush.msra.mxu2 %v3357_v62 }
  0x99   :  { %1009 = vmatpush.msra.mxu2 %v3365_v6 }
  0x9b   :  { %755 = vmatmul.f32.vlgmr.msrb.gmra.mxu0 %v666_v36  ;;  %775 = vmatmul.f32.vlgmr.msrb.gmra.mxu1 %v666_v36 }
  0x9c   :  { %795 = vmatmul.f32.vlgmr.msrb.gmra.mxu2 %v666_v36  ;;  %815 = vmatmul.f32.vlgmr.msrb.gmra.mxu3 %v666_v36 }
  0x9d   :  { %1010 = vmatpush.msra.mxu2 %v3386_v34 }
  0x9f   :  { %1011 = vmatpush.msra.mxu2 %v3398_v53 }
  0xa1   :  { %1012 = vmatpush.msra.mxu2 %v3410_v8 }
  0xa3   :  { %1013 = vmatpush.msra.mxu2 %v3418_v12 }
  0xcc   :  { %v487_v43 = vpop.f32.mrf.mxu0  ;;  %v528_v56 = vpop.f32.mrf.mxu1 }
  0xd3   :  { %v3444_v0 = vpop.f32.mrf.mxu3  ;;  %v3450_v24 = vpop.f32.mrf.mxu2 }
  0xd4   :  { %v3446_v4 = vpop.f32.mrf.mxu0  ;;  %v3448_v17 = vpop.f32.mrf.mxu1 }
  0xdb   :  { %v3452_v45 = vpop.f32.mrf.mxu3  ;;  %v3458_v11 = vpop.f32.mrf.mxu2 }
  0xdc   :  { %4447 = vst [vmem:[#allocation34_spill] sm:$0xff] %v3458_v11 }
  0xdd   :  { %v3456_v10 = vpop.f32.mrf.mxu1 }
  0xde   :  { %v3454_v31 = vpop.f32.mrf.mxu0  ;;  %4446 = vst [vmem:[#allocation33_spill] sm:$0xff] %v3456_v10 }
  0xdf   :  { %4445 = vst [vmem:[#allocation32_spill] sm:$0xff] %v3454_v31 }
  0xe4   :  { %v3466_v33 = vpop.f32.mrf.mxu2 }
  0xe5   :  { %v3460_v15 = vpop.f32.mrf.mxu3  ;;  %4451 = vst [vmem:[#allocation38_spill] sm:$0xff] %v3466_v33 }
  0xe6   :  { %4448 = vst [vmem:[#allocation35_spill] sm:$0xff] %v3460_v15 }
  0xe8   :  { %v3462_v21 = vpop.f32.mrf.mxu0  ;;  %v3464_v25 = vpop.f32.mrf.mxu1 }
  0xe9   :  { %4449 = vst [vmem:[#allocation36_spill] sm:$0xff] %v3462_v21 }
  0xea   :  { %4450 = vst [vmem:[#allocation37_spill] sm:$0xff] %v3464_v25 }
  0xef   :  { %v3468_v36 = vpop.f32.mrf.mxu3  ;;  %v3474_v53 = vpop.f32.mrf.mxu2 }
  0xf0   :  { %4452 = vst [vmem:[#allocation39_spill] sm:$0xff] %v3468_v36  ;;  %v3490_v36 = vld [vmem:[#allocation11 + $0x1e0] sm:$0xff] }
  0xf1   :  { %4455 = vst [vmem:[#allocation42_spill] sm:$0xff] %v3474_v53  ;;  %958 = vmatpush.msra.mxu0 %v3490_v36 }
  0xf2   :  { %v3470_v12 = vpop.f32.mrf.mxu0  ;;  %v3472_v8 = vpop.f32.mrf.mxu1 }
  0xf3   :  { %4453 = vst [vmem:[#allocation40_spill] sm:$0xff] %v3470_v12  ;;  %v3492_v12 = vld [vmem:[#allocation11 + $0x1e8] sm:$0xff] }
  0xf4   :  { %4454 = vst [vmem:[#allocation41_spill] sm:$0xff] %v3472_v8  ;;  %v3494_v8 = vld [vmem:[#allocation11 + $0x1f8] sm:$0xff]  ;;  %978 = vmatpush.msra.mxu1 %v3492_v12 }
  0xf5   :  { %1018 = vmatpush.msra.mxu3 %v3494_v8 }
  0xf7   :  { %1019 = vmatpush.msra.mxu3 %v3173_v22  ;;  %v460_v22 = vld [vmem:[#allocation12] sm:$0xf] }
  0xf9   :  { %v3476_v31 = vpop.f32.mrf.mxu3  ;;  %v3482_v15 = vpop.f32.mrf.mxu2  ;;  %1020 = vmatpush.msra.mxu3 %v3191_v32 }
  0xfa   :  { %4456 = vst [vmem:[#allocation43_spill] sm:$0xff] %v3476_v31  ;;  %v3677_v31 = vld [vmem:[#allocation11 + $0xf8] sm:$0xff] }
  0xfb   :  { %4459 = vst [vmem:[#allocation46_spill] sm:$0xff] %v3482_v15  ;;  %1021 = vmatpush.msra.mxu3 %v3202_v35 }
  0xfc   :  { %4481 = vst [vmem:[#allocation66_spill] sm:$0xff] %v3677_v31 }
  0xfd   :  { %v3478_v10 = vpop.f32.mrf.mxu0  ;;  %v3480_v11 = vpop.f32.mrf.mxu1  ;;  %1022 = vmatpush.msra.mxu3 %v3218_v39 }
  0xfe   :  { %4457 = vst [vmem:[#allocation44_spill] sm:$0xff] %v3478_v10  ;;  %v3501_v10 = vld [vmem:[#allocation11 + $0x1c8] sm:$0xff] }
  0xff   :  { %4458 = vst [vmem:[#allocation45_spill] sm:$0xff] %v3480_v11  ;;  %v3499_v11 = vld [vmem:[#allocation11 + $0x1c0] sm:$0xff]  ;;  %979 = vmatpush.msra.mxu1 %v3501_v10  ;;  %1023 = vmatpush.msra.mxu3 %v3247_v49 }
 0x100   :  { %959 = vmatpush.msra.mxu0 %v3499_v11 }
 0x101   :  { %980 = vmatpush.msra.mxu1 %v3180_v26  ;;  %v3526_v26 = vperm.slane %v460_v22, 0  ;;  %1024 = vmatpush.msra.mxu3 %v3257_v54 }
 0x102   :  { %960 = vmatpush.msra.mxu0 %v3175_v23 }
 0x103   :  { %981 = vmatpush.msra.mxu1 %v3188_v30  ;;  %4467 = vst [vmem:[#allocation54_spill] sm:$0xff] %v3526_v26  ;;  %1025 = vmatpush.msra.mxu3 %v3284_v63  ;;  %v488_v32 = vadd.f32 %v487_v43, %v3526_v26 }
 0x104   :  { %v3484_v21 = vpop.f32.mrf.mxu3  ;;  %961 = vmatpush.msra.mxu0 %v3186_v29  ;;  %v3528_v29 = vperm.slane %v460_v22, 1 }
 0x105   :  { %4460 = vst [vmem:[#allocation47_spill] sm:$0xff] %v3484_v21  ;;  %982 = vmatpush.msra.mxu1 %v3211_v38  ;;  %1026 = vmatpush.msra.mxu3 %v3292_v3  ;;  %v491_v21 = vadd.f32 %v3446_v4, %v3526_v26  ;;  %v3685_v4 = vld [vmem:[#allocation11 + $0xd8] sm:$0xff] }
 0x106   :  { %962 = vmatpush.msra.mxu0 %v3209_v37  ;;  %4468 = vst [vmem:[#allocation55_spill] sm:$0xff] %v3528_v29  ;;  %v529_v35 = vadd.f32 %v528_v56, %v3528_v29  ;;  %v532_v15 = vadd.f32 %v3448_v17, %v3528_v29  ;;  %v3691_v29 = vld [vmem:[#allocation11 + $0xa0] sm:$0xff] }
 0x107   :  { %983 = vmatpush.msra.mxu1 %v3226_v42  ;;  %1027 = vmatpush.msra.mxu3 %v3315_v16 }
 0x108   :  { %v3486_v25 = vpop.f32.mrf.mxu0  ;;  %v3488_v33 = vpop.f32.mrf.mxu1  ;;  %963 = vmatpush.msra.mxu0 %v3224_v41 }
 0x109   :  { %4461 = vst [vmem:[#allocation48_spill] sm:$0xff] %v3486_v25  ;;  %984 = vmatpush.msra.mxu1 %v3243_v47  ;;  %1028 = vmatpush.msra.mxu3 %v3323_v20 }
 0x10a   :  { %4462 = vst [vmem:[#allocation49_spill] sm:$0xff] %v3488_v33  ;;  %v3506_v33 = vpop.f32.mrf.mxu2  ;;  %964 = vmatpush.msra.mxu0 %v3241_v46  ;;  %v3547_v46 = vperm.slane %v460_v22, 3 }
 0x10b   :  { %4463 = vst [vmem:[#allocation50_spill] sm:$0xff] %v3506_v33  ;;  %985 = vmatpush.msra.mxu1 %v3252_v52  ;;  %1029 = vmatpush.msra.mxu3 %v3347_v55 }
 0x10c   :  { %965 = vmatpush.msra.mxu0 %v3250_v51  ;;  %4471 = vst [vmem:[#allocation58_spill] sm:$0xff] %v3547_v46  ;;  %v611_v51 = vadd.f32 %v3444_v0, %v3547_v46 }
 0x10d   :  { %986 = vmatpush.msra.mxu1 %v3278_v61  ;;  %1030 = vmatpush.msra.mxu3 %v3359_v5 }
 0x10e   :  { %966 = vmatpush.msra.mxu0 %v3276_v60 }
 0x10f   :  { %v3511_v25 = vpop.f32.mrf.mxu3  ;;  %987 = vmatpush.msra.mxu1 %v3290_v2  ;;  %1031 = vmatpush.msra.mxu3 %v3388_v40 }
 0x110   :  { %4464 = vst [vmem:[#allocation51_spill] sm:$0xff] %v3511_v25  ;;  %v3518_v33 = vpop.f32.mrf.mxu0  ;;  %v3520_v23 = vpop.f32.mrf.mxu1  ;;  %967 = vmatpush.msra.mxu0 %v3288_v1  ;;  %v3669_v25 = vld [vmem:[#allocation11 + $0xf0] sm:$0xff] }
 0x111   :  { %4465 = vst [vmem:[#allocation52_spill] sm:$0xff] %v3518_v33  ;;  %988 = vmatpush.msra.mxu1 %v3309_v14  ;;  %1032 = vmatpush.msra.mxu3 %v3400_v7  ;;  %v3571_v14 = vperm.slane %v460_v22, 2  ;;  %v3665_v33 = vld [vmem:[#allocation11 + $0xe0] sm:$0xff] }
 0x112   :  { %4466 = vst [vmem:[#allocation53_spill] sm:$0xff] %v3520_v23  ;;  %v3533_v30 = vpop.f32.mrf.mxu2  ;;  %968 = vmatpush.msra.mxu0 %v3307_v13  ;;  %v4473_v13 = vld [vmem:[#allocation28_spill] sm:$0xff]  ;;  %v3661_v23 = vld [vmem:[#allocation11 + $0x118] sm:$0xff] }
 0x113   :  { %4469 = vst [vmem:[#allocation56_spill] sm:$0xff] %v3533_v30  ;;  %989 = vmatpush.msra.mxu1 %v3321_v19  ;;  %1033 = vmatpush.msra.mxu3 %v3412_v9  ;;  %v570_v19 = vadd.f32 %v3450_v24, %v3571_v14  ;;  %v3667_v30 = vld [vmem:[#allocation11 + $0xe8] sm:$0xff] }
 0x114   :  { %969 = vmatpush.msra.mxu0 %v3319_v18  ;;  %4474 = vst [vmem:[#allocation28_spill] sm:$0xff] %v3571_v14 }
 0x115   :  { %990 = vmatpush.msra.mxu1 %v3341_v50  ;;  %1238 = vmatpush.msrb.mxu3 %v3494_v8  ;;  %4477 = vst [vmem:[#allocation62_spill] sm:$0xff] %v3661_v23 }
 0x116   :  { %970 = vmatpush.msra.mxu0 %v3339_v48  ;;  %4478 = vst [vmem:[#allocation63_spill] sm:$0xff] %v3665_v33 }
 0x117   :  { %v3540_v37 = vpop.f32.mrf.mxu3  ;;  %991 = vmatpush.msra.mxu1 %v3355_v59  ;;  %4479 = vst [vmem:[#allocation64_spill] sm:$0xff] %v3667_v30 }
 0x118   :  { %4470 = vst [vmem:[#allocation57_spill] sm:$0xff] %v3540_v37  ;;  %v756_v38 = vpop.f32.mrf.mxu0  ;;  %v776_v39 = vpop.f32.mrf.mxu1  ;;  %971 = vmatpush.msra.mxu0 %v3353_v58  ;;  %v3657_v37 = vld [vmem:[#allocation11 + $0x110] sm:$0xff] }
 0x119   :  { %v819_v41 = vadd.f32 %v756_v38, %v488_v32  ;;  %v820_v42 = vadd.f32 %v776_v39, %v529_v35  ;;  %992 = vmatpush.msra.mxu1 %v3380_v28  ;;  %4476 = vst [vmem:[#allocation61_spill] sm:$0xff] %v3657_v37 }
 0x11a   :  { %v3558_v52 = vpop.f32.mrf.mxu2  ;;  %972 = vmatpush.msra.mxu0 %v3378_v27  ;;  %4480 = vst [vmem:[#allocation65_spill] sm:$0xff] %v3669_v25 }
 0x11b   :  { %v2617_v47 = vmul.f32 -1.442695, %v819_v41  ;;  %v2618_v49 = vmul.f32 -1.442695, %v820_v42  ;;  %4472 = vst [vmem:[#allocation59_spill] sm:$0xff] %v3558_v52  ;;  %993 = vmatpush.msra.mxu1 %v4473_v13 }
 0x11c   :  { %973 = vmatpush.msra.mxu0 %v3392_v44 }
 0x11d   :  { %2655 = vpow2.f32 %v2617_v47  ;;  %1198 = vmatpush.msrb.mxu1 %v3492_v12 }
 0x11e   :  { %2657 = vpow2.f32 %v2618_v49  ;;  %1178 = vmatpush.msrb.mxu0 %v3490_v36 }
 0x11f   :  { %v816_v54 = vpop.f32.mrf.mxu3  ;;  %1199 = vmatpush.msrb.mxu1 %v3501_v10 }
 0x120   :  { %v822_v60 = vadd.f32 %v816_v54, %v611_v51  ;;  %1179 = vmatpush.msrb.mxu0 %v3499_v11 }
 0x122   :  { %v2619_v61 = vmul.f32 -1.442695, %v822_v60  ;;  %v796_v16 = vpop.f32.mrf.mxu2 }
 0x123   :  { %v2656_v63 = vpop.eup %2655  ;;  %v821_v56 = vadd.f32 %v796_v16, %v570_v19  ;;  %v667_v16 = vld [vmem:[#allocation15] sm:$0xff] }
 0x124   :  { %v2658_v1 = vpop.eup %2657  ;;  %v826_v2 = vadd.f32 1.0, %v2656_v63  ;;  %2659 = vpow2.f32 %v2619_v61 }
 0x125   :  { %v845_v3 = vadd.f32 1.0, %v2658_v1 }
 0x126   :  { %2661 = vrcp.f32 %v826_v2  ;;  %v838_v39 = vand.u32 2147483648, %v826_v2  ;;  %v836_v47 = vand.u32 2147483647, %v826_v2  ;;  %vm832_vm2 = vweird.f32 %v826_v2 }
 0x127   :  { %2663 = vrcp.f32 %v845_v3  ;;  %v857_v41 = vand.u32 2147483648, %v845_v3  ;;  %v855_v51 = vand.u32 2147483647, %v845_v3  ;;  %vm851_vm3 = vweird.f32 %v845_v3 }
 0x128   :  { %v839_v60 = vor.u32 1.1754944e-38, %v838_v39  ;;  %vm837_vm6 = vcmp.eq.f32.partialorder %v836_v47, 8.507059e+37 }
 0x129   :  { %v858_v1 = vor.u32 1.1754944e-38, %v857_v41  ;;  %vm856_vm7 = vcmp.eq.f32.partialorder %v855_v51, 8.507059e+37 }
 0x12a   :  { %v2660_v18 = vpop.eup %2659 }
 0x12b   :  { %v865_v20 = vadd.f32 1.0, %v2660_v18 }
 0x12c   :  { %v2662_v43 = vpop.eup %2661 }
 0x12d   :  { %v2664_v0 = vpop.eup %2663  ;;  %v828_v22 = vmul.f32 %v2662_v43, %v826_v2  ;;  %2665 = vrcp.f32 %v865_v20  ;;  %vm833_vm0 = vweird.f32 %v2662_v43  ;;  %v877_v39 = vand.u32 2147483648, %v865_v20 }
 0x12e   :  { %v847_v32 = vmul.f32 %v2664_v0, %v845_v3  ;;  %2667 = vtanh.f32 %v821_v56  ;;  %vm852_vm1 = vweird.f32 %v2664_v0  ;;  %vm834_vm4 = vmor %vm832_vm2, %vm833_vm0  ;;  %vm871_vm9 = vweird.f32 %v865_v20 }
 0x12f   :  { %v829_v35 = vsub.f32 1.0, %v828_v22  ;;  %vm853_vm5 = vmor %vm851_vm3, %vm852_vm1  ;;  %v875_v41 = vand.u32 2147483647, %v865_v20  ;;  %v878_v47 = vor.u32 1.1754944e-38, %v877_v39  ;;  %v3637_v39 = vld [vmem:[#allocation11 + $0x158] sm:$0xff] }
 0x130   :  { %v848_v38 = vsub.f32 1.0, %v847_v32 }
 0x131   :  { %v830_v42 = vmul.f32 %v2662_v43, %v829_v35  ;;  %vm876_vm11 = vcmp.eq.f32.partialorder %v875_v41, 8.507059e+37  ;;  %v3641_v41 = vld [vmem:[#allocation11 + $0x120] sm:$0xff] }
 0x132   :  { %v849_v49 = vmul.f32 %v2664_v0, %v848_v38 }
 0x133   :  { %v2666_v54 = vpop.eup %2665  ;;  %v831_v24 = vadd.f32 %v2662_v43, %v830_v42 }
 0x134   :  { %v850_v61 = vadd.f32 %v2664_v0, %v849_v49  ;;  %v867_v63 = vmul.f32 %v2666_v54, %v865_v20  ;;  %v2668_v19 = vpop.eup %2667  ;;  %vm872_vm8 = vweird.f32 %v2666_v54  ;;  %v3593_v20 = vld [vmem:[#allocation11 + $0x1a0] sm:$0xff] }
 0x135   :  { %v835_v18 = vsel %vm834_vm4, %v2662_v43, %v831_v24  ;;  %vm873_vm10 = vmor %vm871_vm9, %vm872_vm8  ;;  %v3587_v24 = vld [vmem:[#allocation11 + $0x1d0] sm:$0xff]  ;;  %1180 = vmatpush.msrb.mxu0 %v3593_v20 }
 0x136   :  { %v840_v56 = vsel %vm837_vm6, %v839_v60, %v835_v18  ;;  %v854_v22 = vsel %vm853_vm5, %v2664_v0, %v850_v61  ;;  %v868_v32 = vsub.f32 1.0, %v867_v63  ;;  %v3589_v60 = vld [vmem:[#allocation11 + $0x1d8] sm:$0xff]  ;;  %v3597_v61 = vld [vmem:[#allocation11 + $0x1b0] sm:$0xff] }
 0x137   :  { %v859_v35 = vsel %vm856_vm7, %v858_v1, %v854_v22  ;;  %v882_v38 = vmul.f32 %v2668_v19, %v840_v56  ;;  %1239 = vmatpush.msrb.mxu3 %v3589_v60  ;;  %v3601_v63 = vld [vmem:[#allocation11 + $0x1b8] sm:$0xff]  ;;  %v3605_v1 = vld [vmem:[#allocation11 + $0x180] sm:$0xff]  ;;  %v3609_v18 = vld [vmem:[#allocation11 + $0x190] sm:$0xff] }
 0x138   :  { %v881_v52 = vmul.f32 %v859_v35, %v667_v16  ;;  %v869_v42 = vmul.f32 %v2666_v54, %v868_v32  ;;  %v3607_v16 = vld [vmem:[#allocation11 + $0x188] sm:$0xff]  ;;  %1181 = vmatpush.msrb.mxu0 %v3605_v1  ;;  %v3613_v19 = vld [vmem:[#allocation11 + $0x198] sm:$0xff]  ;;  %v3617_v56 = vld [vmem:[#allocation11 + $0x160] sm:$0xff] }
 0x139   :  { %1240 = vmatpush.msrb.mxu3 %v3601_v63  ;;  %v3619_v22 = vld [vmem:[#allocation11 + $0x168] sm:$0xff]  ;;  %v3621_v32 = vld [vmem:[#allocation11 + $0x170] sm:$0xff]  ;;  %v3625_v35 = vld [vmem:[#allocation11 + $0x178] sm:$0xff] }
 0x13a   :  { %v3581_v2 = vadd.f32 %v882_v38, %v881_v52  ;;  %v870_v3 = vadd.f32 %v2666_v54, %v869_v42  ;;  %v3584_v52 = vld [vmem:[#allocation11 + $0x1f0] sm:$0xff]  ;;  %1182 = vmatpush.msrb.mxu0 %v3617_v56  ;;  %v3629_v38 = vld [vmem:[#allocation11 + $0x140] sm:$0xff]  ;;  %v3631_v42 = vld [vmem:[#allocation11 + $0x148] sm:$0xff] }
 0x13b   :  { %1218 = vmatpush.msrb.mxu2 %v3584_v52  ;;  %1241 = vmatpush.msrb.mxu3 %v3613_v19 }
 0x13c   :  { %4475 = vst [vmem:[#allocation60_spill] sm:$0xff] %v3581_v2  ;;  %2669 = vtanh.f32 %v3581_v2  ;;  %v874_v43 = vsel %vm873_vm10, %v2666_v54, %v870_v3  ;;  %v3595_v54 = vld [vmem:[#allocation11 + $0x1a8] sm:$0xff]  ;;  %v3633_v3 = vld [vmem:[#allocation11 + $0x150] sm:$0xff]  ;;  %1183 = vmatpush.msrb.mxu0 %v3629_v38 }
 0x13d   :  { %v879_v49 = vsel %vm876_vm11, %v878_v47, %v874_v43  ;;  %1219 = vmatpush.msrb.mxu2 %v3587_v24  ;;  %1200 = vmatpush.msrb.mxu1 %v3595_v54  ;;  %v3643_v43 = vld [vmem:[#allocation11 + $0x128] sm:$0xff]  ;;  %v3645_v47 = vld [vmem:[#allocation11 + $0x130] sm:$0xff] }
 0x13e   :  { %1242 = vmatpush.msrb.mxu3 %v3625_v35  ;;  %1184 = vmatpush.msrb.mxu0 %v3641_v41 }
 0x13f   :  { %1220 = vmatpush.msrb.mxu2 %v3597_v61  ;;  %1201 = vmatpush.msrb.mxu1 %v3607_v16 }
 0x140   :  { %1243 = vmatpush.msrb.mxu3 %v3637_v39 }
 0x141   :  { %1221 = vmatpush.msrb.mxu2 %v3609_v18  ;;  %1202 = vmatpush.msrb.mxu1 %v3619_v22 }
 0x142   :  { %v2670_v0 = vpop.eup %2669 }
 0x143   :  { %v885_v51 = vmul.f32 %v2670_v0, %v879_v49  ;;  %1222 = vmatpush.msrb.mxu2 %v3621_v32  ;;  %1203 = vmatpush.msrb.mxu1 %v3631_v42  ;;  %v3649_v0 = vld [vmem:[#allocation11 + $0x138] sm:$0xff]  ;;  %v3653_v49 = vld [vmem:[#allocation11 + $0x100] sm:$0xff] }
 0x144   :  { %1244 = vmatpush.msrb.mxu3 %v3649_v0  ;;  %1185 = vmatpush.msrb.mxu0 %v3653_v49 }
 0x145   :  { %974 = vmatmul.f32.vlgmr.msra.gmra.mxu0 %v885_v51  ;;  %886 = vst [vmem:[#allocation17] sm:$0xff] %v885_v51  ;;  %994 = vmatmul.f32.vlgmr.msra.gmra.mxu1 %v885_v51 }
 0x146   :  { %1014 = vmatmul.f32.vlgmr.msra.gmra.mxu2 %v885_v51  ;;  %1034 = vmatmul.f32.vlgmr.msra.gmra.mxu3 %v885_v51  ;;  %v3655_v51 = vld [vmem:[#allocation11 + $0x108] sm:$0xff] }
 0x147   :  { %1223 = vmatpush.msrb.mxu2 %v3633_v3  ;;  %1204 = vmatpush.msrb.mxu1 %v3643_v43 }
 0x148   :  { %1245 = vmatpush.msrb.mxu3 %v3661_v23  ;;  %1186 = vmatpush.msrb.mxu0 %v3665_v33  ;;  %v3681_v23 = vld [vmem:[#allocation11 + $0xc0] sm:$0xff] }
 0x149   :  { %1224 = vmatpush.msrb.mxu2 %v3645_v47  ;;  %1205 = vmatpush.msrb.mxu1 %v3655_v51 }
 0x14a   :  { %1246 = vmatpush.msrb.mxu3 %v3677_v31  ;;  %1187 = vmatpush.msrb.mxu0 %v3681_v23  ;;  %v3695_v31 = vld [vmem:[#allocation11 + $0xb8] sm:$0xff] }
 0x14b   :  { %1225 = vmatpush.msrb.mxu2 %v3657_v37  ;;  %1206 = vmatpush.msrb.mxu1 %v3667_v30  ;;  %v3683_v37 = vld [vmem:[#allocation11 + $0xc8] sm:$0xff] }
 0x14c   :  { %1247 = vmatpush.msrb.mxu3 %v3685_v4  ;;  %1188 = vmatpush.msrb.mxu0 %v3691_v29 }
 0x14d   :  { %1226 = vmatpush.msrb.mxu2 %v3669_v25  ;;  %1207 = vmatpush.msrb.mxu1 %v3683_v37  ;;  %v3693_v25 = vld [vmem:[#allocation11 + $0xa8] sm:$0xff] }
 0x14e   :  { %1248 = vmatpush.msrb.mxu3 %v3695_v31 }
 0x14f   :  { %1227 = vmatpush.msrb.mxu2 %v3349_v57  ;;  %1208 = vmatpush.msrb.mxu1 %v3693_v25  ;;  %v3703_v57 = vld [vmem:[#allocation11 + $0x88] sm:$0xff] }
 0x150   :  { %4482 = vst [vmem:[#allocation67_spill] sm:$0xff] %v3703_v57  ;;  %1249 = vmatpush.msrb.mxu3 %v3347_v55 }
 0x151   :  { %1228 = vmatpush.msrb.mxu2 %v3357_v62  ;;  %1209 = vmatpush.msrb.mxu1 %v3703_v57 }
 0x152   :  { %1250 = vmatpush.msrb.mxu3 %v3359_v5 }
 0x153   :  { %1229 = vmatpush.msrb.mxu2 %v3365_v6  ;;  %1210 = vmatpush.msrb.mxu1 %v3341_v50  ;;  %v4484_v6 = vld [vmem:[#allocation30_spill] sm:$0xff] }
 0x154   :  { %1251 = vmatpush.msrb.mxu3 %v3388_v40 }
 0x155   :  { %1230 = vmatpush.msrb.mxu2 %v3386_v34  ;;  %1211 = vmatpush.msrb.mxu1 %v3355_v59  ;;  %v4485_v59 = vld [vmem:[#allocation31_spill] sm:$0xff] }
 0x156   :  { %1252 = vmatpush.msrb.mxu3 %v3400_v7 }
 0x157   :  { %1212 = vmatpush.msrb.mxu1 %v3380_v28  ;;  %v4486_v28 = vld [vmem:[#allocation34_spill] sm:$0xff] }
 0x158   :  { %1253 = vmatpush.msrb.mxu3 %v3412_v9  ;;  %v573_v34 = vadd.f32 %v4486_v28, %v3571_v14 }
 0x159   :  { %1213 = vmatpush.msrb.mxu1 %v4473_v13 }
 0x15a   :  { %1458 = vmatpush.msra.mxu3 %v3494_v8 }
 0x15b   :  { %1418 = vmatpush.msra.mxu1 %v3492_v12 }
 0x15c   :  { %1459 = vmatpush.msra.mxu3 %v3589_v60 }
 0x15d   :  { %1419 = vmatpush.msra.mxu1 %v3501_v10 }
 0x15e   :  { %1460 = vmatpush.msra.mxu3 %v3601_v63 }
 0x15f   :  { %1420 = vmatpush.msra.mxu1 %v3595_v54 }
 0x160   :  { %1461 = vmatpush.msra.mxu3 %v3613_v19 }
 0x161   :  { %1421 = vmatpush.msra.mxu1 %v3607_v16 }
 0x162   :  { %1462 = vmatpush.msra.mxu3 %v3625_v35 }
 0x163   :  { %1422 = vmatpush.msra.mxu1 %v3619_v22 }
 0x164   :  { %1463 = vmatpush.msra.mxu3 %v3637_v39 }
 0x165   :  { %1423 = vmatpush.msra.mxu1 %v3631_v42 }
 0x166   :  { %1464 = vmatpush.msra.mxu3 %v3649_v0 }
 0x167   :  { %1424 = vmatpush.msra.mxu1 %v3643_v43 }
 0x169   :  { %1425 = vmatpush.msra.mxu1 %v3655_v51 }
 0x1c2   :  { %v975_v53 = vpop.f32.mrf.mxu0  ;;  %v995_v2 = vpop.f32.mrf.mxu1 }
 0x1c3   :  { %v1038_v26 = vadd.f32 %v975_v53, %v491_v21  ;;  %v1039_v17 = vadd.f32 %v995_v2, %v532_v15  ;;  %v3701_v53 = vld [vmem:[#allocation11 + $0x80] sm:$0xff]  ;;  %v614_v15 = vadd.f32 %v3452_v45, %v3547_v46 }
 0x1c4   :  { %1189 = vmatpush.msrb.mxu0 %v3701_v53 }
 0x1c5   :  { %v2620_v30 = vmul.f32 -1.442695, %v1038_v26  ;;  %v2621_v33 = vmul.f32 -1.442695, %v1039_v17 }
 0x1c6   :  { %1190 = vmatpush.msrb.mxu0 %v3339_v48 }
 0x1c7   :  { %2671 = vpow2.f32 %v2620_v30 }
 0x1c8   :  { %2673 = vpow2.f32 %v2621_v33  ;;  %1191 = vmatpush.msrb.mxu0 %v3353_v58  ;;  %v4483_v33 = vld [vmem:[#allocation29_spill] sm:$0xff] }
 0x1c9   :  { %v1035_v62 = vpop.f32.mrf.mxu3  ;;  %1231 = vmatpush.msrb.mxu2 %v4483_v33  ;;  %v1015_v5 = vpop.f32.mrf.mxu2 }
 0x1ca   :  { %v1041_v21 = vadd.f32 %v1035_v62, %v614_v15  ;;  %1192 = vmatpush.msrb.mxu0 %v3378_v27  ;;  %v1040_v7 = vadd.f32 %v1015_v5, %v573_v34  ;;  %v4487_v5 = vld [vmem:[#allocation61_spill] sm:$0xff] }
 0x1cb   :  { %1232 = vmatpush.msrb.mxu2 %v4484_v6 }
 0x1cc   :  { %v2622_v45 = vmul.f32 -1.442695, %v1041_v21  ;;  %1193 = vmatpush.msrb.mxu0 %v3392_v44 }
 0x1cd   :  { %v2672_v55 = vpop.eup %2671  ;;  %1233 = vmatpush.msrb.mxu2 %v4485_v59 }
 0x1ce   :  { %v2674_v48 = vpop.eup %2673  ;;  %v3721_v50 = vadd.f32 1.0, %v2672_v55  ;;  %2675 = vpow2.f32 %v2622_v45  ;;  %1398 = vmatpush.msra.mxu0 %v3490_v36 }
 0x1cf   :  { %v3725_v58 = vadd.f32 1.0, %v2674_v48  ;;  %1438 = vmatpush.msra.mxu2 %v3584_v52 }
 0x1d0   :  { %2677 = vrcp.f32 %v3721_v50  ;;  %1399 = vmatpush.msra.mxu0 %v3499_v11  ;;  %v1057_v36 = vand.u32 2147483648, %v3721_v50  ;;  %v1055_v13 = vand.u32 2147483647, %v3721_v50  ;;  %vm1051_vm14 = vweird.f32 %v3721_v50 }
 0x1d1   :  { %2679 = vrcp.f32 %v3725_v58  ;;  %1439 = vmatpush.msra.mxu2 %v3587_v24  ;;  %v1076_v26 = vand.u32 2147483648, %v3725_v58  ;;  %v1074_v17 = vand.u32 2147483647, %v3725_v58  ;;  %vm1070_vm15 = vweird.f32 %v3725_v58 }
 0x1d2   :  { %1400 = vmatpush.msra.mxu0 %v3593_v20  ;;  %v1058_v21 = vor.u32 1.1754944e-38, %v1057_v36  ;;  %vm1056_vm2 = vcmp.eq.f32.partialorder %v1055_v13, 8.507059e+37  ;;  %v4493_v36 = vld [vmem:[#allocation66_spill] sm:$0xff] }
 0x1d3   :  { %1440 = vmatpush.msra.mxu2 %v3597_v61  ;;  %v1077_v55 = vor.u32 1.1754944e-38, %v1076_v26  ;;  %vm1075_vm3 = vcmp.eq.f32.partialorder %v1074_v17, 8.507059e+37 }
 0x1d4   :  { %v2676_v27 = vpop.eup %2675  ;;  %1401 = vmatpush.msra.mxu0 %v3605_v1 }
 0x1d5   :  { %v3743_v40 = vadd.f32 1.0, %v2676_v27  ;;  %1441 = vmatpush.msra.mxu2 %v3609_v18  ;;  %v4488_v27 = vld [vmem:[#allocation62_spill] sm:$0xff] }
 0x1d6   :  { %v2678_v44 = vpop.eup %2677  ;;  %1402 = vmatpush.msra.mxu0 %v3617_v56  ;;  %1465 = vmatpush.msra.mxu3 %v4488_v27 }
 0x1d7   :  { %v2680_v8 = vpop.eup %2679  ;;  %v1047_v9 = vmul.f32 %v2678_v44, %v3721_v50  ;;  %2681 = vrcp.f32 %v3743_v40  ;;  %1442 = vmatpush.msra.mxu2 %v3621_v32  ;;  %vm1052_vm12 = vweird.f32 %v2678_v44  ;;  %vm1090_vm5 = vweird.f32 %v3743_v40 }
 0x1d8   :  { %v1066_v12 = vmul.f32 %v2680_v8, %v3725_v58  ;;  %2683 = vtanh.f32 %v1040_v7  ;;  %1403 = vmatpush.msra.mxu0 %v3629_v38  ;;  %vm1071_vm13 = vweird.f32 %v2680_v8  ;;  %vm1053_vm0 = vmor %vm1051_vm14, %vm1052_vm12  ;;  %v4489_v7 = vld [vmem:[#allocation63_spill] sm:$0xff]  ;;  %1466 = vmatpush.msra.mxu3 %v4493_v36  ;;  %v1094_v13 = vand.u32 2147483647, %v3743_v40 }
 0x1d9   :  { %v1048_v10 = vsub.f32 1.0, %v1047_v9  ;;  %1443 = vmatpush.msra.mxu2 %v3633_v3  ;;  %vm1072_vm1 = vmor %vm1070_vm15, %vm1071_vm13  ;;  %v4490_v9 = vld [vmem:[#allocation64_spill] sm:$0xff] }
 0x1da   :  { %v1067_v11 = vsub.f32 1.0, %v1066_v12  ;;  %1404 = vmatpush.msra.mxu0 %v3641_v41  ;;  %1426 = vmatpush.msra.mxu1 %v4490_v9  ;;  %vm1095_vm7 = vcmp.eq.f32.partialorder %v1094_v13, 8.507059e+37  ;;  %v3814_v13 = vld [vmem:[#allocation11 + $0x60] sm:$0xff] }
 0x1db   :  { %v1049_v30 = vmul.f32 %v2678_v44, %v1048_v10  ;;  %1444 = vmatpush.msra.mxu2 %v3645_v47  ;;  %1467 = vmatpush.msra.mxu3 %v3685_v4  ;;  %4499 = vst [vmem:[#allocation30_spill] sm:$0xff] %v3814_v13 }
 0x1dc   :  { %v1068_v2 = vmul.f32 %v2680_v8, %v1067_v11  ;;  %1405 = vmatpush.msra.mxu0 %v3653_v49  ;;  %v4492_v11 = vld [vmem:[#allocation65_spill] sm:$0xff]  ;;  %1427 = vmatpush.msra.mxu1 %v3683_v37 }
 0x1dd   :  { %v2682_v15 = vpop.eup %2681  ;;  %v1050_v62 = vadd.f32 %v2678_v44, %v1049_v30  ;;  %1445 = vmatpush.msra.mxu2 %v4487_v5  ;;  %v1096_v30 = vand.u32 2147483648, %v3743_v40  ;;  %1468 = vmatpush.msra.mxu3 %v3695_v31 }
 0x1de   :  { %v1069_v45 = vadd.f32 %v2680_v8, %v1068_v2  ;;  %v1086_v33 = vmul.f32 %v2682_v15, %v3743_v40  ;;  %v2684_v50 = vpop.eup %2683  ;;  %1406 = vmatpush.msra.mxu0 %v4489_v7  ;;  %vm1091_vm4 = vweird.f32 %v2682_v15  ;;  %1428 = vmatpush.msra.mxu1 %v3693_v25  ;;  %v4496_v40 = vld [vmem:[#allocation55_spill] sm:$0xff] }
 0x1df   :  { %v1054_v48 = vsel %vm1053_vm0, %v2678_v44, %v1050_v62  ;;  %v4491_v44 = vld [vmem:[#allocation60_spill] sm:$0xff]  ;;  %1446 = vmatpush.msra.mxu2 %v4492_v11  ;;  %vm1092_vm6 = vmor %vm1090_vm5, %vm1091_vm4  ;;  %v1097_v17 = vor.u32 1.1754944e-38, %v1096_v30  ;;  %v3812_v30 = vld [vmem:[#allocation11 + $0x98] sm:$0xff] }
 0x1e0   :  { %v1059_v6 = vsel %vm1056_vm2, %v1058_v21, %v1054_v48  ;;  %v1073_v58 = vsel %vm1072_vm1, %v2680_v8, %v1069_v45  ;;  %v1087_v59 = vsub.f32 1.0, %v1086_v33  ;;  %1407 = vmatpush.msra.mxu0 %v3681_v23  ;;  %1429 = vmatpush.msra.mxu1 %v3703_v57  ;;  %v4494_v33 = vld [vmem:[#allocation54_spill] sm:$0xff]  ;;  %4498 = vst [vmem:[#allocation29_spill] sm:$0xff] %v3812_v30 }
 0x1e1   :  { %v1078_v28 = vsel %vm1075_vm3, %v1077_v55, %v1073_v58  ;;  %v1101_v34 = vmul.f32 %v2684_v50, %v1059_v6  ;;  %v4495_v55 = vld [vmem:[#allocation32_spill] sm:$0xff]  ;;  %v4497_v50 = vld [vmem:[#allocation33_spill] sm:$0xff]  ;;  %1469 = vmatpush.msra.mxu3 %v3812_v30 }
 0x1e2   :  { %v1100_v12 = vmul.f32 %v1078_v28, %v4491_v44  ;;  %v1088_v10 = vmul.f32 %v2682_v15, %v1087_v59  ;;  %1408 = vmatpush.msra.mxu0 %v3691_v29  ;;  %v494_v48 = vadd.f32 %v4495_v55, %v4494_v33  ;;  %v535_v6 = vadd.f32 %v4497_v50, %v4496_v40  ;;  %v3804_v28 = vld [vmem:[#allocation11 + $0xd0] sm:$0xff]  ;;  %v3828_v55 = vld [vmem:[#allocation11 + $0x40] sm:$0xff] }
 0x1e3   :  { %1447 = vmatpush.msra.mxu2 %v3804_v28  ;;  %v3807_v44 = vld [vmem:[#allocation11 + $0xb0] sm:$0xff]  ;;  %4503 = vst [vmem:[#allocation61_spill] sm:$0xff] %v3828_v55 }
 0x1e4   :  { %v3788_v8 = vadd.f32 %v1101_v34, %v1100_v12  ;;  %v1089_v26 = vadd.f32 %v2682_v15, %v1088_v10  ;;  %1409 = vmatpush.msra.mxu0 %v3701_v53  ;;  %v3832_v50 = vld [vmem:[#allocation11 + $0x50] sm:$0xff] }
 0x1e5   :  { %1448 = vmatpush.msra.mxu2 %v3807_v44 }
 0x1e6   :  { %2685 = vtanh.f32 %v3788_v8  ;;  %v1093_v2 = vsel %vm1092_vm6, %v2682_v15, %v1089_v26  ;;  %v3810_v26 = vld [vmem:[#allocation11 + $0x90] sm:$0xff]  ;;  %1410 = vmatpush.msra.mxu0 %v3814_v13 }
 0x1e7   :  { %v1098_v21 = vsel %vm1095_vm7, %v1097_v17, %v1093_v2  ;;  %1449 = vmatpush.msra.mxu2 %v3810_v26  ;;  %v3818_v2 = vld [vmem:[#allocation11 + $0x68] sm:$0xff]  ;;  %v3820_v17 = vld [vmem:[#allocation11 + $0x70] sm:$0xff] }
 0x1e8   :  { %4500 = vst [vmem:[#allocation31_spill] sm:$0xff] %v3818_v2  ;;  %1430 = vmatpush.msra.mxu1 %v3818_v2  ;;  %1411 = vmatpush.msra.mxu0 %v3828_v55 }
 0x1e9   :  { %1450 = vmatpush.msra.mxu2 %v3820_v17 }
 0x1eb   :  { %1451 = vmatpush.msra.mxu2 %v3832_v50 }
 0x1ec   :  { %v2686_v62 = vpop.eup %2685 }
 0x1ed   :  { %v1104_v45 = vmul.f32 %v2686_v62, %v1098_v21  ;;  %v3822_v62 = vld [vmem:[#allocation11 + $0x78] sm:$0xff] }
 0x1ee   :  { %4501 = vst [vmem:[#allocation34_spill] sm:$0xff] %v3822_v62  ;;  %v4502_v21 = vld [vmem:[#allocation35_spill] sm:$0xff]  ;;  %1470 = vmatpush.msra.mxu3 %v3822_v62  ;;  %v3852_v62 = vld [vmem:[#allocation11 + $0x8] sm:$0xff] }
 0x1ef   :  { %1194 = vmatmul.f32.vlgmr.msrb.gmra.mxu0 %v1104_v45  ;;  %1106 = vst [vmem:[#allocation17 + $0x8] sm:$0xff] %v1104_v45  ;;  %1214 = vmatmul.f32.vlgmr.msrb.gmra.mxu1 %v1104_v45 }
 0x1f0   :  { %1234 = vmatmul.f32.vlgmr.msrb.gmra.mxu2 %v1104_v45  ;;  %1254 = vmatmul.f32.vlgmr.msrb.gmra.mxu3 %v1104_v45  ;;  %v617_v45 = vadd.f32 %v4502_v21, %v3547_v46  ;;  %v3850_v21 = vld [vmem:[#allocation11] sm:$0xff]  ;;  %4510 = vst [vmem:[#allocation32_spill] sm:$0xff] %v3852_v62 }
 0x1f1   :  { %4509 = vst [vmem:[#allocation66_spill] sm:$0xff] %v3850_v21 }
 0x26c   :  { %v1195_v58 = vpop.f32.mrf.mxu0  ;;  %v1215_v59 = vpop.f32.mrf.mxu1 }
 0x26d   :  { %v1258_v15 = vadd.f32 %v1195_v58, %v494_v48  ;;  %v1259_v34 = vadd.f32 %v1215_v59, %v535_v6  ;;  %v3830_v48 = vld [vmem:[#allocation11 + $0x48] sm:$0xff]  ;;  %v3836_v58 = vld [vmem:[#allocation11 + $0x58] sm:$0xff]  ;;  %v3838_v59 = vld [vmem:[#allocation11 + $0x20] sm:$0xff] }
 0x26e   :  { %4504 = vst [vmem:[#allocation62_spill] sm:$0xff] %v3830_v48  ;;  %1431 = vmatpush.msra.mxu1 %v3830_v48  ;;  %1471 = vmatpush.msra.mxu3 %v3836_v58 }
 0x26f   :  { %v2623_v12 = vmul.f32 -1.442695, %v1258_v15  ;;  %v2624_v10 = vmul.f32 -1.442695, %v1259_v34  ;;  %4505 = vst [vmem:[#allocation63_spill] sm:$0xff] %v3836_v58  ;;  %v3840_v15 = vld [vmem:[#allocation11 + $0x28] sm:$0xff]  ;;  %1412 = vmatpush.msra.mxu0 %v3838_v59 }
 0x270   :  { %4506 = vst [vmem:[#allocation64_spill] sm:$0xff] %v3838_v59  ;;  %1432 = vmatpush.msra.mxu1 %v3840_v15 }
 0x271   :  { %2687 = vpow2.f32 %v2623_v12  ;;  %4507 = vst [vmem:[#allocation60_spill] sm:$0xff] %v3840_v15  ;;  %v3844_v12 = vld [vmem:[#allocation11 + $0x30] sm:$0xff]  ;;  %1413 = vmatpush.msra.mxu0 %v3850_v21 }
 0x272   :  { %2689 = vpow2.f32 %v2624_v10  ;;  %v3846_v10 = vld [vmem:[#allocation11 + $0x38] sm:$0xff]  ;;  %1452 = vmatpush.msra.mxu2 %v3844_v12  ;;  %1433 = vmatpush.msra.mxu1 %v3852_v62 }
 0x273   :  { %v1255_v6 = vpop.f32.mrf.mxu3  ;;  %4508 = vst [vmem:[#allocation65_spill] sm:$0xff] %v3846_v10  ;;  %1472 = vmatpush.msra.mxu3 %v3846_v10  ;;  %v1235_v15 = vpop.f32.mrf.mxu2 }
 0x274   :  { %v1261_v34 = vadd.f32 %v1255_v6, %v617_v45  ;;  %v3856_v45 = vld [vmem:[#allocation11 + $0x10] sm:$0xff]  ;;  %v3858_v6 = vld [vmem:[#allocation11 + $0x18] sm:$0xff] }
 0x275   :  { %4511 = vst [vmem:[#allocation33_spill] sm:$0xff] %v3858_v6  ;;  %1453 = vmatpush.msra.mxu2 %v3856_v45  ;;  %1473 = vmatpush.msra.mxu3 %v3858_v6 }
 0x276   :  { %v2625_v2 = vmul.f32 -1.442695, %v1261_v34 }
 0x277   :  { %v2688_v48 = vpop.eup %2687  ;;  %1658 = vmatpush.msrb.mxu2 %v3584_v52 }
 0x278   :  { %v2690_v55 = vpop.eup %2689  ;;  %v1265_v58 = vadd.f32 1.0, %v2688_v48  ;;  %2691 = vpow2.f32 %v2625_v2  ;;  %v4512_v48 = vld [vmem:[#allocation38_spill] sm:$0xff] }
 0x279   :  { %v1284_v34 = vadd.f32 1.0, %v2690_v55  ;;  %1659 = vmatpush.msrb.mxu2 %v3587_v24  ;;  %v576_v2 = vadd.f32 %v4512_v48, %v3571_v14 }
 0x27a   :  { %2693 = vrcp.f32 %v1265_v58  ;;  %v1277_v30 = vand.u32 2147483648, %v1265_v58  ;;  %vm1271_vm10 = vweird.f32 %v1265_v58 }
 0x27b   :  { %2695 = vrcp.f32 %v1284_v34  ;;  %1660 = vmatpush.msrb.mxu2 %v3597_v61  ;;  %v1260_v55 = vadd.f32 %v1235_v15, %v576_v2  ;;  %v1296_v48 = vand.u32 2147483648, %v1284_v34  ;;  %v1275_v61 = vand.u32 2147483647, %v1265_v58 }
 0x27c   :  { %v1294_v15 = vand.u32 2147483647, %v1284_v34  ;;  %vm1290_vm11 = vweird.f32 %v1284_v34 }
 0x27d   :  { %1661 = vmatpush.msrb.mxu2 %v3609_v18  ;;  %vm1276_vm14 = vcmp.eq.f32.partialorder %v1275_v61, 8.507059e+37  ;;  %v3890_v61 = vld [vmem:[#allocation11 + $0x1e8] sm:$0xff] }
 0x27e   :  { %v2692_v10 = vpop.eup %2691  ;;  %vm1295_vm15 = vcmp.eq.f32.partialorder %v1294_v15, 8.507059e+37  ;;  %1638 = vmatpush.msrb.mxu1 %v3890_v61  ;;  %v3897_v15 = vld [vmem:[#allocation11 + $0x1c0] sm:$0xff] }
 0x27f   :  { %v1304_v21 = vadd.f32 1.0, %v2692_v10  ;;  %1662 = vmatpush.msrb.mxu2 %v3621_v32  ;;  %v1278_v32 = vor.u32 1.1754944e-38, %v1277_v30 }
 0x280   :  { %v2694_v62 = vpop.eup %2693 }
 0x281   :  { %v2696_v59 = vpop.eup %2695  ;;  %v1267_v6 = vmul.f32 %v2694_v62, %v1265_v58  ;;  %2697 = vrcp.f32 %v1304_v21  ;;  %1663 = vmatpush.msrb.mxu2 %v3633_v3  ;;  %vm1272_vm8 = vweird.f32 %v2694_v62  ;;  %v1297_v3 = vor.u32 1.1754944e-38, %v1296_v48 }
 0x282   :  { %v1286_v13 = vmul.f32 %v2696_v59, %v1284_v34  ;;  %2699 = vtanh.f32 %v1260_v55  ;;  %vm1291_vm9 = vweird.f32 %v2696_v59  ;;  %vm1273_vm12 = vmor %vm1271_vm10, %vm1272_vm8  ;;  %vm1310_vm1 = vweird.f32 %v1304_v21 }
 0x283   :  { %v1268_v52 = vsub.f32 1.0, %v1267_v6  ;;  %1664 = vmatpush.msrb.mxu2 %v3645_v47  ;;  %vm1292_vm13 = vmor %vm1290_vm11, %vm1291_vm9 }
 0x284   :  { %v1287_v24 = vsub.f32 1.0, %v1286_v13 }
 0x285   :  { %v1269_v14 = vmul.f32 %v2694_v62, %v1268_v52  ;;  %1665 = vmatpush.msrb.mxu2 %v4487_v5 }
 0x286   :  { %v1288_v10 = vmul.f32 %v2696_v59, %v1287_v24 }
 0x287   :  { %v2698_v18 = vpop.eup %2697  ;;  %v1270_v2 = vadd.f32 %v2694_v62, %v1269_v14  ;;  %1666 = vmatpush.msrb.mxu2 %v4492_v11  ;;  %v1314_v11 = vand.u32 2147483647, %v1304_v21 }
 0x288   :  { %v1289_v13 = vadd.f32 %v2696_v59, %v1288_v10  ;;  %v1306_v6 = vmul.f32 %v2698_v18, %v1304_v21  ;;  %v2700_v52 = vpop.eup %2699  ;;  %vm1311_vm0 = vweird.f32 %v2698_v18  ;;  %v3892_v10 = vld [vmem:[#allocation11 + $0x1f8] sm:$0xff] }
 0x289   :  { %v1274_v55 = vsel %vm1273_vm12, %v2694_v62, %v1270_v2  ;;  %1667 = vmatpush.msrb.mxu2 %v3804_v28  ;;  %v1316_v62 = vand.u32 2147483648, %v1304_v21  ;;  %vm1312_vm2 = vmor %vm1310_vm1, %vm1311_vm0  ;;  %vm1315_vm3 = vcmp.eq.f32.partialorder %v1314_v11, 8.507059e+37  ;;  %v3888_v21 = vld [vmem:[#allocation11 + $0x1e0] sm:$0xff]  ;;  %1678 = vmatpush.msrb.mxu3 %v3892_v10  ;;  %v4527_v2 = vld [vmem:[#allocation65_spill] sm:$0xff] }
 0x28a   :  { %v1279_v24 = vsel %vm1276_vm14, %v1278_v32, %v1274_v55  ;;  %v1293_v46 = vsel %vm1292_vm13, %v2696_v59, %v1289_v13  ;;  %v1307_v57 = vsub.f32 1.0, %v1306_v6  ;;  %1618 = vmatpush.msrb.mxu0 %v3888_v21  ;;  %v4528_v13 = vld [vmem:[#allocation66_spill] sm:$0xff]  ;;  %v4529_v6 = vld [vmem:[#allocation32_spill] sm:$0xff] }
 0x28b   :  { %v1298_v14 = vsel %vm1295_vm15, %v1297_v3, %v1293_v46  ;;  %v1321_v47 = vmul.f32 %v2700_v52, %v1279_v24  ;;  %1668 = vmatpush.msrb.mxu2 %v3807_v44  ;;  %1679 = vmatpush.msrb.mxu3 %v3589_v60  ;;  %v4513_v60 = vld [vmem:[#allocation36_spill] sm:$0xff]  ;;  %v4530_v3 = vld [vmem:[#allocation33_spill] sm:$0xff] }
 0x28c   :  { %v1320_v58 = vmul.f32 %v1298_v14, %v3788_v8  ;;  %v1308_v30 = vmul.f32 %v2698_v18, %v1307_v57  ;;  %v1317_v57 = vor.u32 1.1754944e-38, %v1316_v62  ;;  %1619 = vmatpush.msrb.mxu0 %v3897_v15  ;;  %v4531_v24 = vld [vmem:[#allocation28_spill] sm:$0xff]  ;;  %v4532_v14 = vld [vmem:[#allocation42_spill] sm:$0xff] }
 0x28d   :  { %1669 = vmatpush.msrb.mxu2 %v3810_v26  ;;  %1680 = vmatpush.msrb.mxu3 %v3601_v63 }
 0x28e   :  { %v3879_v34 = vadd.f32 %v1321_v47, %v1320_v58  ;;  %v1309_v5 = vadd.f32 %v2698_v18, %v1308_v30  ;;  %1620 = vmatpush.msrb.mxu0 %v3593_v20  ;;  %v497_v20 = vadd.f32 %v4513_v60, %v4494_v33  ;;  %v579_v47 = vadd.f32 %v4532_v14, %v4531_v24 }
 0x28f   :  { %1670 = vmatpush.msrb.mxu2 %v3820_v17  ;;  %1681 = vmatpush.msrb.mxu3 %v3613_v19 }
 0x290   :  { %2701 = vtanh.f32 %v3879_v34  ;;  %v1313_v46 = vsel %vm1312_vm2, %v2698_v18, %v1309_v5  ;;  %v3899_v18 = vld [vmem:[#allocation11 + $0x1c8] sm:$0xff]  ;;  %1621 = vmatpush.msrb.mxu0 %v3605_v1 }
 0x291   :  { %1671 = vmatpush.msrb.mxu2 %v3832_v50  ;;  %v1318_v59 = vsel %vm1315_vm3, %v1317_v57, %v1313_v46  ;;  %1639 = vmatpush.msrb.mxu1 %v3899_v18 }
 0x292   :  { %1622 = vmatpush.msrb.mxu0 %v3617_v56  ;;  %1682 = vmatpush.msrb.mxu3 %v3625_v35 }
 0x293   :  { %1672 = vmatpush.msrb.mxu2 %v3844_v12  ;;  %1640 = vmatpush.msrb.mxu1 %v3595_v54  ;;  %v4514_v54 = vld [vmem:[#allocation37_spill] sm:$0xff] }
 0x294   :  { %1623 = vmatpush.msrb.mxu0 %v3629_v38  ;;  %1683 = vmatpush.msrb.mxu3 %v3637_v39  ;;  %v538_v63 = vadd.f32 %v4514_v54, %v4496_v40  ;;  %v4515_v38 = vld [vmem:[#allocation67_spill] sm:$0xff] }
 0x295   :  { %1673 = vmatpush.msrb.mxu2 %v3856_v45  ;;  %1641 = vmatpush.msrb.mxu1 %v3607_v16  ;;  %v4517_v39 = vld [vmem:[#allocation39_spill] sm:$0xff] }
 0x296   :  { %v2702_v8 = vpop.eup %2701  ;;  %1624 = vmatpush.msrb.mxu0 %v3641_v41  ;;  %1684 = vmatpush.msrb.mxu3 %v3649_v0  ;;  %v4520_v0 = vld [vmem:[#allocation31_spill] sm:$0xff] }
 0x297   :  { %v1324_v48 = vmul.f32 %v2702_v8, %v1318_v59  ;;  %1642 = vmatpush.msrb.mxu1 %v3619_v22 }
 0x298   :  { %1625 = vmatpush.msrb.mxu0 %v3653_v49  ;;  %1685 = vmatpush.msrb.mxu3 %v4488_v27  ;;  %v4523_v49 = vld [vmem:[#allocation62_spill] sm:$0xff]  ;;  %v4525_v27 = vld [vmem:[#allocation64_spill] sm:$0xff] }
 0x299   :  { %1414 = vmatmul.f32.vlgmr.msra.gmra.mxu0 %v1324_v48  ;;  %1326 = vst [vmem:[#allocation17 + $0x10] sm:$0xff] %v1324_v48  ;;  %1434 = vmatmul.f32.vlgmr.msra.gmra.mxu1 %v1324_v48 }
 0x29a   :  { %1454 = vmatmul.f32.vlgmr.msra.gmra.mxu2 %v1324_v48  ;;  %1474 = vmatmul.f32.vlgmr.msra.gmra.mxu3 %v1324_v48 }
 0x29b   :  { %1643 = vmatpush.msrb.mxu1 %v3631_v42  ;;  %1626 = vmatpush.msrb.mxu0 %v4489_v7  ;;  %v4516_v42 = vld [vmem:[#allocation58_spill] sm:$0xff]  ;;  %v4526_v7 = vld [vmem:[#allocation60_spill] sm:$0xff] }
 0x29c   :  { %1686 = vmatpush.msrb.mxu3 %v4493_v36 }
 0x29d   :  { %1644 = vmatpush.msrb.mxu1 %v3643_v43  ;;  %1627 = vmatpush.msrb.mxu0 %v3681_v23  ;;  %v620_v23 = vadd.f32 %v4517_v39, %v4516_v42  ;;  %v4519_v43 = vld [vmem:[#allocation30_spill] sm:$0xff] }
 0x29e   :  { %1687 = vmatpush.msrb.mxu3 %v3685_v4  ;;  %v4524_v4 = vld [vmem:[#allocation63_spill] sm:$0xff] }
 0x29f   :  { %1645 = vmatpush.msrb.mxu1 %v3655_v51  ;;  %1628 = vmatpush.msrb.mxu0 %v3691_v29 }
 0x2a0   :  { %1688 = vmatpush.msrb.mxu3 %v3695_v31  ;;  %v4522_v31 = vld [vmem:[#allocation61_spill] sm:$0xff] }
 0x2a1   :  { %1646 = vmatpush.msrb.mxu1 %v4490_v9  ;;  %1629 = vmatpush.msrb.mxu0 %v3701_v53 }
 0x2a3   :  { %1647 = vmatpush.msrb.mxu1 %v3683_v37  ;;  %v4518_v37 = vld [vmem:[#allocation29_spill] sm:$0xff]  ;;  %1630 = vmatpush.msrb.mxu0 %v4519_v43 }
 0x2a4   :  { %1689 = vmatpush.msrb.mxu3 %v4518_v37 }
 0x2a5   :  { %1648 = vmatpush.msrb.mxu1 %v3693_v25  ;;  %v4521_v25 = vld [vmem:[#allocation34_spill] sm:$0xff]  ;;  %1631 = vmatpush.msrb.mxu0 %v4522_v31 }
 0x2a6   :  { %1690 = vmatpush.msrb.mxu3 %v4521_v25 }
 0x2a7   :  { %1649 = vmatpush.msrb.mxu1 %v4515_v38  ;;  %1632 = vmatpush.msrb.mxu0 %v4525_v27 }
 0x2a8   :  { %1691 = vmatpush.msrb.mxu3 %v4524_v4 }
 0x2a9   :  { %1650 = vmatpush.msrb.mxu1 %v4520_v0  ;;  %1633 = vmatpush.msrb.mxu0 %v4528_v13 }
 0x2aa   :  { %1692 = vmatpush.msrb.mxu3 %v4527_v2 }
 0x2ab   :  { %1651 = vmatpush.msrb.mxu1 %v4523_v49  ;;  %1838 = vmatpush.msra.mxu0 %v3888_v21 }
 0x2ac   :  { %1693 = vmatpush.msrb.mxu3 %v4530_v3 }
 0x2ad   :  { %1652 = vmatpush.msrb.mxu1 %v4526_v7  ;;  %1839 = vmatpush.msra.mxu0 %v3897_v15 }
 0x2ae   :  { %1898 = vmatpush.msra.mxu3 %v3892_v10 }
 0x2af   :  { %1653 = vmatpush.msrb.mxu1 %v4529_v6 }
 0x2b1   :  { %1858 = vmatpush.msra.mxu1 %v3890_v61 }
 0x2b3   :  { %1859 = vmatpush.msra.mxu1 %v3899_v18 }
 0x316   :  { %v1415_v1 = vpop.f32.mrf.mxu0  ;;  %v1435_v16 = vpop.f32.mrf.mxu1 }
 0x317   :  { %v1478_v19 = vadd.f32 %v1415_v1, %v497_v20  ;;  %v1479_v56 = vadd.f32 %v1435_v16, %v538_v63 }
 0x319   :  { %v2626_v22 = vmul.f32 -1.442695, %v1478_v19  ;;  %v2627_v35 = vmul.f32 -1.442695, %v1479_v56 }
 0x31b   :  { %2703 = vpow2.f32 %v2626_v22 }
 0x31c   :  { %2705 = vpow2.f32 %v2627_v35 }
 0x31d   :  { %v1475_v41 = vpop.f32.mrf.mxu3  ;;  %v1455_v55 = vpop.f32.mrf.mxu2 }
 0x31e   :  { %v1481_v29 = vadd.f32 %v1475_v41, %v620_v23  ;;  %v1480_v5 = vadd.f32 %v1455_v55, %v579_v47 }
 0x320   :  { %v2628_v51 = vmul.f32 -1.442695, %v1481_v29 }
 0x321   :  { %v2704_v53 = vpop.eup %2703 }
 0x322   :  { %v2706_v9 = vpop.eup %2705  ;;  %v1485_v36 = vadd.f32 1.0, %v2704_v53  ;;  %2707 = vpow2.f32 %v2628_v51 }
 0x323   :  { %v1504_v32 = vadd.f32 1.0, %v2706_v9 }
 0x324   :  { %2709 = vrcp.f32 %v1485_v36  ;;  %v1497_v59 = vand.u32 2147483648, %v1485_v36  ;;  %v1495_v20 = vand.u32 2147483647, %v1485_v36  ;;  %vm1491_vm6 = vweird.f32 %v1485_v36 }
 0x325   :  { %2711 = vrcp.f32 %v1504_v32  ;;  %v1516_v48 = vand.u32 2147483648, %v1504_v32  ;;  %v1514_v63 = vand.u32 2147483647, %v1504_v32  ;;  %vm1510_vm7 = vweird.f32 %v1504_v32 }
 0x326   :  { %v1498_v19 = vor.u32 1.1754944e-38, %v1497_v59  ;;  %vm1496_vm10 = vcmp.eq.f32.partialorder %v1495_v20, 8.507059e+37  ;;  %v3976_v59 = vld [vmem:[#allocation11 + $0x1b0] sm:$0xff]  ;;  %v3986_v20 = vld [vmem:[#allocation11 + $0x188] sm:$0xff] }
 0x327   :  { %v1517_v35 = vor.u32 1.1754944e-38, %v1516_v48  ;;  %vm1515_vm11 = vcmp.eq.f32.partialorder %v1514_v63, 8.507059e+37  ;;  %v3980_v48 = vld [vmem:[#allocation11 + $0x1b8] sm:$0xff] }
 0x328   :  { %v2708_v52 = vpop.eup %2707  ;;  %v3992_v63 = vld [vmem:[#allocation11 + $0x198] sm:$0xff] }
 0x329   :  { %v1524_v58 = vadd.f32 1.0, %v2708_v52 }
 0x32a   :  { %v2710_v30 = vpop.eup %2709 }
 0x32b   :  { %v2712_v62 = vpop.eup %2711  ;;  %v1487_v11 = vmul.f32 %v2710_v30, %v1485_v36  ;;  %2713 = vrcp.f32 %v1524_v58  ;;  %vm1492_vm4 = vweird.f32 %v2710_v30  ;;  %v1536_v52 = vand.u32 2147483648, %v1524_v58 }
 0x32c   :  { %v1506_v46 = vmul.f32 %v2712_v62, %v1504_v32  ;;  %2715 = vtanh.f32 %v1480_v5  ;;  %vm1511_vm5 = vweird.f32 %v2712_v62  ;;  %vm1493_vm8 = vmor %vm1491_vm6, %vm1492_vm4  ;;  %vm1530_vm13 = vweird.f32 %v1524_v58 }
 0x32d   :  { %v1488_v57 = vsub.f32 1.0, %v1487_v11  ;;  %vm1512_vm9 = vmor %vm1510_vm7, %vm1511_vm5  ;;  %v1534_v14 = vand.u32 2147483647, %v1524_v58 }
 0x32e   :  { %v1507_v8 = vsub.f32 1.0, %v1506_v46  ;;  %v3966_v46 = vld [vmem:[#allocation11 + $0x1d0] sm:$0xff] }
 0x32f   :  { %v1489_v60 = vmul.f32 %v2710_v30, %v1488_v57  ;;  %vm1535_vm15 = vcmp.eq.f32.partialorder %v1534_v14, 8.507059e+37  ;;  %v3968_v57 = vld [vmem:[#allocation11 + $0x1d8] sm:$0xff]  ;;  %v4046_v14 = vld [vmem:[#allocation11 + $0xe8] sm:$0xff] }
 0x330   :  { %v1508_v54 = vmul.f32 %v2712_v62, %v1507_v8  ;;  %1899 = vmatpush.msra.mxu3 %v3968_v57  ;;  %v3974_v8 = vld [vmem:[#allocation11 + $0x1a8] sm:$0xff]  ;;  %4539 = vst [vmem:[#allocation29_spill] sm:$0xff] %v4046_v14 }
 0x331   :  { %v2714_v1 = vpop.eup %2713  ;;  %v1490_v16 = vadd.f32 %v2710_v30, %v1489_v60  ;;  %1860 = vmatpush.msra.mxu1 %v3974_v8  ;;  %v3984_v60 = vld [vmem:[#allocation11 + $0x180] sm:$0xff] }
 0x332   :  { %v1509_v56 = vadd.f32 %v2712_v62, %v1508_v54  ;;  %v1526_v22 = vmul.f32 %v2714_v1, %v1524_v58  ;;  %v2716_v39 = vpop.eup %2715  ;;  %vm1531_vm12 = vweird.f32 %v2714_v1  ;;  %v3972_v58 = vld [vmem:[#allocation11 + $0x1a0] sm:$0xff]  ;;  %1900 = vmatpush.msra.mxu3 %v3980_v48  ;;  %v3988_v54 = vld [vmem:[#allocation11 + $0x190] sm:$0xff] }
 0x333   :  { %v1494_v38 = vsel %vm1493_vm8, %v2710_v30, %v1490_v16  ;;  %vm1532_vm14 = vmor %vm1530_vm13, %vm1531_vm12  ;;  %v1537_v30 = vor.u32 1.1754944e-38, %v1536_v52  ;;  %1840 = vmatpush.msra.mxu0 %v3972_v58  ;;  %1861 = vmatpush.msra.mxu1 %v3986_v20  ;;  %v3998_v16 = vld [vmem:[#allocation11 + $0x168] sm:$0xff]  ;;  %v4044_v52 = vld [vmem:[#allocation11 + $0xe0] sm:$0xff] }
 0x334   :  { %v1499_v23 = vsel %vm1496_vm10, %v1498_v19, %v1494_v38  ;;  %v1513_v41 = vsel %vm1512_vm9, %v2712_v62, %v1509_v56  ;;  %v1527_v29 = vsub.f32 1.0, %v1526_v22  ;;  %1901 = vmatpush.msra.mxu3 %v3992_v63  ;;  %v4000_v19 = vld [vmem:[#allocation11 + $0x170] sm:$0xff]  ;;  %v4004_v56 = vld [vmem:[#allocation11 + $0x178] sm:$0xff]  ;;  %v4008_v22 = vld [vmem:[#allocation11 + $0x140] sm:$0xff]  ;;  %4538 = vst [vmem:[#allocation39_spill] sm:$0xff] %v4044_v52 }
 0x335   :  { %v1518_v51 = vsel %vm1515_vm11, %v1517_v35, %v1513_v41  ;;  %v1541_v53 = vmul.f32 %v2716_v39, %v1499_v23  ;;  %1841 = vmatpush.msra.mxu0 %v3984_v60  ;;  %1862 = vmatpush.msra.mxu1 %v3998_v16  ;;  %v4010_v35 = vld [vmem:[#allocation11 + $0x148] sm:$0xff]  ;;  %v4012_v38 = vld [vmem:[#allocation11 + $0x150] sm:$0xff]  ;;  %v4016_v39 = vld [vmem:[#allocation11 + $0x158] sm:$0xff] }
 0x336   :  { %v1540_v9 = vmul.f32 %v1518_v51, %v3879_v34  ;;  %v1528_v55 = vmul.f32 %v2714_v1, %v1527_v29  ;;  %v3963_v34 = vld [vmem:[#allocation11 + $0x1f0] sm:$0xff]  ;;  %1902 = vmatpush.msra.mxu3 %v4004_v56  ;;  %v4020_v23 = vld [vmem:[#allocation11 + $0x120] sm:$0xff]  ;;  %v4022_v41 = vld [vmem:[#allocation11 + $0x128] sm:$0xff] }
 0x337   :  { %1878 = vmatpush.msra.mxu2 %v3963_v34  ;;  %1863 = vmatpush.msra.mxu1 %v4010_v35  ;;  %v4024_v29 = vld [vmem:[#allocation11 + $0x130] sm:$0xff]  ;;  %v4028_v51 = vld [vmem:[#allocation11 + $0x138] sm:$0xff] }
 0x338   :  { %v3960_v36 = vadd.f32 %v1541_v53, %v1540_v9  ;;  %v1529_v32 = vadd.f32 %v2714_v1, %v1528_v55  ;;  %1903 = vmatpush.msra.mxu3 %v4016_v39  ;;  %v4032_v53 = vld [vmem:[#allocation11 + $0x100] sm:$0xff]  ;;  %v4034_v9 = vld [vmem:[#allocation11 + $0x108] sm:$0xff]  ;;  %v4036_v55 = vld [vmem:[#allocation11 + $0x110] sm:$0xff] }
 0x339   :  { %1879 = vmatpush.msra.mxu2 %v3966_v46  ;;  %1864 = vmatpush.msra.mxu1 %v4022_v41  ;;  %4534 = vst [vmem:[#allocation38_spill] sm:$0xff] %v4032_v53 }
 0x33a   :  { %4533 = vst [vmem:[#allocation35_spill] sm:$0xff] %v3960_v36  ;;  %2717 = vtanh.f32 %v3960_v36  ;;  %v1533_v47 = vsel %vm1532_vm14, %v2714_v1, %v1529_v32  ;;  %v3996_v1 = vld [vmem:[#allocation11 + $0x160] sm:$0xff]  ;;  %1904 = vmatpush.msra.mxu3 %v4028_v51  ;;  %v4040_v32 = vld [vmem:[#allocation11 + $0x118] sm:$0xff] }
 0x33b   :  { %v1538_v62 = vsel %vm1535_vm15, %v1537_v30, %v1533_v47  ;;  %1880 = vmatpush.msra.mxu2 %v3976_v59  ;;  %1842 = vmatpush.msra.mxu0 %v3996_v1  ;;  %4535 = vst [vmem:[#allocation36_spill] sm:$0xff] %v4034_v9  ;;  %v4048_v47 = vld [vmem:[#allocation11 + $0xf0] sm:$0xff]  ;;  %v4541_v30 = vld [vmem:[#allocation40_spill] sm:$0xff]  ;;  %v4056_v36 = vld [vmem:[#allocation11 + $0xf8] sm:$0xff] }
 0x33c   :  { %4536 = vst [vmem:[#allocation37_spill] sm:$0xff] %v4036_v55  ;;  %1865 = vmatpush.msra.mxu1 %v4034_v9  ;;  %1905 = vmatpush.msra.mxu3 %v4040_v32  ;;  %v4060_v9 = vld [vmem:[#allocation11 + $0xc0] sm:$0xff] }
 0x33d   :  { %1881 = vmatpush.msra.mxu2 %v3988_v54  ;;  %1843 = vmatpush.msra.mxu0 %v4008_v22  ;;  %4537 = vst [vmem:[#allocation67_spill] sm:$0xff] %v4040_v32 }
 0x33e   :  { %4540 = vst [vmem:[#allocation30_spill] sm:$0xff] %v4048_v47  ;;  %1866 = vmatpush.msra.mxu1 %v4046_v14  ;;  %1906 = vmatpush.msra.mxu3 %v4056_v36 }
 0x33f   :  { %1882 = vmatpush.msra.mxu2 %v4000_v19  ;;  %1844 = vmatpush.msra.mxu0 %v4020_v23  ;;  %4543 = vst [vmem:[#allocation31_spill] sm:$0xff] %v4056_v36  ;;  %v4074_v36 = vld [vmem:[#allocation11 + $0xb8] sm:$0xff] }
 0x340   :  { %v2718_v5 = vpop.eup %2717 }
 0x341   :  { %v1544_v11 = vmul.f32 %v2718_v5, %v1538_v62  ;;  %1883 = vmatpush.msra.mxu2 %v4012_v38  ;;  %1845 = vmatpush.msra.mxu0 %v4032_v53  ;;  %v500_v5 = vadd.f32 %v4541_v30, %v4494_v33  ;;  %v4542_v62 = vld [vmem:[#allocation41_spill] sm:$0xff]  ;;  %v4064_v30 = vld [vmem:[#allocation11 + $0xd8] sm:$0xff] }
 0x342   :  { %v4062_v53 = vld [vmem:[#allocation11 + $0xc8] sm:$0xff]  ;;  %1907 = vmatpush.msra.mxu3 %v4064_v30 }
 0x343   :  { %1634 = vmatmul.f32.vlgmr.msrb.gmra.mxu0 %v1544_v11  ;;  %1546 = vst [vmem:[#allocation17 + $0x18] sm:$0xff] %v1544_v11  ;;  %1654 = vmatmul.f32.vlgmr.msrb.gmra.mxu1 %v1544_v11 }
 0x344   :  { %1674 = vmatmul.f32.vlgmr.msrb.gmra.mxu2 %v1544_v11  ;;  %1694 = vmatmul.f32.vlgmr.msrb.gmra.mxu3 %v1544_v11  ;;  %v541_v11 = vadd.f32 %v4542_v62, %v4496_v40  ;;  %v4070_v40 = vld [vmem:[#allocation11 + $0xa0] sm:$0xff] }
 0x345   :  { %1884 = vmatpush.msra.mxu2 %v4024_v29  ;;  %1846 = vmatpush.msra.mxu0 %v4044_v52 }
 0x346   :  { %1867 = vmatpush.msra.mxu1 %v4062_v53  ;;  %1908 = vmatpush.msra.mxu3 %v4074_v36 }
 0x347   :  { %1885 = vmatpush.msra.mxu2 %v4036_v55  ;;  %1847 = vmatpush.msra.mxu0 %v4060_v9 }
 0x348   :  { %1909 = vmatpush.msra.mxu3 %v4518_v37 }
 0x349   :  { %1886 = vmatpush.msra.mxu2 %v4048_v47  ;;  %v4072_v47 = vld [vmem:[#allocation11 + $0xa8] sm:$0xff]  ;;  %1848 = vmatpush.msra.mxu0 %v4070_v40 }
 0x34a   :  { %1868 = vmatpush.msra.mxu1 %v4072_v47  ;;  %1910 = vmatpush.msra.mxu3 %v4521_v25 }
 0x34b   :  { %1887 = vmatpush.msra.mxu2 %v3804_v28  ;;  %v4082_v28 = vld [vmem:[#allocation11 + $0x88] sm:$0xff] }
 0x34c   :  { %4544 = vst [vmem:[#allocation34_spill] sm:$0xff] %v4082_v28  ;;  %1869 = vmatpush.msra.mxu1 %v4082_v28  ;;  %1911 = vmatpush.msra.mxu3 %v4524_v4 }
 0x34d   :  { %1888 = vmatpush.msra.mxu2 %v3807_v44 }
 0x34e   :  { %1870 = vmatpush.msra.mxu1 %v4520_v0  ;;  %1912 = vmatpush.msra.mxu3 %v4527_v2 }
 0x34f   :  { %1889 = vmatpush.msra.mxu2 %v3810_v26 }
 0x350   :  { %1871 = vmatpush.msra.mxu1 %v4523_v49  ;;  %1913 = vmatpush.msra.mxu3 %v4530_v3 }
 0x351   :  { %1890 = vmatpush.msra.mxu2 %v3820_v17 }
 0x352   :  { %1872 = vmatpush.msra.mxu1 %v4526_v7  ;;  %2118 = vmatpush.msrb.mxu3 %v3892_v10 }
 0x353   :  { %1891 = vmatpush.msra.mxu2 %v3832_v50 }
 0x354   :  { %1873 = vmatpush.msra.mxu1 %v4529_v6  ;;  %2119 = vmatpush.msrb.mxu3 %v3968_v57 }
 0x355   :  { %1892 = vmatpush.msra.mxu2 %v3844_v12 }
 0x356   :  { %2078 = vmatpush.msrb.mxu1 %v3890_v61  ;;  %2120 = vmatpush.msrb.mxu3 %v3980_v48 }
 0x357   :  { %1893 = vmatpush.msra.mxu2 %v3856_v45  ;;  %v4546_v45 = vld [vmem:[#allocation46_spill] sm:$0xff] }
 0x358   :  { %2079 = vmatpush.msrb.mxu1 %v3899_v18  ;;  %v582_v0 = vadd.f32 %v4546_v45, %v4531_v24  ;;  %2121 = vmatpush.msrb.mxu3 %v3992_v63 }
 0x359   :  { %2098 = vmatpush.msrb.mxu2 %v3963_v34 }
 0x35a   :  { %2080 = vmatpush.msrb.mxu1 %v3974_v8  ;;  %2122 = vmatpush.msrb.mxu3 %v4004_v56 }
 0x35b   :  { %2099 = vmatpush.msrb.mxu2 %v3966_v46 }
 0x35c   :  { %2081 = vmatpush.msrb.mxu1 %v3986_v20  ;;  %2123 = vmatpush.msrb.mxu3 %v4016_v39 }
 0x35d   :  { %2100 = vmatpush.msrb.mxu2 %v3976_v59 }
 0x35e   :  { %2082 = vmatpush.msrb.mxu1 %v3998_v16  ;;  %2124 = vmatpush.msrb.mxu3 %v4028_v51 }
 0x35f   :  { %2101 = vmatpush.msrb.mxu2 %v3988_v54 }
 0x360   :  { %2083 = vmatpush.msrb.mxu1 %v4010_v35 }
 0x361   :  { %2102 = vmatpush.msrb.mxu2 %v4000_v19 }
 0x362   :  { %2084 = vmatpush.msrb.mxu1 %v4022_v41 }
 0x363   :  { %2103 = vmatpush.msrb.mxu2 %v4012_v38 }
 0x365   :  { %2104 = vmatpush.msrb.mxu2 %v4024_v29 }
 0x3c0   :  { %v1635_v55 = vpop.f32.mrf.mxu0  ;;  %v1655_v32 = vpop.f32.mrf.mxu1 }
 0x3c1   :  { %v1698_v33 = vadd.f32 %v1635_v55, %v500_v5  ;;  %v1699_v62 = vadd.f32 %v1655_v32, %v541_v11  ;;  %v4080_v55 = vld [vmem:[#allocation11 + $0x80] sm:$0xff] }
 0x3c2   :  { %1849 = vmatpush.msra.mxu0 %v4080_v55 }
 0x3c3   :  { %v2629_v14 = vmul.f32 -1.442695, %v1698_v33  ;;  %v2630_v52 = vmul.f32 -1.442695, %v1699_v62  ;;  %v4545_v33 = vld [vmem:[#allocation43_spill] sm:$0xff] }
 0x3c4   :  { %v623_v32 = vadd.f32 %v4545_v33, %v4516_v42  ;;  %1850 = vmatpush.msra.mxu0 %v4519_v43 }
 0x3c5   :  { %2719 = vpow2.f32 %v2629_v14 }
 0x3c6   :  { %2721 = vpow2.f32 %v2630_v52  ;;  %1851 = vmatpush.msra.mxu0 %v4522_v31 }
 0x3c7   :  { %v1695_v44 = vpop.f32.mrf.mxu3  ;;  %v1675_v50 = vpop.f32.mrf.mxu2 }
 0x3c8   :  { %v1701_v5 = vadd.f32 %v1695_v44, %v623_v32  ;;  %1852 = vmatpush.msra.mxu0 %v4525_v27  ;;  %v1700_v10 = vadd.f32 %v1675_v50, %v582_v0  ;;  %v4549_v50 = vld [vmem:[#allocation37_spill] sm:$0xff] }
 0x3c9   :  { %2105 = vmatpush.msrb.mxu2 %v4549_v50 }
 0x3ca   :  { %v2631_v14 = vmul.f32 -1.442695, %v1701_v5  ;;  %1853 = vmatpush.msra.mxu0 %v4528_v13  ;;  %v4547_v5 = vld [vmem:[#allocation38_spill] sm:$0xff] }
 0x3cb   :  { %v2720_v26 = vpop.eup %2719 }
 0x3cc   :  { %v2722_v37 = vpop.eup %2721  ;;  %v4100_v43 = vadd.f32 1.0, %v2720_v26  ;;  %2723 = vpow2.f32 %v2631_v14  ;;  %2058 = vmatpush.msrb.mxu0 %v3888_v21  ;;  %v4548_v14 = vld [vmem:[#allocation36_spill] sm:$0xff] }
 0x3cd   :  { %v4104_v17 = vadd.f32 1.0, %v2722_v37  ;;  %2085 = vmatpush.msrb.mxu1 %v4548_v14 }
 0x3ce   :  { %2725 = vrcp.f32 %v4100_v43  ;;  %2059 = vmatpush.msrb.mxu0 %v3897_v15  ;;  %v1717_v4 = vand.u32 2147483648, %v4100_v43  ;;  %v1715_v2 = vand.u32 2147483647, %v4100_v43  ;;  %vm1711_vm2 = vweird.f32 %v4100_v43 }
 0x3cf   :  { %2727 = vrcp.f32 %v4104_v17  ;;  %v1736_v27 = vand.u32 2147483648, %v4104_v17  ;;  %v1734_v6 = vand.u32 2147483647, %v4104_v17  ;;  %vm1730_vm3 = vweird.f32 %v4104_v17 }
 0x3d0   :  { %2060 = vmatpush.msrb.mxu0 %v3972_v58  ;;  %v1718_v11 = vor.u32 1.1754944e-38, %v1717_v4  ;;  %vm1716_vm6 = vcmp.eq.f32.partialorder %v1715_v2, 8.507059e+37  ;;  %v4555_v4 = vld [vmem:[#allocation31_spill] sm:$0xff] }
 0x3d1   :  { %v1737_v32 = vor.u32 1.1754944e-38, %v1736_v27  ;;  %vm1735_vm7 = vcmp.eq.f32.partialorder %v1734_v6, 8.507059e+37 }
 0x3d2   :  { %v2724_v12 = vpop.eup %2723  ;;  %2061 = vmatpush.msrb.mxu0 %v3984_v60 }
 0x3d3   :  { %v4122_v21 = vadd.f32 1.0, %v2724_v12  ;;  %v4550_v12 = vld [vmem:[#allocation67_spill] sm:$0xff] }
 0x3d4   :  { %v2726_v61 = vpop.eup %2725  ;;  %2062 = vmatpush.msrb.mxu0 %v3996_v1  ;;  %2125 = vmatpush.msrb.mxu3 %v4550_v12 }
 0x3d5   :  { %v2728_v15 = vpop.eup %2727  ;;  %v1707_v18 = vmul.f32 %v2726_v61, %v4100_v43  ;;  %2729 = vrcp.f32 %v4122_v21  ;;  %vm1712_vm0 = vweird.f32 %v2726_v61  ;;  %vm1750_vm9 = vweird.f32 %v4122_v21 }
 0x3d6   :  { %v1726_v25 = vmul.f32 %v2728_v15, %v4104_v17  ;;  %2731 = vtanh.f32 %v1700_v10  ;;  %2063 = vmatpush.msrb.mxu0 %v4008_v22  ;;  %vm1731_vm1 = vweird.f32 %v2728_v15  ;;  %vm1713_vm4 = vmor %vm1711_vm2, %vm1712_vm0  ;;  %v4551_v10 = vld [vmem:[#allocation39_spill] sm:$0xff]  ;;  %2126 = vmatpush.msrb.mxu3 %v4555_v4  ;;  %v1754_v2 = vand.u32 2147483647, %v4122_v21 }
 0x3d7   :  { %v1708_v31 = vsub.f32 1.0, %v1707_v18  ;;  %vm1732_vm5 = vmor %vm1730_vm3, %vm1731_vm1  ;;  %v4552_v18 = vld [vmem:[#allocation29_spill] sm:$0xff] }
 0x3d8   :  { %v1727_v49 = vsub.f32 1.0, %v1726_v25  ;;  %2064 = vmatpush.msrb.mxu0 %v4020_v23  ;;  %2086 = vmatpush.msrb.mxu1 %v4552_v18  ;;  %vm1755_vm11 = vcmp.eq.f32.partialorder %v1754_v2, 8.507059e+37  ;;  %v4193_v2 = vld [vmem:[#allocation11 + $0x60] sm:$0xff] }
 0x3d9   :  { %v1709_v7 = vmul.f32 %v2726_v61, %v1708_v31  ;;  %2127 = vmatpush.msrb.mxu3 %v4064_v30  ;;  %4561 = vst [vmem:[#allocation62_spill] sm:$0xff] %v4193_v2 }
 0x3da   :  { %v1728_v13 = vmul.f32 %v2728_v15, %v1727_v49  ;;  %2065 = vmatpush.msrb.mxu0 %v4547_v5  ;;  %v4554_v49 = vld [vmem:[#allocation30_spill] sm:$0xff]  ;;  %2087 = vmatpush.msrb.mxu1 %v4062_v53 }
 0x3db   :  { %v2730_v3 = vpop.eup %2729  ;;  %v1710_v52 = vadd.f32 %v2726_v61, %v1709_v7  ;;  %2106 = vmatpush.msrb.mxu2 %v4554_v49  ;;  %v1756_v7 = vand.u32 2147483648, %v4122_v21  ;;  %2128 = vmatpush.msrb.mxu3 %v4074_v36 }
 0x3dc   :  { %v1729_v62 = vadd.f32 %v2728_v15, %v1728_v13  ;;  %v1746_v33 = vmul.f32 %v2730_v3, %v4122_v21  ;;  %v2732_v26 = vpop.eup %2731  ;;  %2066 = vmatpush.msrb.mxu0 %v4551_v10  ;;  %vm1751_vm8 = vweird.f32 %v2730_v3  ;;  %2088 = vmatpush.msrb.mxu1 %v4072_v47  ;;  %v4558_v21 = vld [vmem:[#allocation55_spill] sm:$0xff] }
 0x3dd   :  { %v1714_v44 = vsel %vm1713_vm4, %v2726_v61, %v1710_v52  ;;  %v4553_v61 = vld [vmem:[#allocation35_spill] sm:$0xff]  ;;  %vm1752_vm10 = vmor %vm1750_vm9, %vm1751_vm8  ;;  %v1757_v6 = vor.u32 1.1754944e-38, %v1756_v7 }
 0x3de   :  { %v1719_v37 = vsel %vm1716_vm6, %v1718_v11, %v1714_v44  ;;  %v1733_v43 = vsel %vm1732_vm5, %v2728_v15, %v1729_v62  ;;  %v1747_v17 = vsub.f32 1.0, %v1746_v33  ;;  %2067 = vmatpush.msrb.mxu0 %v4060_v9  ;;  %2089 = vmatpush.msrb.mxu1 %v4082_v28  ;;  %v4556_v33 = vld [vmem:[#allocation54_spill] sm:$0xff] }
 0x3df   :  { %v1738_v45 = vsel %vm1735_vm7, %v1737_v32, %v1733_v43  ;;  %v1761_v0 = vmul.f32 %v2732_v26, %v1719_v37  ;;  %v4557_v32 = vld [vmem:[#allocation44_spill] sm:$0xff]  ;;  %v4559_v26 = vld [vmem:[#allocation45_spill] sm:$0xff]  ;;  %v4191_v7 = vld [vmem:[#allocation11 + $0x98] sm:$0xff] }
 0x3e0   :  { %v1760_v25 = vmul.f32 %v1738_v45, %v4553_v61  ;;  %v1748_v31 = vmul.f32 %v2730_v3, %v1747_v17  ;;  %2068 = vmatpush.msrb.mxu0 %v4070_v40  ;;  %v503_v44 = vadd.f32 %v4557_v32, %v4556_v33  ;;  %v544_v37 = vadd.f32 %v4559_v26, %v4558_v21  ;;  %v4183_v45 = vld [vmem:[#allocation11 + $0xd0] sm:$0xff]  ;;  %v4207_v32 = vld [vmem:[#allocation11 + $0x40] sm:$0xff] }
 0x3e1   :  { %2107 = vmatpush.msrb.mxu2 %v4183_v45  ;;  %v4186_v61 = vld [vmem:[#allocation11 + $0xb0] sm:$0xff]  ;;  %4560 = vst [vmem:[#allocation61_spill] sm:$0xff] %v4191_v7  ;;  %2129 = vmatpush.msrb.mxu3 %v4191_v7 }
 0x3e2   :  { %v4167_v15 = vadd.f32 %v1761_v0, %v1760_v25  ;;  %v1749_v27 = vadd.f32 %v2730_v3, %v1748_v31  ;;  %2069 = vmatpush.msrb.mxu0 %v4080_v55  ;;  %4565 = vst [vmem:[#allocation60_spill] sm:$0xff] %v4207_v32  ;;  %v4211_v26 = vld [vmem:[#allocation11 + $0x50] sm:$0xff] }
 0x3e3   :  { %2108 = vmatpush.msrb.mxu2 %v4186_v61 }
 0x3e4   :  { %2733 = vtanh.f32 %v4167_v15  ;;  %v1753_v13 = vsel %vm1752_vm10, %v2730_v3, %v1749_v27  ;;  %v4189_v27 = vld [vmem:[#allocation11 + $0x90] sm:$0xff]  ;;  %2070 = vmatpush.msrb.mxu0 %v4193_v2 }
 0x3e5   :  { %v1758_v11 = vsel %vm1755_vm11, %v1757_v6, %v1753_v13  ;;  %2109 = vmatpush.msrb.mxu2 %v4189_v27  ;;  %v4197_v13 = vld [vmem:[#allocation11 + $0x68] sm:$0xff]  ;;  %v4199_v6 = vld [vmem:[#allocation11 + $0x70] sm:$0xff] }
 0x3e6   :  { %4562 = vst [vmem:[#allocation63_spill] sm:$0xff] %v4197_v13  ;;  %2090 = vmatpush.msrb.mxu1 %v4197_v13  ;;  %2071 = vmatpush.msrb.mxu0 %v4207_v32 }
 0x3e7   :  { %2110 = vmatpush.msrb.mxu2 %v4199_v6 }
 0x3e9   :  { %2111 = vmatpush.msrb.mxu2 %v4211_v26 }
 0x3ea   :  { %v2734_v52 = vpop.eup %2733 }
 0x3eb   :  { %v1764_v62 = vmul.f32 %v2734_v52, %v1758_v11  ;;  %v4201_v52 = vld [vmem:[#allocation11 + $0x78] sm:$0xff] }
 0x3ec   :  { %4563 = vst [vmem:[#allocation64_spill] sm:$0xff] %v4201_v52  ;;  %v4564_v11 = vld [vmem:[#allocation47_spill] sm:$0xff]  ;;  %2130 = vmatpush.msrb.mxu3 %v4201_v52  ;;  %v4231_v52 = vld [vmem:[#allocation11 + $0x8] sm:$0xff] }
 0x3ed   :  { %1854 = vmatmul.f32.vlgmr.msra.gmra.mxu0 %v1764_v62  ;;  %1766 = vst [vmem:[#allocation17 + $0x20] sm:$0xff] %v1764_v62  ;;  %1874 = vmatmul.f32.vlgmr.msra.gmra.mxu1 %v1764_v62 }
 0x3ee   :  { %1894 = vmatmul.f32.vlgmr.msra.gmra.mxu2 %v1764_v62  ;;  %1914 = vmatmul.f32.vlgmr.msra.gmra.mxu3 %v1764_v62  ;;  %v626_v62 = vadd.f32 %v4564_v11, %v4516_v42  ;;  %v4229_v11 = vld [vmem:[#allocation11] sm:$0xff]  ;;  %4572 = vst [vmem:[#allocation41_spill] sm:$0xff] %v4231_v52 }
 0x3ef   :  { %4571 = vst [vmem:[#allocation40_spill] sm:$0xff] %v4229_v11 }
 0x46a   :  { %v1855_v43 = vpop.f32.mrf.mxu0  ;;  %v1875_v17 = vpop.f32.mrf.mxu1 }
 0x46b   :  { %v1918_v3 = vadd.f32 %v1855_v43, %v503_v44  ;;  %v1919_v0 = vadd.f32 %v1875_v17, %v544_v37  ;;  %v4209_v44 = vld [vmem:[#allocation11 + $0x48] sm:$0xff]  ;;  %v4215_v43 = vld [vmem:[#allocation11 + $0x58] sm:$0xff]  ;;  %v4217_v17 = vld [vmem:[#allocation11 + $0x20] sm:$0xff] }
 0x46c   :  { %4566 = vst [vmem:[#allocation65_spill] sm:$0xff] %v4209_v44  ;;  %2091 = vmatpush.msrb.mxu1 %v4209_v44  ;;  %2131 = vmatpush.msrb.mxu3 %v4215_v43 }
 0x46d   :  { %v2632_v25 = vmul.f32 -1.442695, %v1918_v3  ;;  %v2633_v31 = vmul.f32 -1.442695, %v1919_v0  ;;  %4567 = vst [vmem:[#allocation66_spill] sm:$0xff] %v4215_v43  ;;  %v4219_v3 = vld [vmem:[#allocation11 + $0x28] sm:$0xff]  ;;  %2072 = vmatpush.msrb.mxu0 %v4217_v17 }
 0x46e   :  { %4568 = vst [vmem:[#allocation32_spill] sm:$0xff] %v4217_v17  ;;  %2092 = vmatpush.msrb.mxu1 %v4219_v3 }
 0x46f   :  { %2735 = vpow2.f32 %v2632_v25  ;;  %4569 = vst [vmem:[#allocation33_spill] sm:$0xff] %v4219_v3  ;;  %v4223_v25 = vld [vmem:[#allocation11 + $0x30] sm:$0xff]  ;;  %2073 = vmatpush.msrb.mxu0 %v4229_v11 }
 0x470   :  { %2737 = vpow2.f32 %v2633_v31  ;;  %v4225_v31 = vld [vmem:[#allocation11 + $0x38] sm:$0xff]  ;;  %2112 = vmatpush.msrb.mxu2 %v4223_v25  ;;  %2093 = vmatpush.msrb.mxu1 %v4231_v52 }
 0x471   :  { %v1915_v37 = vpop.f32.mrf.mxu3  ;;  %4570 = vst [vmem:[#allocation42_spill] sm:$0xff] %v4225_v31  ;;  %2132 = vmatpush.msrb.mxu3 %v4225_v31  ;;  %v1895_v3 = vpop.f32.mrf.mxu2 }
 0x472   :  { %v1921_v0 = vadd.f32 %v1915_v37, %v626_v62  ;;  %v4235_v62 = vld [vmem:[#allocation11 + $0x10] sm:$0xff]  ;;  %v4237_v37 = vld [vmem:[#allocation11 + $0x18] sm:$0xff] }
 0x473   :  { %4573 = vst [vmem:[#allocation43_spill] sm:$0xff] %v4237_v37  ;;  %2113 = vmatpush.msrb.mxu2 %v4235_v62  ;;  %2133 = vmatpush.msrb.mxu3 %v4237_v37 }
 0x474   :  { %v2634_v13 = vmul.f32 -1.442695, %v1921_v0 }
 0x475   :  { %v2736_v44 = vpop.eup %2735  ;;  %2318 = vmatpush.msra.mxu2 %v3963_v34 }
 0x476   :  { %v2738_v32 = vpop.eup %2737  ;;  %v1925_v43 = vadd.f32 1.0, %v2736_v44  ;;  %2739 = vpow2.f32 %v2634_v13  ;;  %v4574_v44 = vld [vmem:[#allocation50_spill] sm:$0xff] }
 0x477   :  { %v1944_v0 = vadd.f32 1.0, %v2738_v32  ;;  %2319 = vmatpush.msra.mxu2 %v3966_v46  ;;  %v585_v13 = vadd.f32 %v4574_v44, %v4531_v24 }
 0x478   :  { %2741 = vrcp.f32 %v1925_v43  ;;  %v1937_v7 = vand.u32 2147483648, %v1925_v43  ;;  %vm1931_vm14 = vweird.f32 %v1925_v43 }
 0x479   :  { %2743 = vrcp.f32 %v1944_v0  ;;  %2320 = vmatpush.msra.mxu2 %v3976_v59  ;;  %v1920_v32 = vadd.f32 %v1895_v3, %v585_v13  ;;  %v1956_v44 = vand.u32 2147483648, %v1944_v0  ;;  %v1935_v59 = vand.u32 2147483647, %v1925_v43 }
 0x47a   :  { %v1954_v3 = vand.u32 2147483647, %v1944_v0  ;;  %vm1950_vm15 = vweird.f32 %v1944_v0 }
 0x47b   :  { %2321 = vmatpush.msra.mxu2 %v3988_v54  ;;  %vm1936_vm2 = vcmp.eq.f32.partialorder %v1935_v59, 8.507059e+37  ;;  %v4591_v59 = vld [vmem:[#allocation41_spill] sm:$0xff] }
 0x47c   :  { %v2740_v31 = vpop.eup %2739  ;;  %vm1955_vm3 = vcmp.eq.f32.partialorder %v1954_v3, 8.507059e+37 }
 0x47d   :  { %v1964_v11 = vadd.f32 1.0, %v2740_v31  ;;  %2322 = vmatpush.msra.mxu2 %v4000_v19  ;;  %v1938_v19 = vor.u32 1.1754944e-38, %v1937_v7 }
 0x47e   :  { %v2742_v52 = vpop.eup %2741 }
 0x47f   :  { %v2744_v17 = vpop.eup %2743  ;;  %v1927_v37 = vmul.f32 %v2742_v52, %v1925_v43  ;;  %2745 = vrcp.f32 %v1964_v11  ;;  %2323 = vmatpush.msra.mxu2 %v4012_v38  ;;  %vm1932_vm12 = vweird.f32 %v2742_v52  ;;  %v1957_v38 = vor.u32 1.1754944e-38, %v1956_v44  ;;  %v4590_v44 = vld [vmem:[#allocation40_spill] sm:$0xff] }
 0x480   :  { %v1946_v2 = vmul.f32 %v2744_v17, %v1944_v0  ;;  %2747 = vtanh.f32 %v1920_v32  ;;  %vm1951_vm13 = vweird.f32 %v2744_v17  ;;  %vm1933_vm0 = vmor %vm1931_vm14, %vm1932_vm12  ;;  %vm1970_vm5 = vweird.f32 %v1964_v11 }
 0x481   :  { %v1928_v34 = vsub.f32 1.0, %v1927_v37  ;;  %2324 = vmatpush.msra.mxu2 %v4024_v29  ;;  %vm1952_vm1 = vmor %vm1950_vm15, %vm1951_vm13 }
 0x482   :  { %v1947_v46 = vsub.f32 1.0, %v1946_v2 }
 0x483   :  { %v1929_v24 = vmul.f32 %v2742_v52, %v1928_v34  ;;  %2325 = vmatpush.msra.mxu2 %v4549_v50 }
 0x484   :  { %v1948_v31 = vmul.f32 %v2744_v17, %v1947_v46 }
 0x485   :  { %v2746_v54 = vpop.eup %2745  ;;  %v1930_v13 = vadd.f32 %v2742_v52, %v1929_v24  ;;  %2326 = vmatpush.msra.mxu2 %v4554_v49  ;;  %v1974_v49 = vand.u32 2147483647, %v1964_v11 }
 0x486   :  { %v1949_v2 = vadd.f32 %v2744_v17, %v1948_v31  ;;  %v1966_v37 = vmul.f32 %v2746_v54, %v1964_v11  ;;  %v2748_v34 = vpop.eup %2747  ;;  %vm1971_vm4 = vweird.f32 %v2746_v54  ;;  %v4592_v31 = vld [vmem:[#allocation43_spill] sm:$0xff] }
 0x487   :  { %v1934_v32 = vsel %vm1933_vm0, %v2742_v52, %v1930_v13  ;;  %2327 = vmatpush.msra.mxu2 %v4183_v45  ;;  %v1976_v52 = vand.u32 2147483648, %v1964_v11  ;;  %vm1972_vm6 = vmor %vm1970_vm5, %vm1971_vm4  ;;  %vm1975_vm7 = vcmp.eq.f32.partialorder %v1974_v49, 8.507059e+37  ;;  %v2271_v11 = vld [vmem:[#allocation11 + $0x1c8] sm:$0xff] }
 0x488   :  { %v1939_v46 = vsel %vm1936_vm2, %v1938_v19, %v1934_v32  ;;  %v1953_v42 = vsel %vm1952_vm1, %v2744_v17, %v1949_v2  ;;  %v1967_v28 = vsub.f32 1.0, %v1966_v37  ;;  %v2275_v17 = vld [vmem:[#allocation11 + $0x1e8] sm:$0xff] }
 0x489   :  { %v1958_v24 = vsel %vm1955_vm3, %v1957_v38, %v1953_v42  ;;  %v1981_v29 = vmul.f32 %v2748_v34, %v1939_v46  ;;  %2328 = vmatpush.msra.mxu2 %v4186_v61  ;;  %2298 = vmatpush.msra.mxu1 %v2275_v17  ;;  %v4593_v13 = vld [vmem:[#allocation28_spill] sm:$0xff] }
 0x48a   :  { %v1980_v43 = vmul.f32 %v1958_v24, %v4167_v15  ;;  %v1968_v7 = vmul.f32 %v2746_v54, %v1967_v28  ;;  %v1977_v28 = vor.u32 1.1754944e-38, %v1976_v52  ;;  %v4594_v19 = vld [vmem:[#allocation56_spill] sm:$0xff] }
 0x48b   :  { %2329 = vmatpush.msra.mxu2 %v4189_v27  ;;  %v2274_v27 = vld [vmem:[#allocation11 + $0x1e0] sm:$0xff]  ;;  %2299 = vmatpush.msra.mxu1 %v2271_v11  ;;  %v588_v2 = vadd.f32 %v4594_v19, %v4593_v13 }
 0x48c   :  { %v4258_v0 = vadd.f32 %v1981_v29, %v1980_v43  ;;  %v1969_v50 = vadd.f32 %v2746_v54, %v1968_v7  ;;  %2278 = vmatpush.msra.mxu0 %v2274_v27 }
 0x48d   :  { %2330 = vmatpush.msra.mxu2 %v4199_v6  ;;  %v2277_v6 = vld [vmem:[#allocation11 + $0x1f8] sm:$0xff]  ;;  %2300 = vmatpush.msra.mxu1 %v3974_v8  ;;  %v4576_v8 = vld [vmem:[#allocation49_spill] sm:$0xff] }
 0x48e   :  { %2749 = vtanh.f32 %v4258_v0  ;;  %v1973_v42 = vsel %vm1972_vm6, %v2746_v54, %v1969_v50  ;;  %2338 = vmatpush.msra.mxu3 %v2277_v6 }
 0x48f   :  { %2331 = vmatpush.msra.mxu2 %v4211_v26  ;;  %v1978_v45 = vsel %vm1975_vm7, %v1977_v28, %v1973_v42  ;;  %v2270_v26 = vld [vmem:[#allocation11 + $0x1c0] sm:$0xff]  ;;  %2301 = vmatpush.msra.mxu1 %v3986_v20 }
 0x490   :  { %2279 = vmatpush.msra.mxu0 %v2270_v26  ;;  %2339 = vmatpush.msra.mxu3 %v3968_v57  ;;  %v4575_v57 = vld [vmem:[#allocation48_spill] sm:$0xff] }
 0x491   :  { %2332 = vmatpush.msra.mxu2 %v4223_v25  ;;  %2302 = vmatpush.msra.mxu1 %v3998_v16  ;;  %v4589_v25 = vld [vmem:[#allocation42_spill] sm:$0xff] }
 0x492   :  { %2280 = vmatpush.msra.mxu0 %v3972_v58  ;;  %2340 = vmatpush.msra.mxu3 %v3980_v48  ;;  %v506_v58 = vadd.f32 %v4575_v57, %v4556_v33  ;;  %v547_v48 = vadd.f32 %v4576_v8, %v4558_v21 }
 0x493   :  { %2333 = vmatpush.msra.mxu2 %v4235_v62  ;;  %2303 = vmatpush.msra.mxu1 %v4010_v35  ;;  %v4578_v35 = vld [vmem:[#allocation58_spill] sm:$0xff] }
 0x494   :  { %v2750_v15 = vpop.eup %2749  ;;  %2281 = vmatpush.msra.mxu0 %v3984_v60  ;;  %2341 = vmatpush.msra.mxu3 %v3992_v63 }
 0x495   :  { %v1984_v61 = vmul.f32 %v2750_v15, %v1978_v45  ;;  %2304 = vmatpush.msra.mxu1 %v4022_v41  ;;  %v4580_v41 = vld [vmem:[#allocation61_spill] sm:$0xff] }
 0x496   :  { %2282 = vmatpush.msra.mxu0 %v3996_v1  ;;  %2342 = vmatpush.msra.mxu3 %v4004_v56 }
 0x497   :  { %2074 = vmatmul.f32.vlgmr.msrb.gmra.mxu0 %v1984_v61  ;;  %1986 = vst [vmem:[#allocation17 + $0x28] sm:$0xff] %v1984_v61  ;;  %2094 = vmatmul.f32.vlgmr.msrb.gmra.mxu1 %v1984_v61 }
 0x498   :  { %2114 = vmatmul.f32.vlgmr.msrb.gmra.mxu2 %v1984_v61  ;;  %2134 = vmatmul.f32.vlgmr.msrb.gmra.mxu3 %v1984_v61 }
 0x499   :  { %2283 = vmatpush.msra.mxu0 %v4008_v22  ;;  %2343 = vmatpush.msra.mxu3 %v4016_v39  ;;  %v4577_v22 = vld [vmem:[#allocation34_spill] sm:$0xff]  ;;  %v4579_v39 = vld [vmem:[#allocation51_spill] sm:$0xff] }
 0x49a   :  { %2305 = vmatpush.msra.mxu1 %v4548_v14 }
 0x49b   :  { %2284 = vmatpush.msra.mxu0 %v4020_v23  ;;  %2344 = vmatpush.msra.mxu3 %v4028_v51  ;;  %v629_v23 = vadd.f32 %v4579_v39, %v4578_v35 }
 0x49c   :  { %2306 = vmatpush.msra.mxu1 %v4552_v18 }
 0x49d   :  { %2285 = vmatpush.msra.mxu0 %v4547_v5  ;;  %2345 = vmatpush.msra.mxu3 %v4550_v12  ;;  %v4586_v5 = vld [vmem:[#allocation66_spill] sm:$0xff]  ;;  %v4587_v12 = vld [vmem:[#allocation32_spill] sm:$0xff] }
 0x49e   :  { %2307 = vmatpush.msra.mxu1 %v4062_v53  ;;  %v4581_v53 = vld [vmem:[#allocation62_spill] sm:$0xff] }
 0x49f   :  { %2286 = vmatpush.msra.mxu0 %v4551_v10  ;;  %2346 = vmatpush.msra.mxu3 %v4555_v4  ;;  %v4588_v10 = vld [vmem:[#allocation33_spill] sm:$0xff] }
 0x4a0   :  { %2308 = vmatpush.msra.mxu1 %v4072_v47  ;;  %v4583_v47 = vld [vmem:[#allocation64_spill] sm:$0xff] }
 0x4a1   :  { %2287 = vmatpush.msra.mxu0 %v4060_v9  ;;  %2347 = vmatpush.msra.mxu3 %v4064_v30  ;;  %v4582_v9 = vld [vmem:[#allocation63_spill] sm:$0xff]  ;;  %v4585_v30 = vld [vmem:[#allocation65_spill] sm:$0xff] }
 0x4a2   :  { %2309 = vmatpush.msra.mxu1 %v4577_v22 }
 0x4a3   :  { %2288 = vmatpush.msra.mxu0 %v4070_v40  ;;  %2348 = vmatpush.msra.mxu3 %v4074_v36  ;;  %v4584_v36 = vld [vmem:[#allocation60_spill] sm:$0xff] }
 0x4a4   :  { %2310 = vmatpush.msra.mxu1 %v4582_v9 }
 0x4a5   :  { %2289 = vmatpush.msra.mxu0 %v4080_v55  ;;  %2349 = vmatpush.msra.mxu3 %v4580_v41 }
 0x4a6   :  { %2311 = vmatpush.msra.mxu1 %v4585_v30 }
 0x4a7   :  { %2290 = vmatpush.msra.mxu0 %v4581_v53  ;;  %2350 = vmatpush.msra.mxu3 %v4583_v47 }
 0x4a8   :  { %2312 = vmatpush.msra.mxu1 %v4588_v10  ;;  %v4597_v10 = vld [vmem:[#allocation57_spill] sm:$0xff] }
 0x4a9   :  { %2291 = vmatpush.msra.mxu0 %v4584_v36  ;;  %2351 = vmatpush.msra.mxu3 %v4586_v5 }
 0x4aa   :  { %2313 = vmatpush.msra.mxu1 %v4591_v59 }
 0x4ab   :  { %2292 = vmatpush.msra.mxu0 %v4587_v12  ;;  %2352 = vmatpush.msra.mxu3 %v4589_v25 }
 0x4ad   :  { %2293 = vmatpush.msra.mxu0 %v4590_v44  ;;  %2353 = vmatpush.msra.mxu3 %v4592_v31 }
 0x514   :  { %v2075_v60 = vpop.f32.mrf.mxu0  ;;  %v2095_v20 = vpop.f32.mrf.mxu1 }
 0x515   :  { %v2138_v63 = vadd.f32 %v2075_v60, %v506_v58  ;;  %v2139_v1 = vadd.f32 %v2095_v20, %v547_v48 }
 0x517   :  { %v2635_v16 = vmul.f32 -1.442695, %v2138_v63  ;;  %v2636_v56 = vmul.f32 -1.442695, %v2139_v1 }
 0x519   :  { %2751 = vpow2.f32 %v2635_v16 }
 0x51a   :  { %2753 = vpow2.f32 %v2636_v56 }
 0x51b   :  { %v2135_v51 = vpop.f32.mrf.mxu3  ;;  %v2115_v3 = vpop.f32.mrf.mxu2 }
 0x51c   :  { %v2141_v40 = vadd.f32 %v2135_v51, %v629_v23  ;;  %v2140_v32 = vadd.f32 %v2115_v3, %v588_v2 }
 0x51e   :  { %v2637_v55 = vmul.f32 -1.442695, %v2141_v40  ;;  %v4596_v40 = vld [vmem:[#allocation53_spill] sm:$0xff] }
 0x51f   :  { %v2752_v14 = vpop.eup %2751  ;;  %v550_v47 = vadd.f32 %v4596_v40, %v4558_v21 }
 0x520   :  { %v2754_v18 = vpop.eup %2753  ;;  %v2145_v4 = vadd.f32 1.0, %v2752_v14  ;;  %2755 = vpow2.f32 %v2637_v55 }
 0x521   :  { %v2164_v62 = vadd.f32 1.0, %v2754_v18  ;;  %v632_v18 = vadd.f32 %v4597_v10, %v4578_v35 }
 0x522   :  { %2757 = vrcp.f32 %v2145_v4  ;;  %v2157_v7 = vand.u32 2147483648, %v2145_v4  ;;  %v2155_v49 = vand.u32 2147483647, %v2145_v4  ;;  %vm2151_vm10 = vweird.f32 %v2145_v4 }
 0x523   :  { %2759 = vrcp.f32 %v2164_v62  ;;  %v2176_v50 = vand.u32 2147483648, %v2164_v62  ;;  %v2174_v28 = vand.u32 2147483647, %v2164_v62  ;;  %vm2170_vm11 = vweird.f32 %v2164_v62 }
 0x524   :  { %v2158_v61 = vor.u32 1.1754944e-38, %v2157_v7  ;;  %vm2156_vm14 = vcmp.eq.f32.partialorder %v2155_v49, 8.507059e+37 }
 0x525   :  { %v2177_v6 = vor.u32 1.1754944e-38, %v2176_v50  ;;  %vm2175_vm15 = vcmp.eq.f32.partialorder %v2174_v28, 8.507059e+37 }
 0x526   :  { %v2756_v54 = vpop.eup %2755 }
 0x527   :  { %v2184_v37 = vadd.f32 1.0, %v2756_v54  ;;  %v4598_v54 = vld [vmem:[#allocation59_spill] sm:$0xff] }
 0x528   :  { %v2758_v38 = vpop.eup %2757  ;;  %v591_v19 = vadd.f32 %v4598_v54, %v4593_v13 }
 0x529   :  { %v2760_v34 = vpop.eup %2759  ;;  %v2147_v46 = vmul.f32 %v2758_v38, %v2145_v4  ;;  %2761 = vrcp.f32 %v2184_v37  ;;  %vm2152_vm8 = vweird.f32 %v2758_v38  ;;  %v2196_v56 = vand.u32 2147483648, %v2184_v37 }
 0x52a   :  { %v2166_v24 = vmul.f32 %v2760_v34, %v2164_v62  ;;  %2763 = vtanh.f32 %v2140_v32  ;;  %vm2171_vm9 = vweird.f32 %v2760_v34  ;;  %vm2153_vm12 = vmor %vm2151_vm10, %vm2152_vm8  ;;  %vm2190_vm1 = vweird.f32 %v2184_v37 }
 0x52b   :  { %v2148_v29 = vsub.f32 1.0, %v2147_v46  ;;  %vm2172_vm13 = vmor %vm2170_vm11, %vm2171_vm9  ;;  %v2194_v22 = vand.u32 2147483647, %v2184_v37  ;;  %v2197_v23 = vor.u32 1.1754944e-38, %v2196_v56 }
 0x52c   :  { %v2167_v43 = vsub.f32 1.0, %v2166_v24 }
 0x52d   :  { %v2149_v52 = vmul.f32 %v2758_v38, %v2148_v29  ;;  %vm2195_vm3 = vcmp.eq.f32.partialorder %v2194_v22, 8.507059e+37 }
 0x52e   :  { %v2168_v42 = vmul.f32 %v2760_v34, %v2167_v43 }
 0x52f   :  { %v2762_v15 = vpop.eup %2761  ;;  %v2150_v45 = vadd.f32 %v2758_v38, %v2149_v52 }
 0x530   :  { %v2169_v27 = vadd.f32 %v2760_v34, %v2168_v42  ;;  %v2186_v17 = vmul.f32 %v2762_v15, %v2184_v37  ;;  %v2764_v11 = vpop.eup %2763  ;;  %vm2191_vm0 = vweird.f32 %v2762_v15 }
 0x531   :  { %v2154_v26 = vsel %vm2153_vm12, %v2758_v38, %v2150_v45  ;;  %vm2192_vm2 = vmor %vm2190_vm1, %vm2191_vm0 }
 0x532   :  { %v2159_v57 = vsel %vm2156_vm14, %v2158_v61, %v2154_v26  ;;  %v2173_v58 = vsel %vm2172_vm13, %v2760_v34, %v2169_v27  ;;  %v2187_v8 = vsub.f32 1.0, %v2186_v17 }
 0x533   :  { %v2178_v48 = vsel %vm2175_vm15, %v2177_v6, %v2173_v58  ;;  %v2201_v60 = vmul.f32 %v2764_v11, %v2159_v57 }
 0x534   :  { %v2200_v20 = vmul.f32 %v2178_v48, %v4258_v0  ;;  %v2188_v63 = vmul.f32 %v2762_v15, %v2187_v8  ;;  %v4595_v0 = vld [vmem:[#allocation52_spill] sm:$0xff] }
 0x535   :  { %v509_v9 = vadd.f32 %v4595_v0, %v4556_v33 }
 0x536   :  { %v4319_v1 = vadd.f32 %v2201_v60, %v2200_v20  ;;  %v2189_v16 = vadd.f32 %v2762_v15, %v2188_v63 }
 0x538   :  { %2765 = vtanh.f32 %v4319_v1  ;;  %v2193_v39 = vsel %vm2192_vm2, %v2762_v15, %v2189_v16 }
 0x539   :  { %v2198_v51 = vsel %vm2195_vm3, %v2197_v23, %v2193_v39 }
 0x53e   :  { %v2766_v41 = vpop.eup %2765 }
 0x53f   :  { %v2204_v53 = vmul.f32 %v2766_v41, %v2198_v51 }
 0x541   :  { %2294 = vmatmul.f32.vlgmr.msra.gmra.mxu0 %v2204_v53  ;;  %2206 = vst [vmem:[#allocation17 + $0x30] sm:$0xff] %v2204_v53  ;;  %2314 = vmatmul.f32.vlgmr.msra.gmra.mxu1 %v2204_v53 }
 0x542   :  { %2334 = vmatmul.f32.vlgmr.msra.gmra.mxu2 %v2204_v53  ;;  %2354 = vmatmul.f32.vlgmr.msra.gmra.mxu3 %v2204_v53 }
 0x5be   :  { %v2295_v36 = vpop.f32.mrf.mxu0  ;;  %v2315_v30 = vpop.f32.mrf.mxu1 }
 0x5bf   :  { %v2358_v55 = vadd.f32 %v2295_v36, %v509_v9  ;;  %v2359_v5 = vadd.f32 %v2315_v30, %v550_v47 }
 0x5c1   :  { %v2638_v14 = vmul.f32 -1.442695, %v2358_v55  ;;  %v2639_v12 = vmul.f32 -1.442695, %v2359_v5 }
 0x5c3   :  { %2767 = vpow2.f32 %v2638_v14 }
 0x5c4   :  { %2769 = vpow2.f32 %v2639_v12 }
 0x5c5   :  { %v2355_v4 = vpop.f32.mrf.mxu3  ;;  %v2335_v21 = vpop.f32.mrf.mxu2 }
 0x5c6   :  { %v2361_v25 = vadd.f32 %v2355_v4, %v632_v18  ;;  %v2360_v38 = vadd.f32 %v2335_v21, %v591_v19 }
 0x5c8   :  { %v2640_v62 = vmul.f32 -1.442695, %v2361_v25 }
 0x5c9   :  { %v2768_v44 = vpop.eup %2767 }
 0x5ca   :  { %v2770_v59 = vpop.eup %2769  ;;  %v2365_v33 = vadd.f32 1.0, %v2768_v44  ;;  %2771 = vpow2.f32 %v2640_v62 }
 0x5cb   :  { %v2384_v31 = vadd.f32 1.0, %v2770_v59 }
 0x5cc   :  { %2773 = vrcp.f32 %v2365_v33  ;;  %v2377_v29 = vand.u32 2147483648, %v2365_v33  ;;  %v2375_v50 = vand.u32 2147483647, %v2365_v33  ;;  %vm2371_vm6 = vweird.f32 %v2365_v33 }
 0x5cd   :  { %2775 = vrcp.f32 %v2384_v31  ;;  %v2396_v43 = vand.u32 2147483648, %v2384_v31  ;;  %v2394_v49 = vand.u32 2147483647, %v2384_v31  ;;  %vm2390_vm7 = vweird.f32 %v2384_v31 }
 0x5ce   :  { %v2378_v28 = vor.u32 1.1754944e-38, %v2377_v29  ;;  %vm2376_vm10 = vcmp.eq.f32.partialorder %v2375_v50, 8.507059e+37 }
 0x5cf   :  { %v2397_v61 = vor.u32 1.1754944e-38, %v2396_v43  ;;  %vm2395_vm11 = vcmp.eq.f32.partialorder %v2394_v49, 8.507059e+37 }
 0x5d0   :  { %v2772_v3 = vpop.eup %2771 }
 0x5d1   :  { %v2404_v2 = vadd.f32 1.0, %v2772_v3 }
 0x5d2   :  { %v2774_v37 = vpop.eup %2773 }
 0x5d3   :  { %v2776_v35 = vpop.eup %2775  ;;  %v2367_v32 = vmul.f32 %v2774_v37, %v2365_v33  ;;  %2777 = vrcp.f32 %v2404_v2  ;;  %vm2372_vm4 = vweird.f32 %v2774_v37  ;;  %v2416_v63 = vand.u32 2147483648, %v2404_v2 }
 0x5d4   :  { %v2386_v34 = vmul.f32 %v2776_v35, %v2384_v31  ;;  %2779 = vtanh.f32 %v2360_v38  ;;  %vm2391_vm5 = vweird.f32 %v2776_v35  ;;  %vm2373_vm8 = vmor %vm2371_vm6, %vm2372_vm4  ;;  %vm2410_vm13 = vweird.f32 %v2404_v2 }
 0x5d5   :  { %v2368_v46 = vsub.f32 1.0, %v2367_v32  ;;  %vm2392_vm9 = vmor %vm2390_vm7, %vm2391_vm5  ;;  %v2414_v16 = vand.u32 2147483647, %v2404_v2  ;;  %v2417_v22 = vor.u32 1.1754944e-38, %v2416_v63 }
 0x5d6   :  { %v2387_v24 = vsub.f32 1.0, %v2386_v34 }
 0x5d7   :  { %v2369_v7 = vmul.f32 %v2774_v37, %v2368_v46  ;;  %vm2415_vm15 = vcmp.eq.f32.partialorder %v2414_v16, 8.507059e+37 }
 0x5d8   :  { %v2388_v52 = vmul.f32 %v2776_v35, %v2387_v24 }
 0x5d9   :  { %v2778_v42 = vpop.eup %2777  ;;  %v2370_v13 = vadd.f32 %v2774_v37, %v2369_v7 }
 0x5da   :  { %v2389_v15 = vadd.f32 %v2776_v35, %v2388_v52  ;;  %v2406_v45 = vmul.f32 %v2778_v42, %v2404_v2  ;;  %v2780_v17 = vpop.eup %2779  ;;  %vm2411_vm12 = vweird.f32 %v2778_v42 }
 0x5db   :  { %v2374_v27 = vsel %vm2373_vm8, %v2774_v37, %v2370_v13  ;;  %vm2412_vm14 = vmor %vm2410_vm13, %vm2411_vm12 }
 0x5dc   :  { %v2379_v6 = vsel %vm2376_vm10, %v2378_v28, %v2374_v27  ;;  %v2393_v26 = vsel %vm2392_vm9, %v2776_v35, %v2389_v15  ;;  %v2407_v11 = vsub.f32 1.0, %v2406_v45 }
 0x5dd   :  { %v2398_v57 = vsel %vm2395_vm11, %v2397_v61, %v2393_v26  ;;  %v2421_v58 = vmul.f32 %v2780_v17, %v2379_v6 }
 0x5de   :  { %v2420_v8 = vmul.f32 %v2398_v57, %v4319_v1  ;;  %v2408_v48 = vmul.f32 %v2778_v42, %v2407_v11 }
 0x5e0   :  { %v2422_v60 = vadd.f32 %v2421_v58, %v2420_v8  ;;  %v2409_v20 = vadd.f32 %v2778_v42, %v2408_v48 }
 0x5e2   :  { %2428 = vst [vmem:[#allocation20] sm:$0xff] %v2422_v60  ;;  %2781 = vtanh.f32 %v2422_v60  ;;  %v2413_v56 = vsel %vm2412_vm14, %v2778_v42, %v2409_v20 }
 0x5e3   :  { %v2418_v39 = vsel %vm2415_vm15, %v2417_v22, %v2413_v56 }
 0x5e8   :  { %v2782_v1 = vpop.eup %2781 }
 0x5e9   :  { %v2424_v23 = vmul.f32 %v2782_v1, %v2418_v39 }
 0x5eb   :  { %2426 = vst [vmem:[#allocation17 + $0x38] sm:$0xff] %v2424_v23 }
 0x5ec   :  { %2427 = vst [vmem:[#allocation18] sm:$0xff] %v2424_v23  ;;  %2441 = dma.vmem_to_hbm [thread:$0]  %s2434_s22, 1024, %s2436_s17, [#allocation6], %s3031_s28, %s3031_s28, %s3032_s29  }
 0x5ed   :  { %2452 = dma.vmem_to_hbm [thread:$0]  %s2448_s23, 128, %s2450_s25, [#allocation19]  }
 0x5ee   :  { %2463 = dma.vmem_to_hbm [thread:$0]  %s2459_s4, 128, %s2461_s30, [#allocation19]  }
 0x5ef   :  { %3021 = dma.done.wait [#allocation6], 1024  }
 0x5f0   :  { %3022 = vsyncadd [#allocation6], 4294966272 }
 0x5f1   :  { %3023 = dma.done.wait [#allocation19], 256  }
 0x5f2   :  { %3024 = vsyncadd [#allocation19], 4294967040 }
 0x5f3   :  { %2476 = vsyncpa [#allocation5], 1 }
 0x5f4   :  { %2477 = vsyncpa [#allocation10], 1 }
 0x5f5   :  { %2478 = vsyncpa [#allocation13], 1 }
 0x5f6   :  { %2479 = vsyncpa [#allocation16], 1 }
 0x5f7   :  { %2480 = vsyncpa [#allocation6], 1 }
 0x5f8   :  { %2481 = vsyncpa [#allocation19], 1 }
 0x5f9   :  { %2482 = vsyncpa [#allocation7], 1 }

</bundles_post_ra>
